<compile_context>
chip_gen: v5e
topology: v5e:2x2
jax: 0.10.0
libtpu: 0.0.40
codegen_flags: <defaults>
</compile_context>

<pallas_src>
import functools
import math

import jax
import jax.numpy as jnp
from jax import lax
from jax.experimental import pallas as pl
from jax.experimental.pallas import tpu as pltpu

EPS = 1e-8
_SQRT_HALF = 0.7071067811865476


def _vmem_limit_bytes():
    # v5e/v6e: 128 MiB physical VMEM (bigger tiles pay off); v7x: 64 MiB.
    try:
        cap = pltpu.get_tpu_info().vmem_capacity_bytes
        return int(min(96 * 1024 * 1024, (cap * 3) // 4))
    except Exception:  # fall back to a value safe on every generation
        return 48 * 1024 * 1024


_VMEM_LIMIT = _vmem_limit_bytes()


def _cparams(n_axes=1):
    return pltpu.CompilerParams(
        dimension_semantics=("parallel",) * n_axes,
        vmem_limit_bytes=_VMEM_LIMIT)


# ---------------------------------------------------------------------------
# In-kernel math helpers (operate on loaded 2-D values)
# ---------------------------------------------------------------------------
def _recip(x):
    # EUP approximate reciprocal + one Newton step => ~f32-accurate, no divide.
    r = pl.reciprocal(x, approx=True)
    return r * (2.0 - x * r)


def _erf(x):
    # Abramowitz & Stegun 7.1.26 (max abs err ~1.5e-7): exact-GELU semantics at
    # f32 precision using only VPU/EUP ops (no true division).
    a1, a2, a3 = 0.254829592, -0.284496736, 1.421413741
    a4, a5, p = -1.453152027, 1.061405429, 0.3275911
    ax = jnp.abs(x)
    t = _recip(1.0 + p * ax)
    poly = ((((a5 * t + a4) * t + a3) * t + a2) * t + a1) * t
    y = 1.0 - poly * jnp.exp(-ax * ax)
    return jnp.where(x < 0.0, -y, y)


def _gelu(x):
    return 0.5 * x * (1.0 + _erf(x * _SQRT_HALF))


def _project_last(y, exp_scale):
    """HyboNet hyperboloid projection along the last (feature) axis."""
    t_raw = y[:, 0:1]
    time = jax.nn.sigmoid(t_raw) * exp_scale + 1.1
    total = jnp.sum(y * y, axis=-1, keepdims=True)           # single reduction
    rest = jnp.maximum(total - t_raw * t_raw, EPS)            # clamp_min(1e-8)
    fac = jnp.sqrt(time * time - 1.0) * lax.rsqrt(rest)
    col = lax.broadcasted_iota(jnp.int32, y.shape, 1)
    return jnp.where(col == 0, time, y * fac)


def _project_first(y, exp_scale):
    """Same projection, applied along axis 0 (the patch axis of cross-patch)."""
    t_raw = y[0:1, :]
    time = jax.nn.sigmoid(t_raw) * exp_scale + 1.1
    total = jnp.sum(y * y, axis=0, keepdims=True)
    rest = jnp.maximum(total - t_raw * t_raw, EPS)
    fac = jnp.sqrt(time * time - 1.0) * lax.rsqrt(rest)
    row = lax.broadcasted_iota(jnp.int32, y.shape, 0)
    return jnp.where(row == 0, time, y * fac)


def _expmap0_rows(u):
    """geoopt Lorentz expmap0 (k=1) + projection, per row (features on lanes)."""
    # TODO(synk): exp overflows f32 for Lorentz norms > ~88 (mirrors the torch
    #             reference behaviour for such inputs).
    t_raw = u[:, 0:1]
    total = jnp.sum(u * u, axis=-1, keepdims=True)
    sq = jnp.maximum(total - 2.0 * t_raw * t_raw, EPS)        # Lorentz norm^2
    n = jnp.sqrt(sq)
    # Numerically stable sinh(n)/n: Taylor series for small n (avoids the
    # catastrophic cancellation of exp(n)-exp(-n)); exact exp form otherwise.
    series = 1.0 + sq * (1.0 / 6.0) + sq * sq * (1.0 / 120.0)
    exact = (jnp.exp(n) - jnp.exp(-n)) * 0.5 / n
    coef = jnp.where(n < 0.1, series, exact)
    r_sq = coef * coef * (total - t_raw * t_raw)              # ||space part||^2
    left = jnp.sqrt(1.0 + r_sq)                               # projx time coord
    col = lax.broadcasted_iota(jnp.int32, u.shape, 1)
    return jnp.where(col == 0, left, coef * u)


# ---------------------------------------------------------------------------
# Pallas kernels
# ---------------------------------------------------------------------------
def _conv_bn_kernel(p_ref, w_ref, s_ref, o_ref, *, act_gelu, to_lorentz):
    # BatchNorm scale folded into w; only the shift remains.
    z = jnp.dot(p_ref[...].astype(jnp.bfloat16), w_ref[...],
                preferred_element_type=jnp.float32) + s_ref[...]
    if act_gelu:
        z = _gelu(z)
    if to_lorentz:                                   # fused expmap0 (to_lorentz)
        z = _expmap0_rows(z)
    o_ref[...] = z


def _vit_block_kernel(z_ref, qkv_w_ref, qkv_b_ref, proj_w_ref, proj_b_ref,
                      cc_w_ref, cc_b_ref, cp_w_ref, cp_b_ref, o_ref, *,
                      nh, exp_scale, attn_scale):
    """One full Lorentz_VIT_Block for a single sample, entirely in VMEM."""
    x = z_ref[0]                                     # (N, C) f32
    c = x.shape[1]
    hd = c // nh

    # ---- qkv LorentzLinear -------------------------------------------------
    qkv = jnp.dot(x.astype(jnp.bfloat16), qkv_w_ref[...],
                  preferred_element_type=jnp.float32) + qkv_b_ref[...]
    qkv = _project_last(qkv, exp_scale)              # (N, 3C)

    # ---- multi-head attention; proj contribution accumulated per head ------
    # TODO(synk): for production patch counts (N ~ 3136) this needs a kv-tiled
    #             online-softmax (flash) path; here N is moderate so the full
    #             per-head (N,N) score tile stays resident.
    q = qkv[:, :c]
    k = qkv[:, c:2 * c]
    v = qkv[:, 2 * c:]
    y = jnp.zeros_like(x)                            # (N, C) accumulator
    for h in range(nh):
        sl = slice(h * hd, (h + 1) * hd)
        s = lax.dot_general(q[:, sl].astype(jnp.bfloat16),
                            k[:, sl].astype(jnp.bfloat16),
                            (((1,), (1,)), ((), ())),
                            preferred_element_type=jnp.float32)      # (N, N)
        # Module spec: scores are *multiplied* by nn.Parameter([sqrt(head_dim)]).
        s = s * attn_scale
        s = s - jnp.max(s, axis=-1, keepdims=True)
        p = jnp.exp(s)
        p = p * _recip(jnp.sum(p, axis=-1, keepdims=True))
        ctx = jnp.dot(p.astype(jnp.bfloat16), v[:, sl].astype(jnp.bfloat16),
                      preferred_element_type=jnp.float32)            # (N, hd)
        # Fold the head directly into the proj matmul: no lane concat, ctx is
        # consumed immediately (low vreg pressure), output written once.
        y = y + jnp.dot(ctx.astype(jnp.bfloat16), proj_w_ref[sl, :],
                        preferred_element_type=jnp.float32)
    y = y + proj_b_ref[...]
    y = _project_last(y, exp_scale)                  # proj LorentzLinear
    z1 = _project_last(x + y, exp_scale)             # residual + block scale_func

    # ---- Lorentz ResMLP: cross-channel then cross-patch --------------------
    cc = jnp.dot(_gelu(z1).astype(jnp.bfloat16), cc_w_ref[...],
                 preferred_element_type=jnp.float32) + cc_b_ref[...]
    cc = _project_last(cc, exp_scale)                # cross-channel LorentzLinear
    # cross-patch: rearrange 'b p c -> b c p' -> gelu -> Linear(p->p) ->
    # projection along the patch axis -> revert, done without any transpose:
    # out[p_out, ch] = sum_{p_in} cp_w[p_out, p_in] * gelu(cc)[p_in, ch]
    cp = jnp.dot(cp_w_ref[...], _gelu(cc).astype(jnp.bfloat16),
                 preferred_element_type=jnp.float32) + cp_b_ref[...]
    cp = _project_first(cp, exp_scale)
    o_ref[0] = _project_last(z1 + cp, exp_scale)     # MLP residual + scale_func


def _pool_centroid_kernel(x_ref, cls_ref, b_ref, o_ref):
    x = jnp.mean(x_ref[...], axis=1)                 # adaptive_avg_pool1d(., 1)
    col = lax.broadcasted_iota(jnp.int32, x.shape, 1)
    xs = jnp.where(col == 0, -x, x)                  # Lorentz cinner: flip time
    inner = lax.dot_general(xs, cls_ref[...], (((1,), (1,)), ((), ())),
                            preferred_element_type=jnp.float32)
    o_ref[...] = 2.0 + 2.0 * inner + b_ref[...]


# ---------------------------------------------------------------------------
# pallas_call wrappers
# ---------------------------------------------------------------------------
def _row_block(m, target=512):
    """Largest multiple of 8 that divides m exactly and is <= target, preferring
    >= 2 grid steps.  Never pads (falls back to the full slab)."""
    if m % 8 != 0:
        return m
    best = 8
    d = 8
    cap = min(target, m)
    while d <= cap:
        if m % d == 0:
            best = d
        d += 8
    if best == m and m >= 16 and (m // 2) % 8 == 0:
        best = m // 2                                # ensure >= 2 grid steps
    return best


def conv_bn(patches, w, shift, *, act_gelu, to_lorentz):
    m, kd = patches.shape
    f = w.shape[1]
    bm = _row_block(m)
    g = m // bm
    cost = pl.CostEstimate(flops=2 * m * kd * f,
                           transcendentals=4 * m * f,
                           bytes_accessed=4 * m * kd + 2 * kd * f + 4 * f + 4 * m * f)
    return pl.pallas_call(
        functools.partial(_conv_bn_kernel, act_gelu=act_gelu, to_lorentz=to_lorentz),
        out_shape=jax.ShapeDtypeStruct((m, f), jnp.float32),
        grid=(g,),
        in_specs=[pl.BlockSpec((bm, kd), lambda i: (i, 0)),
                  pl.BlockSpec((kd, f), lambda i: (0, 0)),
                  pl.BlockSpec((1, f), lambda i: (0, 0))],
        out_specs=pl.BlockSpec((bm, f), lambda i: (i, 0)),
        compiler_params=_cparams(),
        cost_estimate=cost,
    )(patches, w, shift)


def vit_block(z, bp):
    b, n, c = z.shape
    ap, mp_ = bp['attn'], bp['mlp']
    nh = ap['num_heads']
    hd = c // nh
    flops = b * (2 * n * c * 3 * c          # qkv
                 + 4 * nh * n * n * hd      # scores + ctx
                 + 2 * n * c * c            # proj (accumulated per head)
                 + 2 * n * c * c            # cross-channel
                 + 2 * n * n * c)           # cross-patch
    cost = pl.CostEstimate(
        flops=flops,
        transcendentals=b * (nh * n * n + 12 * n * c),
        bytes_accessed=8 * b * n * c + 2 * (5 * c * c + n * n) + 8 * (c + n))
    tok_spec = pl.BlockSpec((1, n, c), lambda i: (i, 0, 0))
    return pl.pallas_call(
        functools.partial(_vit_block_kernel, nh=nh,
                          exp_scale=bp['exp_scale'], attn_scale=ap['attn_scale']),
        out_shape=jax.ShapeDtypeStruct((b, n, c), jnp.float32),
        grid=(b,),
        in_specs=[tok_spec,
                  pl.BlockSpec((c, 3 * c), lambda i: (0, 0)),
                  pl.BlockSpec((1, 3 * c), lambda i: (0, 0)),
                  pl.BlockSpec((c, c), lambda i: (0, 0)),
                  pl.BlockSpec((1, c), lambda i: (0, 0)),
                  pl.BlockSpec((c, c), lambda i: (0, 0)),
                  pl.BlockSpec((1, c), lambda i: (0, 0)),
                  pl.BlockSpec((n, n), lambda i: (0, 0)),
                  pl.BlockSpec((n, 1), lambda i: (0, 0))],
        out_specs=tok_spec,
        compiler_params=_cparams(),
        cost_estimate=cost,
    )(z, ap['qkv_w'], ap['qkv_b'], ap['proj_w'], ap['proj_b'],
      mp_['cc_w'], mp_['cc_b'], mp_['cp_w'], mp_['cp_b'])


def pool_centroid(x3, cls, bias):
    b, p, c = x3.shape
    n_cls = cls.shape[0]
    bb = _row_block(b, target=8)
    g = b // bb
    return pl.pallas_call(
        _pool_centroid_kernel,
        out_shape=jax.ShapeDtypeStruct((b, n_cls), jnp.float32),
        grid=(g,),
        in_specs=[pl.BlockSpec((bb, p, c), lambda i: (i, 0, 0)),
                  pl.BlockSpec((n_cls, c), lambda i: (0, 0)),
                  pl.BlockSpec((1, n_cls), lambda i: (0, 0))],
        out_specs=pl.BlockSpec((bb, n_cls), lambda i: (i, 0)),
        compiler_params=_cparams(),
    )(x3, cls, bias)


# ---------------------------------------------------------------------------
# Glue: NHWC im2col, stem, full model
# ---------------------------------------------------------------------------
def _im2col_nhwc(x, k, stride, pad):
    # x: (B, H, W, C) -> (B*Ho*Wo, k*k*C), patch ordering (ki, kj, cin).
    b, h, w, c = x.shape
    xp = jnp.pad(x, ((0, 0), (pad, pad), (pad, pad), (0, 0)))
    ho = (h + 2 * pad - k) // stride + 1
    wo = (w + 2 * pad - k) // stride + 1
    cols = []
    for i in range(k):
        for j in range(k):
            cols.append(xp[:, i:i + stride * ho:stride, j:j + stride * wo:stride, :])
    p = jnp.stack(cols, axis=3).reshape(b * ho * wo, k * k * c)
    return p, ho, wo


def stem_forward(x_nchw, sp):
    # Single NCHW->NHWC transpose; the stem stays NHWC end-to-end.
    x = x_nchw.transpose(0, 2, 3, 1)
    b = x.shape[0]
    p, ho, wo = _im2col_nhwc(x, 3, 2, 1)
    y = conv_bn(p, sp['w1'], sp['shift1'], act_gelu=True, to_lorentz=False)
    x = y.reshape(b, ho, wo, -1)
    p, ho, wo = _im2col_nhwc(x, 3, 2, 1)
    y = conv_bn(p, sp['w2'], sp['shift2'], act_gelu=True, to_lorentz=False)
    x = y.reshape(b, ho, wo, -1)
    p, ho, wo = _im2col_nhwc(x, 3, 1, 1)
    # last conv: no activation; to_lorentz (expmap0) fused into the same kernel
    y = conv_bn(p, sp['w3'], sp['shift3'], act_gelu=False, to_lorentz=True)
    return y.reshape(b, ho * wo, -1)                 # 'b c h w -> b (h w) c'


def lorentz_vit_forward(x, params):
    z = stem_forward(x, params['stem'])              # (B, P, C), on-manifold
    for bp in params['blocks']:
        z = vit_block(z, bp)                         # one pallas_call per block
    return pool_centroid(z, params['cls'], params['cls_bias'])


# ---------------------------------------------------------------------------
# Deterministic parameter initialization
# ---------------------------------------------------------------------------
def init_params(key, *, in_dim, channels, num_blocks, num_heads, patches,
                num_classes, scale=10.0):
    keys = iter(jax.random.split(key, 128))

    def nrm(shape, std=0.02):
        return jax.random.normal(next(keys), shape, jnp.float32) * std

    def conv_pack(cin, cout):
        w = nrm((cout, cin, 3, 3))
        bconv = nrm((cout,), 0.01)
        gamma, beta = jnp.ones((cout,)), jnp.zeros((cout,))
        mean, var = jnp.zeros((cout,)), jnp.ones((cout,))
        inv = gamma / jnp.sqrt(var + 1e-5)            # eval-mode BatchNorm fold
        # NHWC im2col ordering (ki, kj, cin) -> (k*k*cin, cout)
        w2d = (w.transpose(2, 3, 1, 0).reshape(9 * cin, cout)
               * inv[None, :]).astype(jnp.bfloat16)
        shift = (beta + (bconv - mean) * inv).reshape(1, -1).astype(jnp.float32)
        return w2d, shift

    c2 = channels // 2
    stem = {}
    stem['w1'], stem['shift1'] = conv_pack(in_dim, c2)
    stem['w2'], stem['shift2'] = conv_pack(c2, channels)
    stem['w3'], stem['shift3'] = conv_pack(channels, channels)

    exp_scale = float(math.exp(math.log(scale)))      # scale param = log(scale)
    head_dim = channels // num_heads
    blocks = []
    for _ in range(num_blocks):
        attn = dict(
            num_heads=num_heads,
            attn_scale=float(math.sqrt(head_dim)),    # nn.Parameter([sqrt(hd)])
            qkv_w=nrm((channels, 3 * channels)).astype(jnp.bfloat16),
            qkv_b=jnp.zeros((1, 3 * channels), jnp.float32),   # qkv_bias=False
            proj_w=nrm((channels, channels)).astype(jnp.bfloat16),
            proj_b=nrm((1, channels), 0.01),
        )
        mlp = dict(
            cc_w=nrm((channels, channels)).astype(jnp.bfloat16),
            cc_b=nrm((1, channels), 0.01),
            # cp_w stored in torch (out, in) orientation: out_pc = cp_w @ gelu(x)_pc
            cp_w=nrm((patches, patches)).astype(jnp.bfloat16),
            cp_b=nrm((patches, 1), 0.01),
        )
        blocks.append(dict(attn=attn, mlp=mlp, exp_scale=exp_scale))

    cls = jax.random.normal(next(keys), (num_classes, channels),
                            jnp.float32) / math.sqrt(channels)
    cls_bias = jnp.zeros((1, num_classes), jnp.float32)
    return dict(stem=stem, blocks=blocks, cls=cls, cls_bias=cls_bias)


# ---------------------------------------------------------------------------
if __name__ == "__main__":
    # Small but lane-dense config: C = 128 keeps every matmul output 128-wide.
    B, IN_DIM, H, W = 2, 3, 16, 16
    CHANNELS, NUM_BLOCKS, NUM_CLASSES, NUM_HEADS = 128, 2, 10, 8
    PATCHES = (H // 4) * (W // 4)

    key = jax.random.PRNGKey(0)
    kx, kp = jax.random.split(key)
    x = jax.random.normal(kx, (B, IN_DIM, H, W), jnp.float32)  # layout: NCHW
    params = init_params(kp, in_dim=IN_DIM, channels=CHANNELS,
                         num_blocks=NUM_BLOCKS, num_heads=NUM_HEADS,
                         patches=PATCHES, num_classes=NUM_CLASSES)

    fwd = jax.jit(functools.partial(lorentz_vit_forward, params=params))
    out = fwd(x)
    jax.block_until_ready(out)
    assert out.shape == (B, NUM_CLASSES), out.shape
    assert bool(jnp.all(jnp.isfinite(out)))
    print("KERNEL_OK")
</pallas_src>

<mosaic_0001>
module attributes {stable_mosaic.version = 11 : i64} {
  func.func @_conv_bn_kernel(%arg0: i32, %arg1: memref<64x27xf32, #tpu.memory_space<vmem>>, %arg2: memref<27x64xbf16, #tpu.memory_space<vmem>>, %arg3: memref<1x64xf32, #tpu.memory_space<vmem>>, %arg4: memref<64x64xf32, #tpu.memory_space<vmem>>) attributes {dimension_semantics = [#tpu.dimension_semantics<parallel>], iteration_bounds = array<i64: 2>, scalar_prefetch = 0 : i64, scratch_operands = 0 : i64, tpu.core_type = #tpu.core_type<tc>, window_params = [{transform_indices = @transform_0, window_bounds = array<i64: 64, 27>}, {pipeline_mode = #tpu.pipeline_mode<synchronous>, transform_indices = @transform_1, window_bounds = array<i64: 27, 64>}, {pipeline_mode = #tpu.pipeline_mode<synchronous>, transform_indices = @transform_2, window_bounds = array<i64: 1, 64>}, {transform_indices = @transform_3, window_bounds = array<i64: 64, 64>}]} {
    %c0 = arith.constant 0 : index
    %c0_0 = arith.constant 0 : index
    %0 = vector.load %arg1[%c0, %c0_0] : memref<64x27xf32, #tpu.memory_space<vmem>>, vector<64x27xf32>
    %1 = arith.truncf %0 : vector<64x27xf32> to vector<64x27xbf16>
    %c0_1 = arith.constant 0 : index
    %c0_2 = arith.constant 0 : index
    %2 = vector.load %arg2[%c0_1, %c0_2] : memref<27x64xbf16, #tpu.memory_space<vmem>>, vector<27x64xbf16>
    %cst = arith.constant dense<0.000000e+00> : vector<64x64xf32>
    %3 = tpu.matmul %1, %2, %cst {dimension_numbers = #tpu.dot_dimension_numbers<[1], [0], [0], [1], [0, 0, 1, 1], [], []>} : vector<64x27xbf16>, vector<27x64xbf16>, vector<64x64xf32> -> vector<64x64xf32>
    %c0_3 = arith.constant 0 : index
    %c0_4 = arith.constant 0 : index
    %4 = vector.load %arg3[%c0_3, %c0_4] : memref<1x64xf32, #tpu.memory_space<vmem>>, vector<1x64xf32>
    %5 = vector.broadcast %4 : vector<1x64xf32> to vector<64x64xf32>
    %6 = arith.addf %3, %5 : vector<64x64xf32>
    %cst_5 = arith.constant 5.000000e-01 : f32
    %7 = vector.broadcast %cst_5 : f32 to vector<64x64xf32>
    %8 = arith.mulf %7, %6 : vector<64x64xf32>
    %cst_6 = arith.constant 0.707106769 : f32
    %9 = vector.broadcast %cst_6 : f32 to vector<64x64xf32>
    %10 = arith.mulf %6, %9 : vector<64x64xf32>
    %11 = math.absf %10 : vector<64x64xf32>
    %cst_7 = arith.constant 0.327591091 : f32
    %12 = vector.broadcast %cst_7 : f32 to vector<64x64xf32>
    %13 = arith.mulf %12, %11 : vector<64x64xf32>
    %cst_8 = arith.constant 1.000000e+00 : f32
    %14 = vector.broadcast %cst_8 : f32 to vector<64x64xf32>
    %15 = arith.addf %14, %13 : vector<64x64xf32>
    %16 = tpu.reciprocal %15 {approx = true} : vector<64x64xf32> -> vector<64x64xf32>
    %17 = arith.mulf %15, %16 : vector<64x64xf32>
    %cst_9 = arith.constant 2.000000e+00 : f32
    %18 = vector.broadcast %cst_9 : f32 to vector<64x64xf32>
    %19 = arith.subf %18, %17 : vector<64x64xf32>
    %20 = arith.mulf %16, %19 : vector<64x64xf32>
    %cst_10 = arith.constant 1.06140542 : f32
    %21 = vector.broadcast %cst_10 : f32 to vector<64x64xf32>
    %22 = arith.mulf %21, %20 : vector<64x64xf32>
    %cst_11 = arith.constant -1.45315206 : f32
    %23 = vector.broadcast %cst_11 : f32 to vector<64x64xf32>
    %24 = arith.addf %22, %23 : vector<64x64xf32>
    %25 = arith.mulf %24, %20 : vector<64x64xf32>
    %cst_12 = arith.constant 1.42141378 : f32
    %26 = vector.broadcast %cst_12 : f32 to vector<64x64xf32>
    %27 = arith.addf %25, %26 : vector<64x64xf32>
    %28 = arith.mulf %27, %20 : vector<64x64xf32>
    %cst_13 = arith.constant -0.284496725 : f32
    %29 = vector.broadcast %cst_13 : f32 to vector<64x64xf32>
    %30 = arith.addf %28, %29 : vector<64x64xf32>
    %31 = arith.mulf %30, %20 : vector<64x64xf32>
    %cst_14 = arith.constant 0.254829586 : f32
    %32 = vector.broadcast %cst_14 : f32 to vector<64x64xf32>
    %33 = arith.addf %31, %32 : vector<64x64xf32>
    %34 = arith.mulf %33, %20 : vector<64x64xf32>
    %cst_15 = arith.constant 0.000000e+00 : f32
    %35 = vector.broadcast %cst_15 : f32 to vector<64x64xf32>
    %36 = arith.subf %35, %11 : vector<64x64xf32>
    %37 = arith.mulf %36, %11 : vector<64x64xf32>
    %38 = math.exp %37 : vector<64x64xf32>
    %39 = arith.mulf %34, %38 : vector<64x64xf32>
    %cst_16 = arith.constant 1.000000e+00 : f32
    %40 = vector.broadcast %cst_16 : f32 to vector<64x64xf32>
    %41 = arith.subf %40, %39 : vector<64x64xf32>
    %cst_17 = arith.constant 0.000000e+00 : f32
    %42 = vector.broadcast %cst_17 : f32 to vector<64x64xf32>
    %43 = arith.cmpf olt, %10, %42 : vector<64x64xf32>
    %cst_18 = arith.constant 0.000000e+00 : f32
    %44 = vector.broadcast %cst_18 : f32 to vector<64x64xf32>
    %45 = arith.subf %44, %41 : vector<64x64xf32>
    %46 = arith.select %43, %45, %41 : vector<64x64xi1>, vector<64x64xf32>
    %cst_19 = arith.constant 1.000000e+00 : f32
    %47 = vector.broadcast %cst_19 : f32 to vector<64x64xf32>
    %48 = arith.addf %47, %46 : vector<64x64xf32>
    %49 = arith.mulf %8, %48 : vector<64x64xf32>
    %c0_20 = arith.constant 0 : index
    %c0_21 = arith.constant 0 : index
    %50 = vector.load %arg4[%c0_20, %c0_21] : memref<64x64xf32, #tpu.memory_space<vmem>>, vector<64x64xf32>
    tpu.vector_store %arg4[%c0_20, %c0_21], %49 {strides = array<i32>} : memref<64x64xf32, #tpu.memory_space<vmem>>, vector<64x64xf32>,
    return
  }
  func.func @transform_0(%arg0: i32) -> (i32, i32) {
    %c0_i32 = arith.constant 0 : i32
    %c0_i32_0 = arith.constant 0 : i32
    return %arg0, %c0_i32 : i32, i32
  }
  func.func @transform_1(%arg0: i32) -> (i32, i32) {
    %c0_i32 = arith.constant 0 : i32
    %c0_i32_0 = arith.constant 0 : i32
    %c0_i32_1 = arith.constant 0 : i32
    return %c0_i32, %c0_i32_0 : i32, i32
  }
  func.func @transform_2(%arg0: i32) -> (i32, i32) {
    %c0_i32 = arith.constant 0 : i32
    %c0_i32_0 = arith.constant 0 : i32
    %c0_i32_1 = arith.constant 0 : i32
    return %c0_i32, %c0_i32_0 : i32, i32
  }
  func.func @transform_3(%arg0: i32) -> (i32, i32) {
    %c0_i32 = arith.constant 0 : i32
    %c0_i32_0 = arith.constant 0 : i32
    return %arg0, %c0_i32 : i32, i32
  }
}

module attributes {stable_mosaic.version = 11 : i64} {
  func.func @_conv_bn_kernel(%arg0: i32, %arg1: memref<16x576xf32, #tpu.memory_space<vmem>>, %arg2: memref<576x128xbf16, #tpu.memory_space<vmem>>, %arg3: memref<1x128xf32, #tpu.memory_space<vmem>>, %arg4: memref<16x128xf32, #tpu.memory_space<vmem>>) attributes {dimension_semantics = [#tpu.dimension_semantics<parallel>], iteration_bounds = array<i64: 2>, scalar_prefetch = 0 : i64, scratch_operands = 0 : i64, tpu.core_type = #tpu.core_type<tc>, window_params = [{transform_indices = @transform_0, window_bounds = array<i64: 16, 576>}, {pipeline_mode = #tpu.pipeline_mode<synchronous>, transform_indices = @transform_1, window_bounds = array<i64: 576, 128>}, {pipeline_mode = #tpu.pipeline_mode<synchronous>, transform_indices = @transform_2, window_bounds = array<i64: 1, 128>}, {transform_indices = @transform_3, window_bounds = array<i64: 16, 128>}]} {
    %c0 = arith.constant 0 : index
    %c0_0 = arith.constant 0 : index
    %0 = vector.load %arg1[%c0, %c0_0] : memref<16x576xf32, #tpu.memory_space<vmem>>, vector<16x576xf32>
    %1 = arith.truncf %0 : vector<16x576xf32> to vector<16x576xbf16>
    %c0_1 = arith.constant 0 : index
    %c0_2 = arith.constant 0 : index
    %2 = vector.load %arg2[%c0_1, %c0_2] : memref<576x128xbf16, #tpu.memory_space<vmem>>, vector<576x128xbf16>
    %cst = arith.constant dense<0.000000e+00> : vector<16x128xf32>
    %3 = tpu.matmul %1, %2, %cst {dimension_numbers = #tpu.dot_dimension_numbers<[1], [0], [0], [1], [0, 0, 1, 1], [], []>} : vector<16x576xbf16>, vector<576x128xbf16>, vector<16x128xf32> -> vector<16x128xf32>
    %c0_3 = arith.constant 0 : index
    %c0_4 = arith.constant 0 : index
    %4 = vector.load %arg3[%c0_3, %c0_4] : memref<1x128xf32, #tpu.memory_space<vmem>>, vector<1x128xf32>
    %5 = vector.broadcast %4 : vector<1x128xf32> to vector<16x128xf32>
    %6 = arith.addf %3, %5 : vector<16x128xf32>
    %cst_5 = arith.constant 5.000000e-01 : f32
    %7 = vector.broadcast %cst_5 : f32 to vector<16x128xf32>
    %8 = arith.mulf %7, %6 : vector<16x128xf32>
    %cst_6 = arith.constant 0.707106769 : f32
    %9 = vector.broadcast %cst_6 : f32 to vector<16x128xf32>
    %10 = arith.mulf %6, %9 : vector<16x128xf32>
    %11 = math.absf %10 : vector<16x128xf32>
    %cst_7 = arith.constant 0.327591091 : f32
    %12 = vector.broadcast %cst_7 : f32 to vector<16x128xf32>
    %13 = arith.mulf %12, %11 : vector<16x128xf32>
    %cst_8 = arith.constant 1.000000e+00 : f32
    %14 = vector.broadcast %cst_8 : f32 to vector<16x128xf32>
    %15 = arith.addf %14, %13 : vector<16x128xf32>
    %16 = tpu.reciprocal %15 {approx = true} : vector<16x128xf32> -> vector<16x128xf32>
    %17 = arith.mulf %15, %16 : vector<16x128xf32>
    %cst_9 = arith.constant 2.000000e+00 : f32
    %18 = vector.broadcast %cst_9 : f32 to vector<16x128xf32>
    %19 = arith.subf %18, %17 : vector<16x128xf32>
    %20 = arith.mulf %16, %19 : vector<16x128xf32>
    %cst_10 = arith.constant 1.06140542 : f32
    %21 = vector.broadcast %cst_10 : f32 to vector<16x128xf32>
    %22 = arith.mulf %21, %20 : vector<16x128xf32>
    %cst_11 = arith.constant -1.45315206 : f32
    %23 = vector.broadcast %cst_11 : f32 to vector<16x128xf32>
    %24 = arith.addf %22, %23 : vector<16x128xf32>
    %25 = arith.mulf %24, %20 : vector<16x128xf32>
    %cst_12 = arith.constant 1.42141378 : f32
    %26 = vector.broadcast %cst_12 : f32 to vector<16x128xf32>
    %27 = arith.addf %25, %26 : vector<16x128xf32>
    %28 = arith.mulf %27, %20 : vector<16x128xf32>
    %cst_13 = arith.constant -0.284496725 : f32
    %29 = vector.broadcast %cst_13 : f32 to vector<16x128xf32>
    %30 = arith.addf %28, %29 : vector<16x128xf32>
    %31 = arith.mulf %30, %20 : vector<16x128xf32>
    %cst_14 = arith.constant 0.254829586 : f32
    %32 = vector.broadcast %cst_14 : f32 to vector<16x128xf32>
    %33 = arith.addf %31, %32 : vector<16x128xf32>
    %34 = arith.mulf %33, %20 : vector<16x128xf32>
    %cst_15 = arith.constant 0.000000e+00 : f32
    %35 = vector.broadcast %cst_15 : f32 to vector<16x128xf32>
    %36 = arith.subf %35, %11 : vector<16x128xf32>
    %37 = arith.mulf %36, %11 : vector<16x128xf32>
    %38 = math.exp %37 : vector<16x128xf32>
    %39 = arith.mulf %34, %38 : vector<16x128xf32>
    %cst_16 = arith.constant 1.000000e+00 : f32
    %40 = vector.broadcast %cst_16 : f32 to vector<16x128xf32>
    %41 = arith.subf %40, %39 : vector<16x128xf32>
    %cst_17 = arith.constant 0.000000e+00 : f32
    %42 = vector.broadcast %cst_17 : f32 to vector<16x128xf32>
    %43 = arith.cmpf olt, %10, %42 : vector<16x128xf32>
    %cst_18 = arith.constant 0.000000e+00 : f32
    %44 = vector.broadcast %cst_18 : f32 to vector<16x128xf32>
    %45 = arith.subf %44, %41 : vector<16x128xf32>
    %46 = arith.select %43, %45, %41 : vector<16x128xi1>, vector<16x128xf32>
    %cst_19 = arith.constant 1.000000e+00 : f32
    %47 = vector.broadcast %cst_19 : f32 to vector<16x128xf32>
    %48 = arith.addf %47, %46 : vector<16x128xf32>
    %49 = arith.mulf %8, %48 : vector<16x128xf32>
    %c0_20 = arith.constant 0 : index
    %c0_21 = arith.constant 0 : index
    %50 = vector.load %arg4[%c0_20, %c0_21] : memref<16x128xf32, #tpu.memory_space<vmem>>, vector<16x128xf32>
    tpu.vector_store %arg4[%c0_20, %c0_21], %49 {strides = array<i32>} : memref<16x128xf32, #tpu.memory_space<vmem>>, vector<16x128xf32>,
    return
  }
  func.func @transform_0(%arg0: i32) -> (i32, i32) {
    %c0_i32 = arith.constant 0 : i32
    %c0_i32_0 = arith.constant 0 : i32
    return %arg0, %c0_i32 : i32, i32
  }
  func.func @transform_1(%arg0: i32) -> (i32, i32) {
    %c0_i32 = arith.constant 0 : i32
    %c0_i32_0 = arith.constant 0 : i32
    %c0_i32_1 = arith.constant 0 : i32
    return %c0_i32, %c0_i32_0 : i32, i32
  }
  func.func @transform_2(%arg0: i32) -> (i32, i32) {
    %c0_i32 = arith.constant 0 : i32
    %c0_i32_0 = arith.constant 0 : i32
    %c0_i32_1 = arith.constant 0 : i32
    return %c0_i32, %c0_i32_0 : i32, i32
  }
  func.func @transform_3(%arg0: i32) -> (i32, i32) {
    %c0_i32 = arith.constant 0 : i32
    %c0_i32_0 = arith.constant 0 : i32
    return %arg0, %c0_i32 : i32, i32
  }
}

module attributes {stable_mosaic.version = 11 : i64} {
  func.func @_conv_bn_kernel(%arg0: i32, %arg1: memref<16x1152xf32, #tpu.memory_space<vmem>>, %arg2: memref<1152x128xbf16, #tpu.memory_space<vmem>>, %arg3: memref<1x128xf32, #tpu.memory_space<vmem>>, %arg4: memref<16x128xf32, #tpu.memory_space<vmem>>) attributes {dimension_semantics = [#tpu.dimension_semantics<parallel>], iteration_bounds = array<i64: 2>, scalar_prefetch = 0 : i64, scratch_operands = 0 : i64, tpu.core_type = #tpu.core_type<tc>, window_params = [{transform_indices = @transform_0, window_bounds = array<i64: 16, 1152>}, {pipeline_mode = #tpu.pipeline_mode<synchronous>, transform_indices = @transform_1, window_bounds = array<i64: 1152, 128>}, {pipeline_mode = #tpu.pipeline_mode<synchronous>, transform_indices = @transform_2, window_bounds = array<i64: 1, 128>}, {transform_indices = @transform_3, window_bounds = array<i64: 16, 128>}]} {
    %c0 = arith.constant 0 : index
    %c0_0 = arith.constant 0 : index
    %0 = vector.load %arg1[%c0, %c0_0] : memref<16x1152xf32, #tpu.memory_space<vmem>>, vector<16x1152xf32>
    %1 = arith.truncf %0 : vector<16x1152xf32> to vector<16x1152xbf16>
    %c0_1 = arith.constant 0 : index
    %c0_2 = arith.constant 0 : index
    %2 = vector.load %arg2[%c0_1, %c0_2] : memref<1152x128xbf16, #tpu.memory_space<vmem>>, vector<1152x128xbf16>
    %cst = arith.constant dense<0.000000e+00> : vector<16x128xf32>
    %3 = tpu.matmul %1, %2, %cst {dimension_numbers = #tpu.dot_dimension_numbers<[1], [0], [0], [1], [0, 0, 1, 1], [], []>} : vector<16x1152xbf16>, vector<1152x128xbf16>, vector<16x128xf32> -> vector<16x128xf32>
    %c0_3 = arith.constant 0 : index
    %c0_4 = arith.constant 0 : index
    %4 = vector.load %arg3[%c0_3, %c0_4] : memref<1x128xf32, #tpu.memory_space<vmem>>, vector<1x128xf32>
    %5 = vector.broadcast %4 : vector<1x128xf32> to vector<16x128xf32>
    %6 = arith.addf %3, %5 : vector<16x128xf32>
    %7 = vector.extract_strided_slice %6 {offsets = [0, 0], sizes = [16, 1], strides = [1, 1]} : vector<16x128xf32> to vector<16x1xf32>
    %8 = arith.mulf %6, %6 : vector<16x128xf32>
    %cst_5 = arith.constant dense<0.000000e+00> : vector<16xf32>
    %9 = vector.multi_reduction <add>, %8, %cst_5 [1] : vector<16x128xf32> to vector<16xf32>
    %10 = vector.shape_cast %9 : vector<16xf32> to vector<16x1xf32>
    %cst_6 = arith.constant 2.000000e+00 : f32
    %11 = vector.broadcast %cst_6 : f32 to vector<16x1xf32>
    %12 = arith.mulf %11, %7 : vector<16x1xf32>
    %13 = arith.mulf %12, %7 : vector<16x1xf32>
    %14 = arith.subf %10, %13 : vector<16x1xf32>
    %cst_7 = arith.constant 9.99999993E-9 : f32
    %15 = vector.broadcast %cst_7 : f32 to vector<16x1xf32>
    %16 = arith.maximumf %14, %15 : vector<16x1xf32>
    %17 = math.sqrt %16 : vector<16x1xf32>
    %cst_8 = arith.constant 0.166666672 : f32
    %18 = vector.broadcast %cst_8 : f32 to vector<16x1xf32>
    %19 = arith.mulf %16, %18 : vector<16x1xf32>
    %cst_9 = arith.constant 1.000000e+00 : f32
    %20 = vector.broadcast %cst_9 : f32 to vector<16x1xf32>
    %21 = arith.addf %20, %19 : vector<16x1xf32>
    %22 = arith.mulf %16, %16 : vector<16x1xf32>
    %cst_10 = arith.constant 0.00833333377 : f32
    %23 = vector.broadcast %cst_10 : f32 to vector<16x1xf32>
    %24 = arith.mulf %22, %23 : vector<16x1xf32>
    %25 = arith.addf %21, %24 : vector<16x1xf32>
    %26 = math.exp %17 : vector<16x1xf32>
    %cst_11 = arith.constant 0.000000e+00 : f32
    %27 = vector.broadcast %cst_11 : f32 to vector<16x1xf32>
    %28 = arith.subf %27, %17 : vector<16x1xf32>
    %29 = math.exp %28 : vector<16x1xf32>
    %30 = arith.subf %26, %29 : vector<16x1xf32>
    %cst_12 = arith.constant 5.000000e-01 : f32
    %31 = vector.broadcast %cst_12 : f32 to vector<16x1xf32>
    %32 = arith.mulf %30, %31 : vector<16x1xf32>
    %33 = arith.divf %32, %17 : vector<16x1xf32>
    %cst_13 = arith.constant 1.000000e-01 : f32
    %34 = vector.broadcast %cst_13 : f32 to vector<16x1xf32>
    %35 = arith.cmpf olt, %17, %34 : vector<16x1xf32>
    %36 = arith.select %35, %25, %33 : vector<16x1xi1>, vector<16x1xf32>
    %37 = arith.mulf %36, %36 : vector<16x1xf32>
    %38 = arith.mulf %7, %7 : vector<16x1xf32>
    %39 = arith.subf %10, %38 : vector<16x1xf32>
    %40 = arith.mulf %37, %39 : vector<16x1xf32>
    %cst_14 = arith.constant 1.000000e+00 : f32
    %41 = vector.broadcast %cst_14 : f32 to vector<16x1xf32>
    %42 = arith.addf %41, %40 : vector<16x1xf32>
    %43 = math.sqrt %42 : vector<16x1xf32>
    %44 = tpu.iota {dimensions = array<i32: 1>} : vector<16x128xi32>
    %c0_i32 = arith.constant 0 : i32
    %45 = vector.broadcast %c0_i32 : i32 to vector<16x128xi32>
    %46 = arith.cmpi eq, %44, %45 : vector<16x128xi32>
    %47 = vector.broadcast %36 : vector<16x1xf32> to vector<16x128xf32>
    %48 = arith.mulf %47, %6 : vector<16x128xf32>
    %49 = vector.shape_cast %43 : vector<16x1xf32> to vector<16x1xf32>
    %50 = vector.broadcast %49 : vector<16x1xf32> to vector<16x128xf32>
    %51 = arith.select %46, %50, %48 : vector<16x128xi1>, vector<16x128xf32>
    %c0_15 = arith.constant 0 : index
    %c0_16 = arith.constant 0 : index
    %52 = vector.load %arg4[%c0_15, %c0_16] : memref<16x128xf32, #tpu.memory_space<vmem>>, vector<16x128xf32>
    tpu.vector_store %arg4[%c0_15, %c0_16], %51 {strides = array<i32>} : memref<16x128xf32, #tpu.memory_space<vmem>>, vector<16x128xf32>,
    return
  }
  func.func @transform_0(%arg0: i32) -> (i32, i32) {
    %c0_i32 = arith.constant 0 : i32
    %c0_i32_0 = arith.constant 0 : i32
    return %arg0, %c0_i32 : i32, i32
  }
  func.func @transform_1(%arg0: i32) -> (i32, i32) {
    %c0_i32 = arith.constant 0 : i32
    %c0_i32_0 = arith.constant 0 : i32
    %c0_i32_1 = arith.constant 0 : i32
    return %c0_i32, %c0_i32_0 : i32, i32
  }
  func.func @transform_2(%arg0: i32) -> (i32, i32) {
    %c0_i32 = arith.constant 0 : i32
    %c0_i32_0 = arith.constant 0 : i32
    %c0_i32_1 = arith.constant 0 : i32
    return %c0_i32, %c0_i32_0 : i32, i32
  }
  func.func @transform_3(%arg0: i32) -> (i32, i32) {
    %c0_i32 = arith.constant 0 : i32
    %c0_i32_0 = arith.constant 0 : i32
    return %arg0, %c0_i32 : i32, i32
  }
}

module attributes {stable_mosaic.version = 11 : i64} {
  func.func @_pool_centroid_kernel(%arg0: i32, %arg1: memref<2x16x128xf32, #tpu.memory_space<vmem>>, %arg2: memref<10x128xf32, #tpu.memory_space<vmem>>, %arg3: memref<1x10xf32, #tpu.memory_space<vmem>>, %arg4: memref<2x10xf32, #tpu.memory_space<vmem>>) attributes {dimension_semantics = [#tpu.dimension_semantics<parallel>], iteration_bounds = array<i64: 1>, scalar_prefetch = 0 : i64, scratch_operands = 0 : i64, tpu.core_type = #tpu.core_type<tc>, window_params = [{transform_indices = @transform_0, window_bounds = array<i64: 2, 16, 128>}, {pipeline_mode = #tpu.pipeline_mode<synchronous>, transform_indices = @transform_1, window_bounds = array<i64: 10, 128>}, {pipeline_mode = #tpu.pipeline_mode<synchronous>, transform_indices = @transform_2, window_bounds = array<i64: 1, 10>}, {transform_indices = @transform_3, window_bounds = array<i64: 2, 10>}]} {
    %c0 = arith.constant 0 : index
    %c0_0 = arith.constant 0 : index
    %c0_1 = arith.constant 0 : index
    %0 = vector.load %arg1[%c0, %c0_0, %c0_1] : memref<2x16x128xf32, #tpu.memory_space<vmem>>, vector<2x16x128xf32>
    %cst = arith.constant dense<0.000000e+00> : vector<2x128xf32>
    %1 = vector.multi_reduction <add>, %0, %cst [1] : vector<2x16x128xf32> to vector<2x128xf32>
    %cst_2 = arith.constant 1.600000e+01 : f32
    %2 = vector.broadcast %cst_2 : f32 to vector<2x128xf32>
    %3 = arith.divf %1, %2 : vector<2x128xf32>
    %4 = tpu.iota {dimensions = array<i32: 1>} : vector<2x128xi32>
    %c0_i32 = arith.constant 0 : i32
    %5 = vector.broadcast %c0_i32 : i32 to vector<2x128xi32>
    %6 = arith.cmpi eq, %4, %5 : vector<2x128xi32>
    %cst_3 = arith.constant 0.000000e+00 : f32
    %7 = vector.broadcast %cst_3 : f32 to vector<2x128xf32>
    %8 = arith.subf %7, %3 : vector<2x128xf32>
    %9 = arith.select %6, %8, %3 : vector<2x128xi1>, vector<2x128xf32>
    %c0_4 = arith.constant 0 : index
    %c0_5 = arith.constant 0 : index
    %10 = vector.load %arg2[%c0_4, %c0_5] : memref<10x128xf32, #tpu.memory_space<vmem>>, vector<10x128xf32>
    %cst_6 = arith.constant dense<0.000000e+00> : vector<2x10xf32>
    %11 = tpu.matmul %9, %10, %cst_6 {dimension_numbers = #tpu.dot_dimension_numbers<[1], [1], [0], [0], [0, 0, 1, 0], [], []>} : vector<2x128xf32>, vector<10x128xf32>, vector<2x10xf32> -> vector<2x10xf32>
    %cst_7 = arith.constant 2.000000e+00 : f32
    %12 = vector.broadcast %cst_7 : f32 to vector<2x10xf32>
    %13 = arith.mulf %12, %11 : vector<2x10xf32>
    %cst_8 = arith.constant 2.000000e+00 : f32
    %14 = vector.broadcast %cst_8 : f32 to vector<2x10xf32>
    %15 = arith.addf %14, %13 : vector<2x10xf32>
    %c0_9 = arith.constant 0 : index
    %c0_10 = arith.constant 0 : index
    %16 = vector.load %arg3[%c0_9, %c0_10] : memref<1x10xf32, #tpu.memory_space<vmem>>, vector<1x10xf32>
    %17 = vector.broadcast %16 : vector<1x10xf32> to vector<2x10xf32>
    %18 = arith.addf %15, %17 : vector<2x10xf32>
    %c0_11 = arith.constant 0 : index
    %c0_12 = arith.constant 0 : index
    %19 = vector.load %arg4[%c0_11, %c0_12] : memref<2x10xf32, #tpu.memory_space<vmem>>, vector<2x10xf32>
    tpu.vector_store %arg4[%c0_11, %c0_12], %18 {strides = array<i32>} : memref<2x10xf32, #tpu.memory_space<vmem>>, vector<2x10xf32>,
    return
  }
  func.func @transform_0(%arg0: i32) -> (i32, i32, i32) {
    %c0_i32 = arith.constant 0 : i32
    %c0_i32_0 = arith.constant 0 : i32
    %c0_i32_1 = arith.constant 0 : i32
    return %arg0, %c0_i32, %c0_i32_0 : i32, i32, i32
  }
  func.func @transform_1(%arg0: i32) -> (i32, i32) {
    %c0_i32 = arith.constant 0 : i32
    %c0_i32_0 = arith.constant 0 : i32
    %c0_i32_1 = arith.constant 0 : i32
    return %c0_i32, %c0_i32_0 : i32, i32
  }
  func.func @transform_2(%arg0: i32) -> (i32, i32) {
    %c0_i32 = arith.constant 0 : i32
    %c0_i32_0 = arith.constant 0 : i32
    %c0_i32_1 = arith.constant 0 : i32
    return %c0_i32, %c0_i32_0 : i32, i32
  }
  func.func @transform_3(%arg0: i32) -> (i32, i32) {
    %c0_i32 = arith.constant 0 : i32
    %c0_i32_0 = arith.constant 0 : i32
    return %arg0, %c0_i32 : i32, i32
  }
}

module attributes {stable_mosaic.version = 11 : i64} {
  func.func @_vit_block_kernel(%arg0: i32, %arg1: memref<1x16x128xf32, #tpu.memory_space<vmem>>, %arg2: memref<128x384xbf16, #tpu.memory_space<vmem>>, %arg3: memref<1x384xf32, #tpu.memory_space<vmem>>, %arg4: memref<128x128xbf16, #tpu.memory_space<vmem>>, %arg5: memref<1x128xf32, #tpu.memory_space<vmem>>, %arg6: memref<128x128xbf16, #tpu.memory_space<vmem>>, %arg7: memref<1x128xf32, #tpu.memory_space<vmem>>, %arg8: memref<16x16xbf16, #tpu.memory_space<vmem>>, %arg9: memref<16x1xf32, #tpu.memory_space<vmem>>, %arg10: memref<1x16x128xf32, #tpu.memory_space<vmem>>) attributes {dimension_semantics = [#tpu.dimension_semantics<parallel>], iteration_bounds = array<i64: 2>, scalar_prefetch = 0 : i64, scratch_operands = 0 : i64, tpu.core_type = #tpu.core_type<tc>, window_params = [{transform_indices = @transform_0, window_bounds = array<i64: 1, 16, 128>}, {pipeline_mode = #tpu.pipeline_mode<synchronous>, transform_indices = @transform_1, window_bounds = array<i64: 128, 384>}, {pipeline_mode = #tpu.pipeline_mode<synchronous>, transform_indices = @transform_2, window_bounds = array<i64: 1, 384>}, {pipeline_mode = #tpu.pipeline_mode<synchronous>, transform_indices = @transform_3, window_bounds = array<i64: 128, 128>}, {pipeline_mode = #tpu.pipeline_mode<synchronous>, transform_indices = @transform_4, window_bounds = array<i64: 1, 128>}, {pipeline_mode = #tpu.pipeline_mode<synchronous>, transform_indices = @transform_5, window_bounds = array<i64: 128, 128>}, {pipeline_mode = #tpu.pipeline_mode<synchronous>, transform_indices = @transform_6, window_bounds = array<i64: 1, 128>}, {pipeline_mode = #tpu.pipeline_mode<synchronous>, transform_indices = @transform_7, window_bounds = array<i64: 16, 16>}, {pipeline_mode = #tpu.pipeline_mode<synchronous>, transform_indices = @transform_8, window_bounds = array<i64: 16, 1>}, {transform_indices = @transform_9, window_bounds = array<i64: 1, 16, 128>}]} {
    %c0 = arith.constant 0 : index
    %c0_0 = arith.constant 0 : index
    %c0_1 = arith.constant 0 : index
    %0 = vector.load %arg1[%c0, %c0_0, %c0_1] : memref<1x16x128xf32, #tpu.memory_space<vmem>>, vector<1x16x128xf32>
    %1 = vector.shape_cast %0 : vector<1x16x128xf32> to vector<16x128xf32>
    %2 = arith.truncf %1 : vector<16x128xf32> to vector<16x128xbf16>
    %c0_2 = arith.constant 0 : index
    %c0_3 = arith.constant 0 : index
    %3 = vector.load %arg2[%c0_2, %c0_3] : memref<128x384xbf16, #tpu.memory_space<vmem>>, vector<128x384xbf16>
    %cst = arith.constant dense<0.000000e+00> : vector<16x384xf32>
    %4 = tpu.matmul %2, %3, %cst {dimension_numbers = #tpu.dot_dimension_numbers<[1], [0], [0], [1], [0, 0, 1, 1], [], []>} : vector<16x128xbf16>, vector<128x384xbf16>, vector<16x384xf32> -> vector<16x384xf32>
    %c0_4 = arith.constant 0 : index
    %c0_5 = arith.constant 0 : index
    %5 = vector.load %arg3[%c0_4, %c0_5] : memref<1x384xf32, #tpu.memory_space<vmem>>, vector<1x384xf32>
    %6 = vector.broadcast %5 : vector<1x384xf32> to vector<16x384xf32>
    %7 = arith.addf %4, %6 : vector<16x384xf32>
    %8 = vector.extract_strided_slice %7 {offsets = [0, 0], sizes = [16, 1], strides = [1, 1]} : vector<16x384xf32> to vector<16x1xf32>
    %9 = arith.negf %8 : vector<16x1xf32>
    %10 = math.exp %9 : vector<16x1xf32>
    %cst_6 = arith.constant 1.000000e+00 : f32
    %11 = vector.broadcast %cst_6 : f32 to vector<16x1xf32>
    %12 = arith.addf %11, %10 : vector<16x1xf32>
    %13 = arith.divf %11, %12 : vector<16x1xf32>
    %cst_7 = arith.constant 1.000000e+01 : f32
    %14 = vector.broadcast %cst_7 : f32 to vector<16x1xf32>
    %15 = arith.mulf %13, %14 : vector<16x1xf32>
    %cst_8 = arith.constant 1.100000e+00 : f32
    %16 = vector.broadcast %cst_8 : f32 to vector<16x1xf32>
    %17 = arith.addf %15, %16 : vector<16x1xf32>
    %18 = arith.mulf %7, %7 : vector<16x384xf32>
    %cst_9 = arith.constant dense<0.000000e+00> : vector<16xf32>
    %19 = vector.multi_reduction <add>, %18, %cst_9 [1] : vector<16x384xf32> to vector<16xf32>
    %20 = vector.shape_cast %19 : vector<16xf32> to vector<16x1xf32>
    %21 = arith.mulf %8, %8 : vector<16x1xf32>
    %22 = arith.subf %20, %21 : vector<16x1xf32>
    %cst_10 = arith.constant 9.99999993E-9 : f32
    %23 = vector.broadcast %cst_10 : f32 to vector<16x1xf32>
    %24 = arith.maximumf %22, %23 : vector<16x1xf32>
    %25 = arith.mulf %17, %17 : vector<16x1xf32>
    %cst_11 = arith.constant 1.000000e+00 : f32
    %26 = vector.broadcast %cst_11 : f32 to vector<16x1xf32>
    %27 = arith.subf %25, %26 : vector<16x1xf32>
    %28 = math.sqrt %27 : vector<16x1xf32>
    %29 = math.rsqrt %24 : vector<16x1xf32>
    %30 = arith.mulf %28, %29 : vector<16x1xf32>
    %31 = tpu.iota {dimensions = array<i32: 1>} : vector<16x384xi32>
    %c0_i32 = arith.constant 0 : i32
    %32 = vector.broadcast %c0_i32 : i32 to vector<16x384xi32>
    %33 = arith.cmpi eq, %31, %32 : vector<16x384xi32>
    %34 = vector.broadcast %30 : vector<16x1xf32> to vector<16x384xf32>
    %35 = arith.mulf %7, %34 : vector<16x384xf32>
    %36 = vector.shape_cast %17 : vector<16x1xf32> to vector<16x1xf32>
    %37 = vector.broadcast %36 : vector<16x1xf32> to vector<16x384xf32>
    %38 = arith.select %33, %37, %35 : vector<16x384xi1>, vector<16x384xf32>
    %39 = vector.extract_strided_slice %38 {offsets = [0, 0], sizes = [16, 128], strides = [1, 1]} : vector<16x384xf32> to vector<16x128xf32>
    %40 = vector.extract_strided_slice %38 {offsets = [0, 128], sizes = [16, 128], strides = [1, 1]} : vector<16x384xf32> to vector<16x128xf32>
    %41 = vector.extract_strided_slice %38 {offsets = [0, 256], sizes = [16, 128], strides = [1, 1]} : vector<16x384xf32> to vector<16x128xf32>
    %cst_12 = arith.constant 0.000000e+00 : f32
    %42 = vector.broadcast %cst_12 : f32 to vector<16x128xf32>
    %43 = vector.extract_strided_slice %39 {offsets = [0, 0], sizes = [16, 16], strides = [1, 1]} : vector<16x128xf32> to vector<16x16xf32>
    %44 = arith.truncf %43 : vector<16x16xf32> to vector<16x16xbf16>
    %45 = vector.extract_strided_slice %40 {offsets = [0, 0], sizes = [16, 16], strides = [1, 1]} : vector<16x128xf32> to vector<16x16xf32>
    %46 = arith.truncf %45 : vector<16x16xf32> to vector<16x16xbf16>
    %cst_13 = arith.constant dense<0.000000e+00> : vector<16x16xf32>
    %47 = tpu.matmul %44, %46, %cst_13 {dimension_numbers = #tpu.dot_dimension_numbers<[1], [1], [0], [0], [0, 0, 1, 0], [], []>} : vector<16x16xbf16>, vector<16x16xbf16>, vector<16x16xf32> -> vector<16x16xf32>
    %cst_14 = arith.constant 4.000000e+00 : f32
    %48 = vector.broadcast %cst_14 : f32 to vector<16x16xf32>
    %49 = arith.mulf %47, %48 : vector<16x16xf32>
    %cst_15 = arith.constant dense<0xFF800000> : vector<16xf32>
    %50 = vector.multi_reduction <maximumf>, %49, %cst_15 [1] : vector<16x16xf32> to vector<16xf32>
    %51 = vector.shape_cast %50 : vector<16xf32> to vector<16x1xf32>
    %52 = vector.broadcast %51 : vector<16x1xf32> to vector<16x16xf32>
    %53 = arith.subf %49, %52 : vector<16x16xf32>
    %54 = math.exp %53 : vector<16x16xf32>
    %cst_16 = arith.constant dense<0.000000e+00> : vector<16xf32>
    %55 = vector.multi_reduction <add>, %54, %cst_16 [1] : vector<16x16xf32> to vector<16xf32>
    %56 = vector.shape_cast %55 : vector<16xf32> to vector<16x1xf32>
    %57 = tpu.reciprocal %56 {approx = true} : vector<16x1xf32> -> vector<16x1xf32>
    %58 = arith.mulf %56, %57 : vector<16x1xf32>
    %cst_17 = arith.constant 2.000000e+00 : f32
    %59 = vector.broadcast %cst_17 : f32 to vector<16x1xf32>
    %60 = arith.subf %59, %58 : vector<16x1xf32>
    %61 = arith.mulf %57, %60 : vector<16x1xf32>
    %62 = vector.broadcast %61 : vector<16x1xf32> to vector<16x16xf32>
    %63 = arith.mulf %54, %62 : vector<16x16xf32>
    %64 = arith.truncf %63 : vector<16x16xf32> to vector<16x16xbf16>
    %65 = vector.extract_strided_slice %41 {offsets = [0, 0], sizes = [16, 16], strides = [1, 1]} : vector<16x128xf32> to vector<16x16xf32>
    %66 = arith.truncf %65 : vector<16x16xf32> to vector<16x16xbf16>
    %cst_18 = arith.constant dense<0.000000e+00> : vector<16x16xf32>
    %67 = tpu.matmul %64, %66, %cst_18 {dimension_numbers = #tpu.dot_dimension_numbers<[1], [0], [0], [1], [0, 0, 1, 1], [], []>} : vector<16x16xbf16>, vector<16x16xbf16>, vector<16x16xf32> -> vector<16x16xf32>
    %68 = arith.truncf %67 : vector<16x16xf32> to vector<16x16xbf16>
    %c0_19 = arith.constant 0 : index
    %c0_20 = arith.constant 0 : index
    %69 = vector.load %arg4[%c0_19, %c0_20] : memref<128x128xbf16, #tpu.memory_space<vmem>>, vector<16x128xbf16>
    %cst_21 = arith.constant dense<0.000000e+00> : vector<16x128xf32>
    %70 = tpu.matmul %68, %69, %cst_21 {dimension_numbers = #tpu.dot_dimension_numbers<[1], [0], [0], [1], [0, 0, 1, 1], [], []>} : vector<16x16xbf16>, vector<16x128xbf16>, vector<16x128xf32> -> vector<16x128xf32>
    %71 = arith.addf %42, %70 : vector<16x128xf32>
    %72 = vector.extract_strided_slice %39 {offsets = [0, 16], sizes = [16, 16], strides = [1, 1]} : vector<16x128xf32> to vector<16x16xf32>
    %73 = arith.truncf %72 : vector<16x16xf32> to vector<16x16xbf16>
    %74 = vector.extract_strided_slice %40 {offsets = [0, 16], sizes = [16, 16], strides = [1, 1]} : vector<16x128xf32> to vector<16x16xf32>
    %75 = arith.truncf %74 : vector<16x16xf32> to vector<16x16xbf16>
    %cst_22 = arith.constant dense<0.000000e+00> : vector<16x16xf32>
    %76 = tpu.matmul %73, %75, %cst_22 {dimension_numbers = #tpu.dot_dimension_numbers<[1], [1], [0], [0], [0, 0, 1, 0], [], []>} : vector<16x16xbf16>, vector<16x16xbf16>, vector<16x16xf32> -> vector<16x16xf32>
    %cst_23 = arith.constant 4.000000e+00 : f32
    %77 = vector.broadcast %cst_23 : f32 to vector<16x16xf32>
    %78 = arith.mulf %76, %77 : vector<16x16xf32>
    %cst_24 = arith.constant dense<0xFF800000> : vector<16xf32>
    %79 = vector.multi_reduction <maximumf>, %78, %cst_24 [1] : vector<16x16xf32> to vector<16xf32>
    %80 = vector.shape_cast %79 : vector<16xf32> to vector<16x1xf32>
    %81 = vector.broadcast %80 : vector<16x1xf32> to vector<16x16xf32>
    %82 = arith.subf %78, %81 : vector<16x16xf32>
    %83 = math.exp %82 : vector<16x16xf32>
    %cst_25 = arith.constant dense<0.000000e+00> : vector<16xf32>
    %84 = vector.multi_reduction <add>, %83, %cst_25 [1] : vector<16x16xf32> to vector<16xf32>
    %85 = vector.shape_cast %84 : vector<16xf32> to vector<16x1xf32>
    %86 = tpu.reciprocal %85 {approx = true} : vector<16x1xf32> -> vector<16x1xf32>
    %87 = arith.mulf %85, %86 : vector<16x1xf32>
    %cst_26 = arith.constant 2.000000e+00 : f32
    %88 = vector.broadcast %cst_26 : f32 to vector<16x1xf32>
    %89 = arith.subf %88, %87 : vector<16x1xf32>
    %90 = arith.mulf %86, %89 : vector<16x1xf32>
    %91 = vector.broadcast %90 : vector<16x1xf32> to vector<16x16xf32>
    %92 = arith.mulf %83, %91 : vector<16x16xf32>
    %93 = arith.truncf %92 : vector<16x16xf32> to vector<16x16xbf16>
    %94 = vector.extract_strided_slice %41 {offsets = [0, 16], sizes = [16, 16], strides = [1, 1]} : vector<16x128xf32> to vector<16x16xf32>
    %95 = arith.truncf %94 : vector<16x16xf32> to vector<16x16xbf16>
    %cst_27 = arith.constant dense<0.000000e+00> : vector<16x16xf32>
    %96 = tpu.matmul %93, %95, %cst_27 {dimension_numbers = #tpu.dot_dimension_numbers<[1], [0], [0], [1], [0, 0, 1, 1], [], []>} : vector<16x16xbf16>, vector<16x16xbf16>, vector<16x16xf32> -> vector<16x16xf32>
    %97 = arith.truncf %96 : vector<16x16xf32> to vector<16x16xbf16>
    %c16 = arith.constant 16 : index
    %c0_28 = arith.constant 0 : index
    %98 = vector.load %arg4[%c16, %c0_28] : memref<128x128xbf16, #tpu.memory_space<vmem>>, vector<16x128xbf16>
    %cst_29 = arith.constant dense<0.000000e+00> : vector<16x128xf32>
    %99 = tpu.matmul %97, %98, %cst_29 {dimension_numbers = #tpu.dot_dimension_numbers<[1], [0], [0], [1], [0, 0, 1, 1], [], []>} : vector<16x16xbf16>, vector<16x128xbf16>, vector<16x128xf32> -> vector<16x128xf32>
    %100 = arith.addf %71, %99 : vector<16x128xf32>
    %101 = vector.extract_strided_slice %39 {offsets = [0, 32], sizes = [16, 16], strides = [1, 1]} : vector<16x128xf32> to vector<16x16xf32>
    %102 = arith.truncf %101 : vector<16x16xf32> to vector<16x16xbf16>
    %103 = vector.extract_strided_slice %40 {offsets = [0, 32], sizes = [16, 16], strides = [1, 1]} : vector<16x128xf32> to vector<16x16xf32>
    %104 = arith.truncf %103 : vector<16x16xf32> to vector<16x16xbf16>
    %cst_30 = arith.constant dense<0.000000e+00> : vector<16x16xf32>
    %105 = tpu.matmul %102, %104, %cst_30 {dimension_numbers = #tpu.dot_dimension_numbers<[1], [1], [0], [0], [0, 0, 1, 0], [], []>} : vector<16x16xbf16>, vector<16x16xbf16>, vector<16x16xf32> -> vector<16x16xf32>
    %cst_31 = arith.constant 4.000000e+00 : f32
    %106 = vector.broadcast %cst_31 : f32 to vector<16x16xf32>
    %107 = arith.mulf %105, %106 : vector<16x16xf32>
    %cst_32 = arith.constant dense<0xFF800000> : vector<16xf32>
    %108 = vector.multi_reduction <maximumf>, %107, %cst_32 [1] : vector<16x16xf32> to vector<16xf32>
    %109 = vector.shape_cast %108 : vector<16xf32> to vector<16x1xf32>
    %110 = vector.broadcast %109 : vector<16x1xf32> to vector<16x16xf32>
    %111 = arith.subf %107, %110 : vector<16x16xf32>
    %112 = math.exp %111 : vector<16x16xf32>
    %cst_33 = arith.constant dense<0.000000e+00> : vector<16xf32>
    %113 = vector.multi_reduction <add>, %112, %cst_33 [1] : vector<16x16xf32> to vector<16xf32>
    %114 = vector.shape_cast %113 : vector<16xf32> to vector<16x1xf32>
    %115 = tpu.reciprocal %114 {approx = true} : vector<16x1xf32> -> vector<16x1xf32>
    %116 = arith.mulf %114, %115 : vector<16x1xf32>
    %cst_34 = arith.constant 2.000000e+00 : f32
    %117 = vector.broadcast %cst_34 : f32 to vector<16x1xf32>
    %118 = arith.subf %117, %116 : vector<16x1xf32>
    %119 = arith.mulf %115, %118 : vector<16x1xf32>
    %120 = vector.broadcast %119 : vector<16x1xf32> to vector<16x16xf32>
    %121 = arith.mulf %112, %120 : vector<16x16xf32>
    %122 = arith.truncf %121 : vector<16x16xf32> to vector<16x16xbf16>
    %123 = vector.extract_strided_slice %41 {offsets = [0, 32], sizes = [16, 16], strides = [1, 1]} : vector<16x128xf32> to vector<16x16xf32>
    %124 = arith.truncf %123 : vector<16x16xf32> to vector<16x16xbf16>
    %cst_35 = arith.constant dense<0.000000e+00> : vector<16x16xf32>
    %125 = tpu.matmul %122, %124, %cst_35 {dimension_numbers = #tpu.dot_dimension_numbers<[1], [0], [0], [1], [0, 0, 1, 1], [], []>} : vector<16x16xbf16>, vector<16x16xbf16>, vector<16x16xf32> -> vector<16x16xf32>
    %126 = arith.truncf %125 : vector<16x16xf32> to vector<16x16xbf16>
    %c32 = arith.constant 32 : index
    %c0_36 = arith.constant 0 : index
    %127 = vector.load %arg4[%c32, %c0_36] : memref<128x128xbf16, #tpu.memory_space<vmem>>, vector<16x128xbf16>
    %cst_37 = arith.constant dense<0.000000e+00> : vector<16x128xf32>
    %128 = tpu.matmul %126, %127, %cst_37 {dimension_numbers = #tpu.dot_dimension_numbers<[1], [0], [0], [1], [0, 0, 1, 1], [], []>} : vector<16x16xbf16>, vector<16x128xbf16>, vector<16x128xf32> -> vector<16x128xf32>
    %129 = arith.addf %100, %128 : vector<16x128xf32>
    %130 = vector.extract_strided_slice %39 {offsets = [0, 48], sizes = [16, 16], strides = [1, 1]} : vector<16x128xf32> to vector<16x16xf32>
    %131 = arith.truncf %130 : vector<16x16xf32> to vector<16x16xbf16>
    %132 = vector.extract_strided_slice %40 {offsets = [0, 48], sizes = [16, 16], strides = [1, 1]} : vector<16x128xf32> to vector<16x16xf32>
    %133 = arith.truncf %132 : vector<16x16xf32> to vector<16x16xbf16>
    %cst_38 = arith.constant dense<0.000000e+00> : vector<16x16xf32>
    %134 = tpu.matmul %131, %133, %cst_38 {dimension_numbers = #tpu.dot_dimension_numbers<[1], [1], [0], [0], [0, 0, 1, 0], [], []>} : vector<16x16xbf16>, vector<16x16xbf16>, vector<16x16xf32> -> vector<16x16xf32>
    %cst_39 = arith.constant 4.000000e+00 : f32
    %135 = vector.broadcast %cst_39 : f32 to vector<16x16xf32>
    %136 = arith.mulf %134, %135 : vector<16x16xf32>
    %cst_40 = arith.constant dense<0xFF800000> : vector<16xf32>
    %137 = vector.multi_reduction <maximumf>, %136, %cst_40 [1] : vector<16x16xf32> to vector<16xf32>
    %138 = vector.shape_cast %137 : vector<16xf32> to vector<16x1xf32>
    %139 = vector.broadcast %138 : vector<16x1xf32> to vector<16x16xf32>
    %140 = arith.subf %136, %139 : vector<16x16xf32>
    %141 = math.exp %140 : vector<16x16xf32>
    %cst_41 = arith.constant dense<0.000000e+00> : vector<16xf32>
    %142 = vector.multi_reduction <add>, %141, %cst_41 [1] : vector<16x16xf32> to vector<16xf32>
    %143 = vector.shape_cast %142 : vector<16xf32> to vector<16x1xf32>
    %144 = tpu.reciprocal %143 {approx = true} : vector<16x1xf32> -> vector<16x1xf32>
    %145 = arith.mulf %143, %144 : vector<16x1xf32>
    %cst_42 = arith.constant 2.000000e+00 : f32
    %146 = vector.broadcast %cst_42 : f32 to vector<16x1xf32>
    %147 = arith.subf %146, %145 : vector<16x1xf32>
    %148 = arith.mulf %144, %147 : vector<16x1xf32>
    %149 = vector.broadcast %148 : vector<16x1xf32> to vector<16x16xf32>
    %150 = arith.mulf %141, %149 : vector<16x16xf32>
    %151 = arith.truncf %150 : vector<16x16xf32> to vector<16x16xbf16>
    %152 = vector.extract_strided_slice %41 {offsets = [0, 48], sizes = [16, 16], strides = [1, 1]} : vector<16x128xf32> to vector<16x16xf32>
    %153 = arith.truncf %152 : vector<16x16xf32> to vector<16x16xbf16>
    %cst_43 = arith.constant dense<0.000000e+00> : vector<16x16xf32>
    %154 = tpu.matmul %151, %153, %cst_43 {dimension_numbers = #tpu.dot_dimension_numbers<[1], [0], [0], [1], [0, 0, 1, 1], [], []>} : vector<16x16xbf16>, vector<16x16xbf16>, vector<16x16xf32> -> vector<16x16xf32>
    %155 = arith.truncf %154 : vector<16x16xf32> to vector<16x16xbf16>
    %c48 = arith.constant 48 : index
    %c0_44 = arith.constant 0 : index
    %156 = vector.load %arg4[%c48, %c0_44] : memref<128x128xbf16, #tpu.memory_space<vmem>>, vector<16x128xbf16>
    %cst_45 = arith.constant dense<0.000000e+00> : vector<16x128xf32>
    %157 = tpu.matmul %155, %156, %cst_45 {dimension_numbers = #tpu.dot_dimension_numbers<[1], [0], [0], [1], [0, 0, 1, 1], [], []>} : vector<16x16xbf16>, vector<16x128xbf16>, vector<16x128xf32> -> vector<16x128xf32>
    %158 = arith.addf %129, %157 : vector<16x128xf32>
    %159 = vector.extract_strided_slice %39 {offsets = [0, 64], sizes = [16, 16], strides = [1, 1]} : vector<16x128xf32> to vector<16x16xf32>
    %160 = arith.truncf %159 : vector<16x16xf32> to vector<16x16xbf16>
    %161 = vector.extract_strided_slice %40 {offsets = [0, 64], sizes = [16, 16], strides = [1, 1]} : vector<16x128xf32> to vector<16x16xf32>
    %162 = arith.truncf %161 : vector<16x16xf32> to vector<16x16xbf16>
    %cst_46 = arith.constant dense<0.000000e+00> : vector<16x16xf32>
    %163 = tpu.matmul %160, %162, %cst_46 {dimension_numbers = #tpu.dot_dimension_numbers<[1], [1], [0], [0], [0, 0, 1, 0], [], []>} : vector<16x16xbf16>, vector<16x16xbf16>, vector<16x16xf32> -> vector<16x16xf32>
    %cst_47 = arith.constant 4.000000e+00 : f32
    %164 = vector.broadcast %cst_47 : f32 to vector<16x16xf32>
    %165 = arith.mulf %163, %164 : vector<16x16xf32>
    %cst_48 = arith.constant dense<0xFF800000> : vector<16xf32>
    %166 = vector.multi_reduction <maximumf>, %165, %cst_48 [1] : vector<16x16xf32> to vector<16xf32>
    %167 = vector.shape_cast %166 : vector<16xf32> to vector<16x1xf32>
    %168 = vector.broadcast %167 : vector<16x1xf32> to vector<16x16xf32>
    %169 = arith.subf %165, %168 : vector<16x16xf32>
    %170 = math.exp %169 : vector<16x16xf32>
    %cst_49 = arith.constant dense<0.000000e+00> : vector<16xf32>
    %171 = vector.multi_reduction <add>, %170, %cst_49 [1] : vector<16x16xf32> to vector<16xf32>
    %172 = vector.shape_cast %171 : vector<16xf32> to vector<16x1xf32>
    %173 = tpu.reciprocal %172 {approx = true} : vector<16x1xf32> -> vector<16x1xf32>
    %174 = arith.mulf %172, %173 : vector<16x1xf32>
    %cst_50 = arith.constant 2.000000e+00 : f32
    %175 = vector.broadcast %cst_50 : f32 to vector<16x1xf32>
    %176 = arith.subf %175, %174 : vector<16x1xf32>
    %177 = arith.mulf %173, %176 : vector<16x1xf32>
    %178 = vector.broadcast %177 : vector<16x1xf32> to vector<16x16xf32>
    %179 = arith.mulf %170, %178 : vector<16x16xf32>
    %180 = arith.truncf %179 : vector<16x16xf32> to vector<16x16xbf16>
    %181 = vector.extract_strided_slice %41 {offsets = [0, 64], sizes = [16, 16], strides = [1, 1]} : vector<16x128xf32> to vector<16x16xf32>
    %182 = arith.truncf %181 : vector<16x16xf32> to vector<16x16xbf16>
    %cst_51 = arith.constant dense<0.000000e+00> : vector<16x16xf32>
    %183 = tpu.matmul %180, %182, %cst_51 {dimension_numbers = #tpu.dot_dimension_numbers<[1], [0], [0], [1], [0, 0, 1, 1], [], []>} : vector<16x16xbf16>, vector<16x16xbf16>, vector<16x16xf32> -> vector<16x16xf32>
    %184 = arith.truncf %183 : vector<16x16xf32> to vector<16x16xbf16>
    %c64 = arith.constant 64 : index
    %c0_52 = arith.constant 0 : index
    %185 = vector.load %arg4[%c64, %c0_52] : memref<128x128xbf16, #tpu.memory_space<vmem>>, vector<16x128xbf16>
    %cst_53 = arith.constant dense<0.000000e+00> : vector<16x128xf32>
    %186 = tpu.matmul %184, %185, %cst_53 {dimension_numbers = #tpu.dot_dimension_numbers<[1], [0], [0], [1], [0, 0, 1, 1], [], []>} : vector<16x16xbf16>, vector<16x128xbf16>, vector<16x128xf32> -> vector<16x128xf32>
    %187 = arith.addf %158, %186 : vector<16x128xf32>
    %188 = vector.extract_strided_slice %39 {offsets = [0, 80], sizes = [16, 16], strides = [1, 1]} : vector<16x128xf32> to vector<16x16xf32>
    %189 = arith.truncf %188 : vector<16x16xf32> to vector<16x16xbf16>
    %190 = vector.extract_strided_slice %40 {offsets = [0, 80], sizes = [16, 16], strides = [1, 1]} : vector<16x128xf32> to vector<16x16xf32>
    %191 = arith.truncf %190 : vector<16x16xf32> to vector<16x16xbf16>
    %cst_54 = arith.constant dense<0.000000e+00> : vector<16x16xf32>
    %192 = tpu.matmul %189, %191, %cst_54 {dimension_numbers = #tpu.dot_dimension_numbers<[1], [1], [0], [0], [0, 0, 1, 0], [], []>} : vector<16x16xbf16>, vector<16x16xbf16>, vector<16x16xf32> -> vector<16x16xf32>
    %cst_55 = arith.constant 4.000000e+00 : f32
    %193 = vector.broadcast %cst_55 : f32 to vector<16x16xf32>
    %194 = arith.mulf %192, %193 : vector<16x16xf32>
    %cst_56 = arith.constant dense<0xFF800000> : vector<16xf32>
    %195 = vector.multi_reduction <maximumf>, %194, %cst_56 [1] : vector<16x16xf32> to vector<16xf32>
    %196 = vector.shape_cast %195 : vector<16xf32> to vector<16x1xf32>
    %197 = vector.broadcast %196 : vector<16x1xf32> to vector<16x16xf32>
    %198 = arith.subf %194, %197 : vector<16x16xf32>
    %199 = math.exp %198 : vector<16x16xf32>
    %cst_57 = arith.constant dense<0.000000e+00> : vector<16xf32>
    %200 = vector.multi_reduction <add>, %199, %cst_57 [1] : vector<16x16xf32> to vector<16xf32>
    %201 = vector.shape_cast %200 : vector<16xf32> to vector<16x1xf32>
    %202 = tpu.reciprocal %201 {approx = true} : vector<16x1xf32> -> vector<16x1xf32>
    %203 = arith.mulf %201, %202 : vector<16x1xf32>
    %cst_58 = arith.constant 2.000000e+00 : f32
    %204 = vector.broadcast %cst_58 : f32 to vector<16x1xf32>
    %205 = arith.subf %204, %203 : vector<16x1xf32>
    %206 = arith.mulf %202, %205 : vector<16x1xf32>
    %207 = vector.broadcast %206 : vector<16x1xf32> to vector<16x16xf32>
    %208 = arith.mulf %199, %207 : vector<16x16xf32>
    %209 = arith.truncf %208 : vector<16x16xf32> to vector<16x16xbf16>
    %210 = vector.extract_strided_slice %41 {offsets = [0, 80], sizes = [16, 16], strides = [1, 1]} : vector<16x128xf32> to vector<16x16xf32>
    %211 = arith.truncf %210 : vector<16x16xf32> to vector<16x16xbf16>
    %cst_59 = arith.constant dense<0.000000e+00> : vector<16x16xf32>
    %212 = tpu.matmul %209, %211, %cst_59 {dimension_numbers = #tpu.dot_dimension_numbers<[1], [0], [0], [1], [0, 0, 1, 1], [], []>} : vector<16x16xbf16>, vector<16x16xbf16>, vector<16x16xf32> -> vector<16x16xf32>
    %213 = arith.truncf %212 : vector<16x16xf32> to vector<16x16xbf16>
    %c80 = arith.constant 80 : index
    %c0_60 = arith.constant 0 : index
    %214 = vector.load %arg4[%c80, %c0_60] : memref<128x128xbf16, #tpu.memory_space<vmem>>, vector<16x128xbf16>
    %cst_61 = arith.constant dense<0.000000e+00> : vector<16x128xf32>
    %215 = tpu.matmul %213, %214, %cst_61 {dimension_numbers = #tpu.dot_dimension_numbers<[1], [0], [0], [1], [0, 0, 1, 1], [], []>} : vector<16x16xbf16>, vector<16x128xbf16>, vector<16x128xf32> -> vector<16x128xf32>
    %216 = arith.addf %187, %215 : vector<16x128xf32>
    %217 = vector.extract_strided_slice %39 {offsets = [0, 96], sizes = [16, 16], strides = [1, 1]} : vector<16x128xf32> to vector<16x16xf32>
    %218 = arith.truncf %217 : vector<16x16xf32> to vector<16x16xbf16>
    %219 = vector.extract_strided_slice %40 {offsets = [0, 96], sizes = [16, 16], strides = [1, 1]} : vector<16x128xf32> to vector<16x16xf32>
    %220 = arith.truncf %219 : vector<16x16xf32> to vector<16x16xbf16>
    %cst_62 = arith.constant dense<0.000000e+00> : vector<16x16xf32>
    %221 = tpu.matmul %218, %220, %cst_62 {dimension_numbers = #tpu.dot_dimension_numbers<[1], [1], [0], [0], [0, 0, 1, 0], [], []>} : vector<16x16xbf16>, vector<16x16xbf16>, vector<16x16xf32> -> vector<16x16xf32>
    %cst_63 = arith.constant 4.000000e+00 : f32
    %222 = vector.broadcast %cst_63 : f32 to vector<16x16xf32>
    %223 = arith.mulf %221, %222 : vector<16x16xf32>
    %cst_64 = arith.constant dense<0xFF800000> : vector<16xf32>
    %224 = vector.multi_reduction <maximumf>, %223, %cst_64 [1] : vector<16x16xf32> to vector<16xf32>
    %225 = vector.shape_cast %224 : vector<16xf32> to vector<16x1xf32>
    %226 = vector.broadcast %225 : vector<16x1xf32> to vector<16x16xf32>
    %227 = arith.subf %223, %226 : vector<16x16xf32>
    %228 = math.exp %227 : vector<16x16xf32>
    %cst_65 = arith.constant dense<0.000000e+00> : vector<16xf32>
    %229 = vector.multi_reduction <add>, %228, %cst_65 [1] : vector<16x16xf32> to vector<16xf32>
    %230 = vector.shape_cast %229 : vector<16xf32> to vector<16x1xf32>
    %231 = tpu.reciprocal %230 {approx = true} : vector<16x1xf32> -> vector<16x1xf32>
    %232 = arith.mulf %230, %231 : vector<16x1xf32>
    %cst_66 = arith.constant 2.000000e+00 : f32
    %233 = vector.broadcast %cst_66 : f32 to vector<16x1xf32>
    %234 = arith.subf %233, %232 : vector<16x1xf32>
    %235 = arith.mulf %231, %234 : vector<16x1xf32>
    %236 = vector.broadcast %235 : vector<16x1xf32> to vector<16x16xf32>
    %237 = arith.mulf %228, %236 : vector<16x16xf32>
    %238 = arith.truncf %237 : vector<16x16xf32> to vector<16x16xbf16>
    %239 = vector.extract_strided_slice %41 {offsets = [0, 96], sizes = [16, 16], strides = [1, 1]} : vector<16x128xf32> to vector<16x16xf32>
    %240 = arith.truncf %239 : vector<16x16xf32> to vector<16x16xbf16>
    %cst_67 = arith.constant dense<0.000000e+00> : vector<16x16xf32>
    %241 = tpu.matmul %238, %240, %cst_67 {dimension_numbers = #tpu.dot_dimension_numbers<[1], [0], [0], [1], [0, 0, 1, 1], [], []>} : vector<16x16xbf16>, vector<16x16xbf16>, vector<16x16xf32> -> vector<16x16xf32>
    %242 = arith.truncf %241 : vector<16x16xf32> to vector<16x16xbf16>
    %c96 = arith.constant 96 : index
    %c0_68 = arith.constant 0 : index
    %243 = vector.load %arg4[%c96, %c0_68] : memref<128x128xbf16, #tpu.memory_space<vmem>>, vector<16x128xbf16>
    %cst_69 = arith.constant dense<0.000000e+00> : vector<16x128xf32>
    %244 = tpu.matmul %242, %243, %cst_69 {dimension_numbers = #tpu.dot_dimension_numbers<[1], [0], [0], [1], [0, 0, 1, 1], [], []>} : vector<16x16xbf16>, vector<16x128xbf16>, vector<16x128xf32> -> vector<16x128xf32>
    %245 = arith.addf %216, %244 : vector<16x128xf32>
    %246 = vector.extract_strided_slice %39 {offsets = [0, 112], sizes = [16, 16], strides = [1, 1]} : vector<16x128xf32> to vector<16x16xf32>
    %247 = arith.truncf %246 : vector<16x16xf32> to vector<16x16xbf16>
    %248 = vector.extract_strided_slice %40 {offsets = [0, 112], sizes = [16, 16], strides = [1, 1]} : vector<16x128xf32> to vector<16x16xf32>
    %249 = arith.truncf %248 : vector<16x16xf32> to vector<16x16xbf16>
    %cst_70 = arith.constant dense<0.000000e+00> : vector<16x16xf32>
    %250 = tpu.matmul %247, %249, %cst_70 {dimension_numbers = #tpu.dot_dimension_numbers<[1], [1], [0], [0], [0, 0, 1, 0], [], []>} : vector<16x16xbf16>, vector<16x16xbf16>, vector<16x16xf32> -> vector<16x16xf32>
    %cst_71 = arith.constant 4.000000e+00 : f32
    %251 = vector.broadcast %cst_71 : f32 to vector<16x16xf32>
    %252 = arith.mulf %250, %251 : vector<16x16xf32>
    %cst_72 = arith.constant dense<0xFF800000> : vector<16xf32>
    %253 = vector.multi_reduction <maximumf>, %252, %cst_72 [1] : vector<16x16xf32> to vector<16xf32>
    %254 = vector.shape_cast %253 : vector<16xf32> to vector<16x1xf32>
    %255 = vector.broadcast %254 : vector<16x1xf32> to vector<16x16xf32>
    %256 = arith.subf %252, %255 : vector<16x16xf32>
    %257 = math.exp %256 : vector<16x16xf32>
    %cst_73 = arith.constant dense<0.000000e+00> : vector<16xf32>
    %258 = vector.multi_reduction <add>, %257, %cst_73 [1] : vector<16x16xf32> to vector<16xf32>
    %259 = vector.shape_cast %258 : vector<16xf32> to vector<16x1xf32>
    %260 = tpu.reciprocal %259 {approx = true} : vector<16x1xf32> -> vector<16x1xf32>
    %261 = arith.mulf %259, %260 : vector<16x1xf32>
    %cst_74 = arith.constant 2.000000e+00 : f32
    %262 = vector.broadcast %cst_74 : f32 to vector<16x1xf32>
    %263 = arith.subf %262, %261 : vector<16x1xf32>
    %264 = arith.mulf %260, %263 : vector<16x1xf32>
    %265 = vector.broadcast %264 : vector<16x1xf32> to vector<16x16xf32>
    %266 = arith.mulf %257, %265 : vector<16x16xf32>
    %267 = arith.truncf %266 : vector<16x16xf32> to vector<16x16xbf16>
    %268 = vector.extract_strided_slice %41 {offsets = [0, 112], sizes = [16, 16], strides = [1, 1]} : vector<16x128xf32> to vector<16x16xf32>
    %269 = arith.truncf %268 : vector<16x16xf32> to vector<16x16xbf16>
    %cst_75 = arith.constant dense<0.000000e+00> : vector<16x16xf32>
    %270 = tpu.matmul %267, %269, %cst_75 {dimension_numbers = #tpu.dot_dimension_numbers<[1], [0], [0], [1], [0, 0, 1, 1], [], []>} : vector<16x16xbf16>, vector<16x16xbf16>, vector<16x16xf32> -> vector<16x16xf32>
    %271 = arith.truncf %270 : vector<16x16xf32> to vector<16x16xbf16>
    %c112 = arith.constant 112 : index
    %c0_76 = arith.constant 0 : index
    %272 = vector.load %arg4[%c112, %c0_76] : memref<128x128xbf16, #tpu.memory_space<vmem>>, vector<16x128xbf16>
    %cst_77 = arith.constant dense<0.000000e+00> : vector<16x128xf32>
    %273 = tpu.matmul %271, %272, %cst_77 {dimension_numbers = #tpu.dot_dimension_numbers<[1], [0], [0], [1], [0, 0, 1, 1], [], []>} : vector<16x16xbf16>, vector<16x128xbf16>, vector<16x128xf32> -> vector<16x128xf32>
    %274 = arith.addf %245, %273 : vector<16x128xf32>
    %c0_78 = arith.constant 0 : index
    %c0_79 = arith.constant 0 : index
    %275 = vector.load %arg5[%c0_78, %c0_79] : memref<1x128xf32, #tpu.memory_space<vmem>>, vector<1x128xf32>
    %276 = vector.broadcast %275 : vector<1x128xf32> to vector<16x128xf32>
    %277 = arith.addf %274, %276 : vector<16x128xf32>
    %278 = vector.extract_strided_slice %277 {offsets = [0, 0], sizes = [16, 1], strides = [1, 1]} : vector<16x128xf32> to vector<16x1xf32>
    %279 = arith.negf %278 : vector<16x1xf32>
    %280 = math.exp %279 : vector<16x1xf32>
    %cst_80 = arith.constant 1.000000e+00 : f32
    %281 = vector.broadcast %cst_80 : f32 to vector<16x1xf32>
    %282 = arith.addf %281, %280 : vector<16x1xf32>
    %283 = arith.divf %281, %282 : vector<16x1xf32>
    %cst_81 = arith.constant 1.000000e+01 : f32
    %284 = vector.broadcast %cst_81 : f32 to vector<16x1xf32>
    %285 = arith.mulf %283, %284 : vector<16x1xf32>
    %cst_82 = arith.constant 1.100000e+00 : f32
    %286 = vector.broadcast %cst_82 : f32 to vector<16x1xf32>
    %287 = arith.addf %285, %286 : vector<16x1xf32>
    %288 = arith.mulf %277, %277 : vector<16x128xf32>
    %cst_83 = arith.constant dense<0.000000e+00> : vector<16xf32>
    %289 = vector.multi_reduction <add>, %288, %cst_83 [1] : vector<16x128xf32> to vector<16xf32>
    %290 = vector.shape_cast %289 : vector<16xf32> to vector<16x1xf32>
    %291 = arith.mulf %278, %278 : vector<16x1xf32>
    %292 = arith.subf %290, %291 : vector<16x1xf32>
    %cst_84 = arith.constant 9.99999993E-9 : f32
    %293 = vector.broadcast %cst_84 : f32 to vector<16x1xf32>
    %294 = arith.maximumf %292, %293 : vector<16x1xf32>
    %295 = arith.mulf %287, %287 : vector<16x1xf32>
    %cst_85 = arith.constant 1.000000e+00 : f32
    %296 = vector.broadcast %cst_85 : f32 to vector<16x1xf32>
    %297 = arith.subf %295, %296 : vector<16x1xf32>
    %298 = math.sqrt %297 : vector<16x1xf32>
    %299 = math.rsqrt %294 : vector<16x1xf32>
    %300 = arith.mulf %298, %299 : vector<16x1xf32>
    %301 = tpu.iota {dimensions = array<i32: 1>} : vector<16x128xi32>
    %c0_i32_86 = arith.constant 0 : i32
    %302 = vector.broadcast %c0_i32_86 : i32 to vector<16x128xi32>
    %303 = arith.cmpi eq, %301, %302 : vector<16x128xi32>
    %304 = vector.broadcast %300 : vector<16x1xf32> to vector<16x128xf32>
    %305 = arith.mulf %277, %304 : vector<16x128xf32>
    %306 = vector.shape_cast %287 : vector<16x1xf32> to vector<16x1xf32>
    %307 = vector.broadcast %306 : vector<16x1xf32> to vector<16x128xf32>
    %308 = arith.select %303, %307, %305 : vector<16x128xi1>, vector<16x128xf32>
    %309 = arith.addf %1, %308 : vector<16x128xf32>
    %310 = vector.extract_strided_slice %309 {offsets = [0, 0], sizes = [16, 1], strides = [1, 1]} : vector<16x128xf32> to vector<16x1xf32>
    %311 = arith.negf %310 : vector<16x1xf32>
    %312 = math.exp %311 : vector<16x1xf32>
    %cst_87 = arith.constant 1.000000e+00 : f32
    %313 = vector.broadcast %cst_87 : f32 to vector<16x1xf32>
    %314 = arith.addf %313, %312 : vector<16x1xf32>
    %315 = arith.divf %313, %314 : vector<16x1xf32>
    %cst_88 = arith.constant 1.000000e+01 : f32
    %316 = vector.broadcast %cst_88 : f32 to vector<16x1xf32>
    %317 = arith.mulf %315, %316 : vector<16x1xf32>
    %cst_89 = arith.constant 1.100000e+00 : f32
    %318 = vector.broadcast %cst_89 : f32 to vector<16x1xf32>
    %319 = arith.addf %317, %318 : vector<16x1xf32>
    %320 = arith.mulf %309, %309 : vector<16x128xf32>
    %cst_90 = arith.constant dense<0.000000e+00> : vector<16xf32>
    %321 = vector.multi_reduction <add>, %320, %cst_90 [1] : vector<16x128xf32> to vector<16xf32>
    %322 = vector.shape_cast %321 : vector<16xf32> to vector<16x1xf32>
    %323 = arith.mulf %310, %310 : vector<16x1xf32>
    %324 = arith.subf %322, %323 : vector<16x1xf32>
    %cst_91 = arith.constant 9.99999993E-9 : f32
    %325 = vector.broadcast %cst_91 : f32 to vector<16x1xf32>
    %326 = arith.maximumf %324, %325 : vector<16x1xf32>
    %327 = arith.mulf %319, %319 : vector<16x1xf32>
    %cst_92 = arith.constant 1.000000e+00 : f32
    %328 = vector.broadcast %cst_92 : f32 to vector<16x1xf32>
    %329 = arith.subf %327, %328 : vector<16x1xf32>
    %330 = math.sqrt %329 : vector<16x1xf32>
    %331 = math.rsqrt %326 : vector<16x1xf32>
    %332 = arith.mulf %330, %331 : vector<16x1xf32>
    %333 = tpu.iota {dimensions = array<i32: 1>} : vector<16x128xi32>
    %c0_i32_93 = arith.constant 0 : i32
    %334 = vector.broadcast %c0_i32_93 : i32 to vector<16x128xi32>
    %335 = arith.cmpi eq, %333, %334 : vector<16x128xi32>
    %336 = vector.broadcast %332 : vector<16x1xf32> to vector<16x128xf32>
    %337 = arith.mulf %309, %336 : vector<16x128xf32>
    %338 = vector.shape_cast %319 : vector<16x1xf32> to vector<16x1xf32>
    %339 = vector.broadcast %338 : vector<16x1xf32> to vector<16x128xf32>
    %340 = arith.select %335, %339, %337 : vector<16x128xi1>, vector<16x128xf32>
    %cst_94 = arith.constant 5.000000e-01 : f32
    %341 = vector.broadcast %cst_94 : f32 to vector<16x128xf32>
    %342 = arith.mulf %341, %340 : vector<16x128xf32>
    %cst_95 = arith.constant 0.707106769 : f32
    %343 = vector.broadcast %cst_95 : f32 to vector<16x128xf32>
    %344 = arith.mulf %340, %343 : vector<16x128xf32>
    %345 = math.absf %344 : vector<16x128xf32>
    %cst_96 = arith.constant 0.327591091 : f32
    %346 = vector.broadcast %cst_96 : f32 to vector<16x128xf32>
    %347 = arith.mulf %346, %345 : vector<16x128xf32>
    %cst_97 = arith.constant 1.000000e+00 : f32
    %348 = vector.broadcast %cst_97 : f32 to vector<16x128xf32>
    %349 = arith.addf %348, %347 : vector<16x128xf32>
    %350 = tpu.reciprocal %349 {approx = true} : vector<16x128xf32> -> vector<16x128xf32>
    %351 = arith.mulf %349, %350 : vector<16x128xf32>
    %cst_98 = arith.constant 2.000000e+00 : f32
    %352 = vector.broadcast %cst_98 : f32 to vector<16x128xf32>
    %353 = arith.subf %352, %351 : vector<16x128xf32>
    %354 = arith.mulf %350, %353 : vector<16x128xf32>
    %cst_99 = arith.constant 1.06140542 : f32
    %355 = vector.broadcast %cst_99 : f32 to vector<16x128xf32>
    %356 = arith.mulf %355, %354 : vector<16x128xf32>
    %cst_100 = arith.constant -1.45315206 : f32
    %357 = vector.broadcast %cst_100 : f32 to vector<16x128xf32>
    %358 = arith.addf %356, %357 : vector<16x128xf32>
    %359 = arith.mulf %358, %354 : vector<16x128xf32>
    %cst_101 = arith.constant 1.42141378 : f32
    %360 = vector.broadcast %cst_101 : f32 to vector<16x128xf32>
    %361 = arith.addf %359, %360 : vector<16x128xf32>
    %362 = arith.mulf %361, %354 : vector<16x128xf32>
    %cst_102 = arith.constant -0.284496725 : f32
    %363 = vector.broadcast %cst_102 : f32 to vector<16x128xf32>
    %364 = arith.addf %362, %363 : vector<16x128xf32>
    %365 = arith.mulf %364, %354 : vector<16x128xf32>
    %cst_103 = arith.constant 0.254829586 : f32
    %366 = vector.broadcast %cst_103 : f32 to vector<16x128xf32>
    %367 = arith.addf %365, %366 : vector<16x128xf32>
    %368 = arith.mulf %367, %354 : vector<16x128xf32>
    %cst_104 = arith.constant 0.000000e+00 : f32
    %369 = vector.broadcast %cst_104 : f32 to vector<16x128xf32>
    %370 = arith.subf %369, %345 : vector<16x128xf32>
    %371 = arith.mulf %370, %345 : vector<16x128xf32>
    %372 = math.exp %371 : vector<16x128xf32>
    %373 = arith.mulf %368, %372 : vector<16x128xf32>
    %cst_105 = arith.constant 1.000000e+00 : f32
    %374 = vector.broadcast %cst_105 : f32 to vector<16x128xf32>
    %375 = arith.subf %374, %373 : vector<16x128xf32>
    %cst_106 = arith.constant 0.000000e+00 : f32
    %376 = vector.broadcast %cst_106 : f32 to vector<16x128xf32>
    %377 = arith.cmpf olt, %344, %376 : vector<16x128xf32>
    %cst_107 = arith.constant 0.000000e+00 : f32
    %378 = vector.broadcast %cst_107 : f32 to vector<16x128xf32>
    %379 = arith.subf %378, %375 : vector<16x128xf32>
    %380 = arith.select %377, %379, %375 : vector<16x128xi1>, vector<16x128xf32>
    %cst_108 = arith.constant 1.000000e+00 : f32
    %381 = vector.broadcast %cst_108 : f32 to vector<16x128xf32>
    %382 = arith.addf %381, %380 : vector<16x128xf32>
    %383 = arith.mulf %342, %382 : vector<16x128xf32>
    %384 = arith.truncf %383 : vector<16x128xf32> to vector<16x128xbf16>
    %c0_109 = arith.constant 0 : index
    %c0_110 = arith.constant 0 : index
    %385 = vector.load %arg6[%c0_109, %c0_110] : memref<128x128xbf16, #tpu.memory_space<vmem>>, vector<128x128xbf16>
    %cst_111 = arith.constant dense<0.000000e+00> : vector<16x128xf32>
    %386 = tpu.matmul %384, %385, %cst_111 {dimension_numbers = #tpu.dot_dimension_numbers<[1], [0], [0], [1], [0, 0, 1, 1], [], []>} : vector<16x128xbf16>, vector<128x128xbf16>, vector<16x128xf32> -> vector<16x128xf32>
    %c0_112 = arith.constant 0 : index
    %c0_113 = arith.constant 0 : index
    %387 = vector.load %arg7[%c0_112, %c0_113] : memref<1x128xf32, #tpu.memory_space<vmem>>, vector<1x128xf32>
    %388 = vector.broadcast %387 : vector<1x128xf32> to vector<16x128xf32>
    %389 = arith.addf %386, %388 : vector<16x128xf32>
    %390 = vector.extract_strided_slice %389 {offsets = [0, 0], sizes = [16, 1], strides = [1, 1]} : vector<16x128xf32> to vector<16x1xf32>
    %391 = arith.negf %390 : vector<16x1xf32>
    %392 = math.exp %391 : vector<16x1xf32>
    %cst_114 = arith.constant 1.000000e+00 : f32
    %393 = vector.broadcast %cst_114 : f32 to vector<16x1xf32>
    %394 = arith.addf %393, %392 : vector<16x1xf32>
    %395 = arith.divf %393, %394 : vector<16x1xf32>
    %cst_115 = arith.constant 1.000000e+01 : f32
    %396 = vector.broadcast %cst_115 : f32 to vector<16x1xf32>
    %397 = arith.mulf %395, %396 : vector<16x1xf32>
    %cst_116 = arith.constant 1.100000e+00 : f32
    %398 = vector.broadcast %cst_116 : f32 to vector<16x1xf32>
    %399 = arith.addf %397, %398 : vector<16x1xf32>
    %400 = arith.mulf %389, %389 : vector<16x128xf32>
    %cst_117 = arith.constant dense<0.000000e+00> : vector<16xf32>
    %401 = vector.multi_reduction <add>, %400, %cst_117 [1] : vector<16x128xf32> to vector<16xf32>
    %402 = vector.shape_cast %401 : vector<16xf32> to vector<16x1xf32>
    %403 = arith.mulf %390, %390 : vector<16x1xf32>
    %404 = arith.subf %402, %403 : vector<16x1xf32>
    %cst_118 = arith.constant 9.99999993E-9 : f32
    %405 = vector.broadcast %cst_118 : f32 to vector<16x1xf32>
    %406 = arith.maximumf %404, %405 : vector<16x1xf32>
    %407 = arith.mulf %399, %399 : vector<16x1xf32>
    %cst_119 = arith.constant 1.000000e+00 : f32
    %408 = vector.broadcast %cst_119 : f32 to vector<16x1xf32>
    %409 = arith.subf %407, %408 : vector<16x1xf32>
    %410 = math.sqrt %409 : vector<16x1xf32>
    %411 = math.rsqrt %406 : vector<16x1xf32>
    %412 = arith.mulf %410, %411 : vector<16x1xf32>
    %413 = tpu.iota {dimensions = array<i32: 1>} : vector<16x128xi32>
    %c0_i32_120 = arith.constant 0 : i32
    %414 = vector.broadcast %c0_i32_120 : i32 to vector<16x128xi32>
    %415 = arith.cmpi eq, %413, %414 : vector<16x128xi32>
    %416 = vector.broadcast %412 : vector<16x1xf32> to vector<16x128xf32>
    %417 = arith.mulf %389, %416 : vector<16x128xf32>
    %418 = vector.shape_cast %399 : vector<16x1xf32> to vector<16x1xf32>
    %419 = vector.broadcast %418 : vector<16x1xf32> to vector<16x128xf32>
    %420 = arith.select %415, %419, %417 : vector<16x128xi1>, vector<16x128xf32>
    %c0_121 = arith.constant 0 : index
    %c0_122 = arith.constant 0 : index
    %421 = vector.load %arg8[%c0_121, %c0_122] : memref<16x16xbf16, #tpu.memory_space<vmem>>, vector<16x16xbf16>
    %cst_123 = arith.constant 5.000000e-01 : f32
    %422 = vector.broadcast %cst_123 : f32 to vector<16x128xf32>
    %423 = arith.mulf %422, %420 : vector<16x128xf32>
    %cst_124 = arith.constant 0.707106769 : f32
    %424 = vector.broadcast %cst_124 : f32 to vector<16x128xf32>
    %425 = arith.mulf %420, %424 : vector<16x128xf32>
    %426 = math.absf %425 : vector<16x128xf32>
    %cst_125 = arith.constant 0.327591091 : f32
    %427 = vector.broadcast %cst_125 : f32 to vector<16x128xf32>
    %428 = arith.mulf %427, %426 : vector<16x128xf32>
    %cst_126 = arith.constant 1.000000e+00 : f32
    %429 = vector.broadcast %cst_126 : f32 to vector<16x128xf32>
    %430 = arith.addf %429, %428 : vector<16x128xf32>
    %431 = tpu.reciprocal %430 {approx = true} : vector<16x128xf32> -> vector<16x128xf32>
    %432 = arith.mulf %430, %431 : vector<16x128xf32>
    %cst_127 = arith.constant 2.000000e+00 : f32
    %433 = vector.broadcast %cst_127 : f32 to vector<16x128xf32>
    %434 = arith.subf %433, %432 : vector<16x128xf32>
    %435 = arith.mulf %431, %434 : vector<16x128xf32>
    %cst_128 = arith.constant 1.06140542 : f32
    %436 = vector.broadcast %cst_128 : f32 to vector<16x128xf32>
    %437 = arith.mulf %436, %435 : vector<16x128xf32>
    %cst_129 = arith.constant -1.45315206 : f32
    %438 = vector.broadcast %cst_129 : f32 to vector<16x128xf32>
    %439 = arith.addf %437, %438 : vector<16x128xf32>
    %440 = arith.mulf %439, %435 : vector<16x128xf32>
    %cst_130 = arith.constant 1.42141378 : f32
    %441 = vector.broadcast %cst_130 : f32 to vector<16x128xf32>
    %442 = arith.addf %440, %441 : vector<16x128xf32>
    %443 = arith.mulf %442, %435 : vector<16x128xf32>
    %cst_131 = arith.constant -0.284496725 : f32
    %444 = vector.broadcast %cst_131 : f32 to vector<16x128xf32>
    %445 = arith.addf %443, %444 : vector<16x128xf32>
    %446 = arith.mulf %445, %435 : vector<16x128xf32>
    %cst_132 = arith.constant 0.254829586 : f32
    %447 = vector.broadcast %cst_132 : f32 to vector<16x128xf32>
    %448 = arith.addf %446, %447 : vector<16x128xf32>
    %449 = arith.mulf %448, %435 : vector<16x128xf32>
    %cst_133 = arith.constant 0.000000e+00 : f32
    %450 = vector.broadcast %cst_133 : f32 to vector<16x128xf32>
    %451 = arith.subf %450, %426 : vector<16x128xf32>
    %452 = arith.mulf %451, %426 : vector<16x128xf32>
    %453 = math.exp %452 : vector<16x128xf32>
    %454 = arith.mulf %449, %453 : vector<16x128xf32>
    %cst_134 = arith.constant 1.000000e+00 : f32
    %455 = vector.broadcast %cst_134 : f32 to vector<16x128xf32>
    %456 = arith.subf %455, %454 : vector<16x128xf32>
    %cst_135 = arith.constant 0.000000e+00 : f32
    %457 = vector.broadcast %cst_135 : f32 to vector<16x128xf32>
    %458 = arith.cmpf olt, %425, %457 : vector<16x128xf32>
    %cst_136 = arith.constant 0.000000e+00 : f32
    %459 = vector.broadcast %cst_136 : f32 to vector<16x128xf32>
    %460 = arith.subf %459, %456 : vector<16x128xf32>
    %461 = arith.select %458, %460, %456 : vector<16x128xi1>, vector<16x128xf32>
    %cst_137 = arith.constant 1.000000e+00 : f32
    %462 = vector.broadcast %cst_137 : f32 to vector<16x128xf32>
    %463 = arith.addf %462, %461 : vector<16x128xf32>
    %464 = arith.mulf %423, %463 : vector<16x128xf32>
    %465 = arith.truncf %464 : vector<16x128xf32> to vector<16x128xbf16>
    %cst_138 = arith.constant dense<0.000000e+00> : vector<16x128xf32>
    %466 = tpu.matmul %421, %465, %cst_138 {dimension_numbers = #tpu.dot_dimension_numbers<[1], [0], [0], [1], [0, 0, 1, 1], [], []>} : vector<16x16xbf16>, vector<16x128xbf16>, vector<16x128xf32> -> vector<16x128xf32>
    %c0_139 = arith.constant 0 : index
    %c0_140 = arith.constant 0 : index
    %467 = vector.load %arg9[%c0_139, %c0_140] : memref<16x1xf32, #tpu.memory_space<vmem>>, vector<16x1xf32>
    %468 = vector.broadcast %467 : vector<16x1xf32> to vector<16x128xf32>
    %469 = arith.addf %466, %468 : vector<16x128xf32>
    %470 = vector.extract_strided_slice %469 {offsets = [0, 0], sizes = [1, 128], strides = [1, 1]} : vector<16x128xf32> to vector<1x128xf32>
    %471 = arith.negf %470 : vector<1x128xf32>
    %472 = math.exp %471 : vector<1x128xf32>
    %cst_141 = arith.constant 1.000000e+00 : f32
    %473 = vector.broadcast %cst_141 : f32 to vector<1x128xf32>
    %474 = arith.addf %473, %472 : vector<1x128xf32>
    %475 = arith.divf %473, %474 : vector<1x128xf32>
    %cst_142 = arith.constant 1.000000e+01 : f32
    %476 = vector.broadcast %cst_142 : f32 to vector<1x128xf32>
    %477 = arith.mulf %475, %476 : vector<1x128xf32>
    %cst_143 = arith.constant 1.100000e+00 : f32
    %478 = vector.broadcast %cst_143 : f32 to vector<1x128xf32>
    %479 = arith.addf %477, %478 : vector<1x128xf32>
    %480 = arith.mulf %469, %469 : vector<16x128xf32>
    %cst_144 = arith.constant dense<0.000000e+00> : vector<128xf32>
    %481 = vector.multi_reduction <add>, %480, %cst_144 [0] : vector<16x128xf32> to vector<128xf32>
    %482 = vector.shape_cast %481 : vector<128xf32> to vector<1x128xf32>
    %483 = arith.mulf %470, %470 : vector<1x128xf32>
    %484 = arith.subf %482, %483 : vector<1x128xf32>
    %cst_145 = arith.constant 9.99999993E-9 : f32
    %485 = vector.broadcast %cst_145 : f32 to vector<1x128xf32>
    %486 = arith.maximumf %484, %485 : vector<1x128xf32>
    %487 = arith.mulf %479, %479 : vector<1x128xf32>
    %cst_146 = arith.constant 1.000000e+00 : f32
    %488 = vector.broadcast %cst_146 : f32 to vector<1x128xf32>
    %489 = arith.subf %487, %488 : vector<1x128xf32>
    %490 = math.sqrt %489 : vector<1x128xf32>
    %491 = math.rsqrt %486 : vector<1x128xf32>
    %492 = arith.mulf %490, %491 : vector<1x128xf32>
    %493 = tpu.iota {dimensions = array<i32: 0>} : vector<16x128xi32>
    %c0_i32_147 = arith.constant 0 : i32
    %494 = vector.broadcast %c0_i32_147 : i32 to vector<16x128xi32>
    %495 = arith.cmpi eq, %493, %494 : vector<16x128xi32>
    %496 = vector.broadcast %492 : vector<1x128xf32> to vector<16x128xf32>
    %497 = arith.mulf %469, %496 : vector<16x128xf32>
    %498 = vector.shape_cast %479 : vector<1x128xf32> to vector<1x128xf32>
    %499 = vector.broadcast %498 : vector<1x128xf32> to vector<16x128xf32>
    %500 = arith.select %495, %499, %497 : vector<16x128xi1>, vector<16x128xf32>
    %501 = arith.addf %340, %500 : vector<16x128xf32>
    %502 = vector.extract_strided_slice %501 {offsets = [0, 0], sizes = [16, 1], strides = [1, 1]} : vector<16x128xf32> to vector<16x1xf32>
    %503 = arith.negf %502 : vector<16x1xf32>
    %504 = math.exp %503 : vector<16x1xf32>
    %cst_148 = arith.constant 1.000000e+00 : f32
    %505 = vector.broadcast %cst_148 : f32 to vector<16x1xf32>
    %506 = arith.addf %505, %504 : vector<16x1xf32>
    %507 = arith.divf %505, %506 : vector<16x1xf32>
    %cst_149 = arith.constant 1.000000e+01 : f32
    %508 = vector.broadcast %cst_149 : f32 to vector<16x1xf32>
    %509 = arith.mulf %507, %508 : vector<16x1xf32>
    %cst_150 = arith.constant 1.100000e+00 : f32
    %510 = vector.broadcast %cst_150 : f32 to vector<16x1xf32>
    %511 = arith.addf %509, %510 : vector<16x1xf32>
    %512 = arith.mulf %501, %501 : vector<16x128xf32>
    %cst_151 = arith.constant dense<0.000000e+00> : vector<16xf32>
    %513 = vector.multi_reduction <add>, %512, %cst_151 [1] : vector<16x128xf32> to vector<16xf32>
    %514 = vector.shape_cast %513 : vector<16xf32> to vector<16x1xf32>
    %515 = arith.mulf %502, %502 : vector<16x1xf32>
    %516 = arith.subf %514, %515 : vector<16x1xf32>
    %cst_152 = arith.constant 9.99999993E-9 : f32
    %517 = vector.broadcast %cst_152 : f32 to vector<16x1xf32>
    %518 = arith.maximumf %516, %517 : vector<16x1xf32>
    %519 = arith.mulf %511, %511 : vector<16x1xf32>
    %cst_153 = arith.constant 1.000000e+00 : f32
    %520 = vector.broadcast %cst_153 : f32 to vector<16x1xf32>
    %521 = arith.subf %519, %520 : vector<16x1xf32>
    %522 = math.sqrt %521 : vector<16x1xf32>
    %523 = math.rsqrt %518 : vector<16x1xf32>
    %524 = arith.mulf %522, %523 : vector<16x1xf32>
    %525 = tpu.iota {dimensions = array<i32: 1>} : vector<16x128xi32>
    %c0_i32_154 = arith.constant 0 : i32
    %526 = vector.broadcast %c0_i32_154 : i32 to vector<16x128xi32>
    %527 = arith.cmpi eq, %525, %526 : vector<16x128xi32>
    %528 = vector.broadcast %524 : vector<16x1xf32> to vector<16x128xf32>
    %529 = arith.mulf %501, %528 : vector<16x128xf32>
    %530 = vector.shape_cast %511 : vector<16x1xf32> to vector<16x1xf32>
    %531 = vector.broadcast %530 : vector<16x1xf32> to vector<16x128xf32>
    %532 = arith.select %527, %531, %529 : vector<16x128xi1>, vector<16x128xf32>
    %c0_155 = arith.constant 0 : index
    %c0_156 = arith.constant 0 : index
    %c0_157 = arith.constant 0 : index
    %533 = vector.load %arg10[%c0_155, %c0_156, %c0_157] : memref<1x16x128xf32, #tpu.memory_space<vmem>>, vector<1x16x128xf32>
    %534 = vector.shape_cast %533 : vector<1x16x128xf32> to vector<16x128xf32>
    %535 = vector.shape_cast %532 : vector<16x128xf32> to vector<1x16x128xf32>
    tpu.vector_store %arg10[%c0_155, %c0_156, %c0_157], %535 {strides = array<i32>} : memref<1x16x128xf32, #tpu.memory_space<vmem>>, vector<1x16x128xf32>,
    return
  }
  func.func @transform_0(%arg0: i32) -> (i32, i32, i32) {
    %c0_i32 = arith.constant 0 : i32
    %c0_i32_0 = arith.constant 0 : i32
    %c0_i32_1 = arith.constant 0 : i32
    return %arg0, %c0_i32, %c0_i32_0 : i32, i32, i32
  }
  func.func @transform_1(%arg0: i32) -> (i32, i32) {
    %c0_i32 = arith.constant 0 : i32
    %c0_i32_0 = arith.constant 0 : i32
    %c0_i32_1 = arith.constant 0 : i32
    return %c0_i32, %c0_i32_0 : i32, i32
  }
  func.func @transform_2(%arg0: i32) -> (i32, i32) {
    %c0_i32 = arith.constant 0 : i32
    %c0_i32_0 = arith.constant 0 : i32
    %c0_i32_1 = arith.constant 0 : i32
    return %c0_i32, %c0_i32_0 : i32, i32
  }
  func.func @transform_3(%arg0: i32) -> (i32, i32) {
    %c0_i32 = arith.constant 0 : i32
    %c0_i32_0 = arith.constant 0 : i32
    %c0_i32_1 = arith.constant 0 : i32
    return %c0_i32, %c0_i32_0 : i32, i32
  }
  func.func @transform_4(%arg0: i32) -> (i32, i32) {
    %c0_i32 = arith.constant 0 : i32
    %c0_i32_0 = arith.constant 0 : i32
    %c0_i32_1 = arith.constant 0 : i32
    return %c0_i32, %c0_i32_0 : i32, i32
  }
  func.func @transform_5(%arg0: i32) -> (i32, i32) {
    %c0_i32 = arith.constant 0 : i32
    %c0_i32_0 = arith.constant 0 : i32
    %c0_i32_1 = arith.constant 0 : i32
    return %c0_i32, %c0_i32_0 : i32, i32
  }
  func.func @transform_6(%arg0: i32) -> (i32, i32) {
    %c0_i32 = arith.constant 0 : i32
    %c0_i32_0 = arith.constant 0 : i32
    %c0_i32_1 = arith.constant 0 : i32
    return %c0_i32, %c0_i32_0 : i32, i32
  }
  func.func @transform_7(%arg0: i32) -> (i32, i32) {
    %c0_i32 = arith.constant 0 : i32
    %c0_i32_0 = arith.constant 0 : i32
    %c0_i32_1 = arith.constant 0 : i32
    return %c0_i32, %c0_i32_0 : i32, i32
  }
  func.func @transform_8(%arg0: i32) -> (i32, i32) {
    %c0_i32 = arith.constant 0 : i32
    %c0_i32_0 = arith.constant 0 : i32
    %c0_i32_1 = arith.constant 0 : i32
    return %c0_i32, %c0_i32_0 : i32, i32
  }
  func.func @transform_9(%arg0: i32) -> (i32, i32, i32) {
    %c0_i32 = arith.constant 0 : i32
    %c0_i32_0 = arith.constant 0 : i32
    %c0_i32_1 = arith.constant 0 : i32
    return %arg0, %c0_i32, %c0_i32_0 : i32, i32, i32
  }
}

</mosaic_0001>

<bundles_post_ra>
// kernel: lorentz_vit_forward.6
= control target key start
LH: loop header
LB: loop body
LE: loop exit
PB: predicated region body
PF: predicated region fallthrough
CT: control target
= control target key end

     0   :  { %s654_s12 = smov 0   ;;  %s853_s0 = inlined_call_operand.vmem [shape: f32[128,27], index: 0, kind: input, shape index: {}]   ;;  %s854_s1 = inlined_call_operand.vmem [shape: bf16[27,64], index: 1, kind: input, shape index: {}]   ;;  %s855_s2 = inlined_call_operand.vmem [shape: f32[1,64], index: 2, kind: input, shape index: {}]   ;;  %s856_s3 = inlined_call_operand.vmem [shape: f32[128,64], index: 3, kind: output, shape index: {}]  }
   0x1 LB: > { %s552_s13 = sadd.s32 4294967295, %s631_s12   ;;  %p556_p0 = scmp.ge.s32.totalorder %s631_s12, 1  ;;  %s631_s12 = sphi %s654_s12, %s13_s12  }
   0x2   : > { %p138_p1 = scmp.lt.s32.totalorder %s631_s12, 3 }
   0x4   : > { %p139_p2 = pnand %p556_p0, %p138_p1 }
   0x5   : > { %s557_s18 = sshll.u32 (!%p139_p2), %s552_s13, 3 }
   0x6   : > { %142 = sbr.rel (%p139_p2) target bundleno = 235 (0xeb), region = 32  ;;  %p163_p3 = scmp.lt.s32.totalorder (!%p139_p2), %s557_s18, 15 }
   0xb   : > { %v567_v0 = vld [vmem:[%s854_s1 + $0x8] sm:$0xf]  ;;  %v576_v1 = vld [vmem:[%s854_s1 + $0x8] sm:$0x30]  ;;  %vm219_vm0 = vcmask 1044480   ;;  %vm220_vm1 = vcmask 1045504  }
   0xc   : > { %v568_v2 = vor.u32 %v576_v1, %v567_v0  ;;  %v633_v3 = vmov 65535   ;;  %s858_s18 = smov (!%p163_p3, %s557_s18), 15  ;;  %v575_v7 = vld [vmem:[%s854_s1] sm:$0xff]  ;;  %vm206_vm2 = vcmask 220160   ;;  %vm487_vm5 = vcmask 523264  }
   0xd   : > { %v221_v4 = vsel %vm219_vm0, 4294967295, %v633_v3  ;;  %s558_s21 = sshll.u32 %s858_s18, 3  ;;  %v682_v20 = vld [vmem:[%s855_s2] ss:$0 sm:$0xff] }
   0xe   : > { %v222_v5 = vsel %vm220_vm1, %v221_v4, 0  ;;  %s166_s24 = scalar_lea.vmem %s853_s0, %s558_s21  ;;  %s807_s29 = scalar_lea.vmem %s856_s3, %s558_s21 }
   0xf   : > { %v224_v6 = vand.u32 %v568_v2, %v222_v5  ;;  %v175_v8 = vld [vmem:[%s166_s24] sm:$0xff]  ;;  %v176_v9 = vld [vmem:[%s166_s24 + $0x8] sm:$0xff]  ;;  %v177_v10 = vld [vmem:[%s166_s24 + $0x10] sm:$0xff] }
  0x10   : > { %v183_v11 = vpack.c.bf16 %v176_v9, %v175_v8  ;;  %v178_v12 = vld [vmem:[%s166_s24 + $0x18] sm:$0xff]  ;;  %v179_v13 = vld [vmem:[%s166_s24 + $0x20] sm:$0xff]  ;;  %v180_v14 = vld [vmem:[%s166_s24 + $0x28] sm:$0xff] }
  0x11   : > { %232 = vmatpush.bf16.msra.mxu0 %v224_v6  ;;  %577 = vmatpush.bf16.msra.mxu1 %v224_v6  ;;  %v184_v15 = vpack.c.bf16 %v178_v12, %v177_v10  ;;  %v185_v16 = vpack.c.bf16 %v180_v14, %v179_v13  ;;  %v181_v17 = vld [vmem:[%s166_s24 + $0x30] sm:$0xff]  ;;  %v182_v18 = vld [vmem:[%s166_s24 + $0x38] sm:$0xff] }
  0x12   : > { %578 = vmatpush.bf16.msra.mxu2 %v224_v6  ;;  %579 = vmatpush.bf16.msra.mxu3 %v224_v6  ;;  %v186_v19 = vpack.c.bf16 %v182_v18, %v181_v17 }
  0x15   : > { %233 = vmatpush.bf16.msra.mxu0 %v575_v7  ;;  %580 = vmatpush.bf16.msra.mxu1 %v575_v7 }
  0x16   : > { %581 = vmatpush.bf16.msra.mxu2 %v575_v7  ;;  %582 = vmatpush.bf16.msra.mxu3 %v575_v7 }
  0x18   : > { %569 = vmatmul.msk.bf16.vlgmr.msra.gmra.mxu0 %vm206_vm2, %v183_v11  ;;  %570 = vmatmul.msk.bf16.vlgmr.msra.gmra.mxu1 %vm206_vm2, %v184_v15 }
  0x19   : > { %571 = vmatmul.msk.bf16.vlgmr.msra.gmra.mxu2 %vm206_vm2, %v185_v16  ;;  %572 = vmatmul.msk.bf16.vlgmr.msra.gmra.mxu3 %vm206_vm2, %v186_v19 }
  0x95   : > { %v235_v21 = vpop.f32.mrf.mxu0  ;;  %v240_v22 = vpop.f32.mrf.mxu1 }
  0x96   : > { %v236_v23 = vadd.f32 %v682_v20, %v235_v21  ;;  %v241_v24 = vadd.f32 %v682_v20, %v240_v22 }
  0x98   : > { %v686_v25 = vmul.f32 0.70710677, %v236_v23  ;;  %v688_v26 = vmul.f32 0.70710677, %v241_v24  ;;  %v719_v5 = vmul.f32 0.5, %v236_v23  ;;  %v724_v10 = vmul.f32 0.5, %v241_v24 }
  0x9a   : > { %v271_v27 = vand.u32 2147483647, %v686_v25  ;;  %v273_v28 = vand.u32 2147483647, %v688_v26  ;;  %vm447_vm3 = vcmp.lt.f32.partialorder %v686_v25, 0.0  ;;  %vm449_vm4 = vcmp.lt.f32.partialorder %v688_v26, 0.0 }
  0x9c   : > { %v279_v29 = vmul.f32 0.3275911, %v271_v27  ;;  %v281_v30 = vmul.f32 0.3275911, %v273_v28  ;;  %v245_v31 = vpop.f32.mrf.mxu2  ;;  %v250_v32 = vpop.f32.mrf.mxu3  ;;  %v399_v41 = vsub.f32 0.0, %v271_v27  ;;  %v401_v45 = vsub.f32 0.0, %v273_v28 }
  0x9d   : > { %v246_v33 = vadd.f32 %v682_v20, %v245_v31  ;;  %v251_v34 = vadd.f32 %v682_v20, %v250_v32  ;;  %v237_v35 = vpop.f32.mrf.mxu0  ;;  %v242_v44 = vpop.f32.mrf.mxu1 }
  0x9e   : > { %v287_v36 = vadd.f32 1.0, %v279_v29  ;;  %v289_v37 = vadd.f32 1.0, %v281_v30  ;;  %v699_v40 = vadd.f32 %v682_v20, %v237_v35  ;;  %v710_v50 = vadd.f32 %v682_v20, %v242_v44 }
  0x9f   : > { %v694_v38 = vmul.f32 0.70710677, %v246_v33  ;;  %v696_v39 = vmul.f32 0.70710677, %v251_v34  ;;  %v407_v51 = vmul.f32 %v399_v41, %v271_v27  ;;  %v409_v57 = vmul.f32 %v401_v45, %v273_v28 }
  0xa0   : > { %593 = vrcp.f32 %v287_v36  ;;  %v704_v46 = vmul.f32 0.70710677, %v699_v40  ;;  %v714_v61 = vmul.f32 0.70710677, %v710_v50  ;;  %v726_v11 = vmul.f32 0.5, %v246_v33 }
  0xa1   : > { %595 = vrcp.f32 %v289_v37  ;;  %v275_v42 = vand.u32 2147483647, %v694_v38  ;;  %v277_v43 = vand.u32 2147483647, %v696_v39  ;;  %v415_v2 = vmul.f32 1.442695, %v407_v51 }
  0xa2   : > { %v707_v49 = vand.u32 2147483647, %v704_v46  ;;  %v419_v7 = vmul.f32 1.442695, %v409_v57  ;;  %v274_v8 = vand.u32 2147483647, %v714_v61 }
  0xa3   : > { %v283_v47 = vmul.f32 0.3275911, %v275_v42  ;;  %v285_v48 = vmul.f32 0.3275911, %v277_v43  ;;  %v403_v53 = vsub.f32 0.0, %v275_v42  ;;  %v405_v63 = vsub.f32 0.0, %v277_v43 }
  0xa4   : > { %v247_v55 = vpop.f32.mrf.mxu2  ;;  %v280_v58 = vmul.f32 0.3275911, %v707_v49  ;;  %v282_v14 = vmul.f32 0.3275911, %v274_v8  ;;  %v734_v19 = vmul.f32 0.5, %v251_v34  ;;  %v400_v29 = vsub.f32 0.0, %v707_v49  ;;  %v252_v31 = vpop.f32.mrf.mxu3 }
  0xa5   : > { %v291_v52 = vadd.f32 1.0, %v283_v47  ;;  %v293_v54 = vadd.f32 1.0, %v285_v48  ;;  %v717_v0 = vadd.f32 %v682_v20, %v247_v55  ;;  %v411_v3 = vmul.f32 %v403_v53, %v275_v42 }
  0xa6   : > { %v594_v56 = vpop.eup %593  ;;  %v288_v4 = vadd.f32 1.0, %v280_v58  ;;  %v413_v13 = vmul.f32 %v405_v63, %v277_v43  ;;  %v290_v24 = vadd.f32 1.0, %v282_v14  ;;  %v747_v45 = vadd.f32 %v682_v20, %v252_v31 }
  0xa7   : > { %v596_v59 = vpop.eup %595  ;;  %v303_v60 = vmul.f32 %v594_v56, %v287_v36  ;;  %597 = vrcp.f32 %v291_v52  ;;  %v731_v15 = vmul.f32 0.70710677, %v717_v0  ;;  %v423_v18 = vmul.f32 1.442695, %v411_v3 }
  0xa8   : > { %v305_v62 = vmul.f32 %v596_v59, %v289_v37  ;;  %599 = vrcp.f32 %v293_v54  ;;  %v427_v35 = vmul.f32 1.442695, %v413_v13  ;;  %vm451_vm6 = vcmp.lt.f32.partialorder %v694_v38, 0.0 }
  0xa9   : > { %v311_v1 = vsub.f32 2.0, %v303_v60  ;;  %601 = vrcp.f32 %v288_v4  ;;  %v739_v30 = vand.u32 2147483647, %v731_v15  ;;  %v408_v60 = vmul.f32 %v400_v29, %v707_v49 }
  0xaa   : > { %v313_v6 = vsub.f32 2.0, %v305_v62  ;;  %603 = vpow2.f32 %v415_v2  ;;  %v759_v2 = vmul.f32 0.70710677, %v747_v45  ;;  %vm453_vm7 = vcmp.lt.f32.partialorder %v696_v39, 0.0 }
  0xab   : > { %v722_v9 = vmul.f32 %v594_v56, %v311_v1  ;;  %605 = vpow2.f32 %v419_v7  ;;  %v284_v41 = vmul.f32 0.3275911, %v739_v30  ;;  %vm448_vm8 = vcmp.lt.f32.partialorder %v704_v46, 0.0 }
  0xac   : > { %v728_v12 = vmul.f32 %v596_v59, %v313_v6  ;;  %607 = vrcp.f32 %v290_v24  ;;  %vm450_vm9 = vcmp.lt.f32.partialorder %v714_v61, 0.0  ;;  %vm452_vm10 = vcmp.lt.f32.partialorder %v731_v15, 0.0 }
  0xad   : > { %v598_v16 = vpop.eup %597  ;;  %v327_v17 = vmul.f32 1.0614054, %v722_v9  ;;  %609 = vpow2.f32 %v423_v18  ;;  %v292_v53 = vadd.f32 1.0, %v284_v41  ;;  %vm454_vm11 = vcmp.lt.f32.partialorder %v759_v2, 0.0 }
  0xae   : > { %v600_v21 = vpop.eup %599  ;;  %v329_v22 = vmul.f32 1.0614054, %v728_v12  ;;  %v307_v23 = vmul.f32 %v598_v16, %v291_v52  ;;  %v402_v52 = vsub.f32 0.0, %v274_v8  ;;  %611 = vpow2.f32 %v427_v35 }
  0xaf   : > { %v335_v27 = vadd.f32 -1.4531521, %v327_v17  ;;  %v309_v28 = vmul.f32 %v600_v21, %v293_v54  ;;  %v602_v34 = vpop.eup %601  ;;  %613 = vrcp.f32 %v292_v53  ;;  %v766_v17 = vand.u32 2147483647, %v759_v2 }
  0xb0   : > { %v337_v32 = vadd.f32 -1.4531521, %v329_v22  ;;  %v315_v33 = vsub.f32 2.0, %v307_v23  ;;  %v304_v44 = vmul.f32 %v602_v34, %v288_v4  ;;  %v604_v47 = vpop.eup %603  ;;  %v410_v13 = vmul.f32 %v402_v52, %v274_v8 }
  0xb1   : > { %v343_v36 = vmul.f32 %v335_v27, %v722_v9  ;;  %v317_v37 = vsub.f32 2.0, %v309_v28  ;;  %v606_v54 = vpop.eup %605  ;;  %v417_v22 = vmul.f32 1.442695, %v408_v60  ;;  %v286_v8 = vmul.f32 0.3275911, %v766_v17 }
  0xb2   : > { %v345_v42 = vmul.f32 %v337_v32, %v728_v12  ;;  %v744_v43 = vmul.f32 %v598_v16, %v315_v33  ;;  %v312_v57 = vsub.f32 2.0, %v304_v44  ;;  %v608_v20 = vpop.eup %607 }
  0xb3   : > { %v351_v48 = vadd.f32 1.4214138, %v343_v36  ;;  %v749_v51 = vmul.f32 %v600_v21, %v317_v37  ;;  %v761_v3 = vpop.eup %609  ;;  %v306_v7 = vmul.f32 %v608_v20, %v290_v24 }
  0xb4   : > { %v353_v55 = vadd.f32 1.4214138, %v345_v42  ;;  %v331_v56 = vmul.f32 1.0614054, %v744_v43  ;;  %v756_v1 = vmul.f32 %v602_v34, %v312_v57  ;;  %v612_v27 = vpop.eup %611  ;;  %v421_v34 = vmul.f32 1.442695, %v410_v13 }
  0xb5   : > { %v359_v58 = vmul.f32 %v351_v48, %v722_v9  ;;  %v333_v59 = vmul.f32 1.0614054, %v749_v51  ;;  %v314_v23 = vsub.f32 2.0, %v306_v7  ;;  %v614_v31 = vpop.eup %613  ;;  %v404_v13 = vsub.f32 0.0, %v739_v30 }
  0xb6   : > { %v361_v62 = vmul.f32 %v353_v55, %v728_v12  ;;  %v339_v63 = vadd.f32 -1.4531521, %v331_v56  ;;  %v328_v49 = vmul.f32 1.0614054, %v756_v1  ;;  %v308_v42 = vmul.f32 %v614_v31, %v292_v53 }
  0xb7   : > { %v367_v4 = vadd.f32 -0.28449672, %v359_v58  ;;  %v341_v6 = vadd.f32 -1.4531521, %v333_v59  ;;  %v772_v35 = vmul.f32 %v608_v20, %v314_v23  ;;  %v294_v55 = vadd.f32 1.0, %v286_v8 }
  0xb8   : > { %v369_v14 = vadd.f32 -0.28449672, %v361_v62  ;;  %v347_v16 = vmul.f32 %v339_v63, %v744_v43  ;;  %v336_v24 = vadd.f32 -1.4531521, %v328_v49  ;;  %v316_v59 = vsub.f32 2.0, %v308_v42 }
  0xb9   : > { %v375_v18 = vmul.f32 %v367_v4, %v722_v9  ;;  %v349_v21 = vmul.f32 %v341_v6, %v749_v51  ;;  %v330_v52 = vmul.f32 1.0614054, %v772_v35  ;;  %615 = vrcp.f32 %v294_v55 }
  0xba   : > { %v377_v28 = vmul.f32 %v369_v14, %v728_v12  ;;  %v355_v29 = vadd.f32 1.4214138, %v347_v16  ;;  %v344_v41 = vmul.f32 %v336_v24, %v756_v1  ;;  %v784_v4 = vmul.f32 %v614_v31, %v316_v59 }
  0xbb   : > { %v383_v32 = vadd.f32 0.2548296, %v375_v18  ;;  %v357_v33 = vadd.f32 1.4214138, %v349_v21  ;;  %v338_v62 = vadd.f32 -1.4531521, %v330_v52  ;;  %617 = vpow2.f32 %v417_v22 }
  0xbc   : > { %v385_v36 = vadd.f32 0.2548296, %v377_v28  ;;  %v363_v37 = vmul.f32 %v355_v29, %v744_v43  ;;  %v352_v58 = vadd.f32 1.4214138, %v344_v41  ;;  %619 = vpow2.f32 %v421_v34 }
  0xbd   : > { %v391_v44 = vmul.f32 %v383_v32, %v722_v9  ;;  %v365_v48 = vmul.f32 %v357_v33, %v749_v51  ;;  %v332_v29 = vmul.f32 1.0614054, %v784_v4  ;;  %v412_v32 = vmul.f32 %v404_v13, %v739_v30 }
  0xbe   : > { %v393_v56 = vmul.f32 %v385_v36, %v728_v12  ;;  %v371_v57 = vadd.f32 -0.28449672, %v363_v37  ;;  %v360_v63 = vmul.f32 %v352_v58, %v756_v1  ;;  %v346_v12 = vmul.f32 %v338_v62, %v772_v35 }
  0xbf   : > { %v431_v60 = vmul.f32 %v604_v47, %v391_v44  ;;  %v373_v20 = vadd.f32 -0.28449672, %v365_v48  ;;  %v616_v24 = vpop.eup %615  ;;  %v340_v41 = vadd.f32 -1.4531521, %v332_v29 }
  0xc0   : > { %v433_v53 = vmul.f32 %v606_v54, %v393_v56  ;;  %v379_v9 = vmul.f32 %v371_v57, %v744_v43  ;;  %v368_v16 = vadd.f32 -0.28449672, %v360_v63  ;;  %v354_v18 = vadd.f32 1.4214138, %v346_v12 }
  0xc1   : > { %v439_v6 = vsub.f32 1.0, %v431_v60  ;;  %v381_v7 = vmul.f32 %v373_v20, %v749_v51  ;;  %v618_v30 = vpop.eup %617  ;;  %v348_v58 = vmul.f32 %v340_v41, %v784_v4  ;;  %v425_v60 = vmul.f32 1.442695, %v412_v32 }
  0xc2   : > { %v441_v14 = vsub.f32 1.0, %v433_v53  ;;  %v387_v47 = vadd.f32 0.2548296, %v379_v9  ;;  %v376_v28 = vmul.f32 %v368_v16, %v756_v1  ;;  %v362_v31 = vmul.f32 %v354_v18, %v772_v35  ;;  %v620_v48 = vpop.eup %619 }
  0xc3   : > { %v455_v49 = vsub.f32 0.0, %v439_v6  ;;  %v389_v54 = vadd.f32 0.2548296, %v381_v7  ;;  %v406_v9 = vsub.f32 0.0, %v766_v17  ;;  %621 = vpow2.f32 %v425_v60 }
  0xc4   : > { %v457_v21 = vsub.f32 0.0, %v441_v14  ;;  %v395_v23 = vmul.f32 %v387_v47, %v744_v43  ;;  %v384_v36 = vadd.f32 0.2548296, %v376_v28  ;;  %v370_v37 = vadd.f32 -0.28449672, %v362_v31 }
  0xc5   : > { %v463_v22 = vsel %vm447_vm3, %v455_v49, %v439_v6  ;;  %v397_v8 = vmul.f32 %v389_v54, %v749_v51  ;;  %v414_v28 = vmul.f32 %v406_v9, %v766_v17 }
  0xc6   : > { %v471_v33 = vadd.f32 1.0, %v463_v22  ;;  %v465_v43 = vsel %vm449_vm4, %v457_v21, %v441_v14  ;;  %v435_v34 = vmul.f32 %v761_v3, %v395_v23  ;;  %v392_v44 = vmul.f32 %v384_v36, %v756_v1 }
  0xc7   : > { %v473_v25 = vadd.f32 1.0, %v465_v43  ;;  %v437_v51 = vmul.f32 %v612_v27, %v397_v8  ;;  %v310_v3 = vmul.f32 %v616_v24, %v294_v55  ;;  %v378_v57 = vmul.f32 %v370_v37, %v772_v35 }
  0xc8   : > { %v479_v42 = vmul.f32 %v471_v33, %v719_v5  ;;  %v443_v26 = vsub.f32 1.0, %v435_v34  ;;  %v432_v59 = vmul.f32 %v618_v30, %v392_v44  ;;  %v356_v1 = vadd.f32 1.4214138, %v348_v58 }
  0xc9   : > { %v481_v52 = vmul.f32 %v473_v25, %v724_v10  ;;  %v445_v56 = vsub.f32 1.0, %v437_v51  ;;  %v318_v20 = vsub.f32 2.0, %v310_v3  ;;  %v386_v62 = vadd.f32 0.2548296, %v378_v57  ;;  %v622_v32 = vpop.eup %621 }
  0xca   : > { %488 = vst.msk [vmem:[%s807_s29] sm:$0xff] %vm487_vm5, %v479_v42  ;;  %v459_v27 = vsub.f32 0.0, %v443_v26  ;;  %v440_v10 = vsub.f32 1.0, %v432_v59  ;;  %v364_v12 = vmul.f32 %v356_v1, %v784_v4  ;;  %v256_v14 = vmul.f32 0.5, %v699_v40 }
  0xcb   : > { %490 = vst.msk [vmem:[%s807_s29 + $0x10] sm:$0xff] %vm487_vm5, %v481_v52  ;;  %v461_v5 = vsub.f32 0.0, %v445_v56  ;;  %v326_v53 = vmul.f32 %v616_v24, %v318_v20  ;;  %v394_v7 = vmul.f32 %v386_v62, %v772_v35  ;;  %v429_v31 = vmul.f32 1.442695, %v414_v28 }
  0xcc   : > { %v467_v55 = vsel %vm451_vm6, %v459_v27, %v443_v26  ;;  %v456_v47 = vsub.f32 0.0, %v440_v10  ;;  %v372_v54 = vadd.f32 -0.28449672, %v364_v12  ;;  %v258_v33 = vmul.f32 0.5, %v710_v50 }
  0xcd   : > { %v475_v63 = vadd.f32 1.0, %v467_v55  ;;  %v469_v6 = vsel %vm453_vm7, %v461_v5, %v445_v56  ;;  %v334_v38 = vmul.f32 1.0614054, %v326_v53  ;;  %v434_v49 = vmul.f32 %v620_v48, %v394_v7 }
  0xce   : > { %v477_v13 = vadd.f32 1.0, %v469_v6  ;;  %v464_v18 = vsel %vm448_vm8, %v456_v47, %v440_v10  ;;  %v380_v40 = vmul.f32 %v372_v54, %v784_v4  ;;  %623 = vpow2.f32 %v429_v31 }
  0xcf   : > { %v483_v16 = vmul.f32 %v475_v63, %v726_v11  ;;  %v342_v35 = vadd.f32 -1.4531521, %v334_v38  ;;  %v472_v21 = vadd.f32 1.0, %v464_v18  ;;  %v442_v23 = vsub.f32 1.0, %v434_v49 }
  0xd0   : > { %v485_v39 = vmul.f32 %v477_v13, %v734_v19  ;;  %v388_v24 = vadd.f32 0.2548296, %v380_v40  ;;  %v260_v30 = vmul.f32 0.5, %v717_v0  ;;  %v262_v57 = vmul.f32 0.5, %v747_v45 }
  0xd1   : > { %492 = vst.msk [vmem:[%s807_s29 + $0x20] sm:$0xff] %vm487_vm5, %v483_v16  ;;  %v350_v11 = vmul.f32 %v342_v35, %v326_v53  ;;  %v480_v46 = vmul.f32 %v472_v21, %v256_v14  ;;  %v458_v29 = vsub.f32 0.0, %v442_v23 }
  0xd2   : > { %494 = vst.msk [vmem:[%s807_s29 + $0x30] sm:$0xff] %vm487_vm5, %v485_v39  ;;  %v396_v8 = vmul.f32 %v388_v24, %v784_v4 }
  0xd3   : > { %v358_v19 = vadd.f32 1.4214138, %v350_v11  ;;  %489 = vst.msk [vmem:[%s807_s29 + $0x8] sm:$0xff] %vm487_vm5, %v480_v46  ;;  %v466_v22 = vsel %vm450_vm9, %v458_v29, %v442_v23 }
  0xd4   : > { %v474_v17 = vadd.f32 1.0, %v466_v22  ;;  %v436_v34 = vmul.f32 %v622_v32, %v396_v8  ;;  %v624_v26 = vpop.eup %623 }
  0xd5   : > { %v366_v43 = vmul.f32 %v358_v19, %v326_v53 }
  0xd6   : > { %v482_v36 = vmul.f32 %v474_v17, %v258_v33  ;;  %v444_v51 = vsub.f32 1.0, %v436_v34 }
  0xd7   : > { %v374_v25 = vadd.f32 -0.28449672, %v366_v43 }
  0xd8   : > { %491 = vst.msk [vmem:[%s807_s29 + $0x18] sm:$0xff] %vm487_vm5, %v482_v36  ;;  %v460_v37 = vsub.f32 0.0, %v444_v51 }
  0xd9   : > { %v382_v61 = vmul.f32 %v374_v25, %v326_v53 }
  0xda   : > { %v468_v4 = vsel %vm452_vm10, %v460_v37, %v444_v51 }
  0xdb   : > { %v390_v41 = vadd.f32 0.2548296, %v382_v61  ;;  %v476_v50 = vadd.f32 1.0, %v468_v4 }
  0xdd   : > { %v398_v42 = vmul.f32 %v390_v41, %v326_v53  ;;  %v484_v44 = vmul.f32 %v476_v50, %v260_v30 }
  0xdf   : > { %v438_v3 = vmul.f32 %v624_v26, %v398_v42  ;;  %493 = vst.msk [vmem:[%s807_s29 + $0x28] sm:$0xff] %vm487_vm5, %v484_v44 }
  0xe1   : > { %v446_v48 = vsub.f32 1.0, %v438_v3 }
  0xe3   : > { %v462_v52 = vsub.f32 0.0, %v446_v48 }
  0xe5   : > { %v470_v56 = vsel %vm454_vm11, %v462_v52, %v446_v48 }
  0xe6   : > { %v478_v15 = vadd.f32 1.0, %v470_v56 }
  0xe8   : > { %v486_v58 = vmul.f32 %v478_v15, %v262_v57 }
  0xea   : > { %495 = vst.msk [vmem:[%s807_s29 + $0x38] sm:$0xff] %vm487_vm5, %v486_v58 }
  0xeb PF: > { %s13_s12 = sadd.s32 1, %s631_s12  }
  0xec   : > { %p10_p4 = scmp.ge.s32.totalorder %s13_s12, 4  }
  0xee   :  { %12 = sbr.rel (!%p10_p4) target bundleno = 1 (0x1), region = 62 }

// kernel: lorentz_vit_forward.7
= control target key start
LH: loop header
LB: loop body
LE: loop exit
PB: predicated region body
PF: predicated region fallthrough
CT: control target
= control target key end

     0   :  { %s913_s12 = smov 0   ;;  %s1057_s0 = inlined_call_operand.vmem [shape: f32[32,576], index: 0, kind: input, shape index: {}]   ;;  %s1058_s1 = inlined_call_operand.vmem [shape: bf16[576,128], index: 1, kind: input, shape index: {}]   ;;  %s1059_s2 = inlined_call_operand.vmem [shape: f32[1,128], index: 2, kind: input, shape index: {}]   ;;  %s1060_s3 = inlined_call_operand.vmem [shape: f32[32,128], index: 3, kind: output, shape index: {}]  }
   0x1 LB: > { %s675_s13 = sadd.s32 4294967295, %s891_s12   ;;  %p679_p0 = scmp.ge.s32.totalorder %s891_s12, 1  ;;  %s891_s12 = sphi %s913_s12, %s13_s12  }
   0x2   : > { %p139_p1 = scmp.lt.s32.totalorder %s891_s12, 3 }
   0x4   : > { %p140_p2 = pnand %p679_p0, %p139_p1 }
   0x5   : > { %s680_s11 = sshll.u32 (!%p140_p2), %s675_s13, 1 }
   0x6   : > { %143 = sbr.rel (%p140_p2) target bundleno = 246 (0xf6), region = 32  ;;  %p165_p3 = scmp.lt.s32.totalorder (!%p140_p2), %s680_s11, 3 }
   0xb   : > { %v838_v0 = vld [vmem:[%s1058_s1 + $0x38] sm:$0xff]  ;;  %v837_v4 = vld [vmem:[%s1058_s1 + $0x30] sm:$0xff]  ;;  %v836_v8 = vld [vmem:[%s1058_s1 + $0x28] sm:$0xff]  ;;  %s1062_s11 = smov (!%p165_p3, %s680_s11), 3  ;;  %vm485_vm0 = vcmask 523264  }
   0xc   : > { %v854_v1 = vld [vmem:[%s1058_s1 + $0xb8] sm:$0xff]  ;;  %489 = vmatpush.bf16.msra.mxu0 %v838_v0  ;;  %v853_v5 = vld [vmem:[%s1058_s1 + $0xb0] sm:$0xff]  ;;  %v852_v9 = vld [vmem:[%s1058_s1 + $0xa8] sm:$0xff]  ;;  %s867_s6 = smul.u32 40, %s1062_s11  ;;  %s683_s18 = sshll.u32 %s1062_s11, 3 }
   0xd   : > { %v862_v2 = vld [vmem:[%s1058_s1 + $0xf8] sm:$0xff]  ;;  %517 = vmatpush.bf16.msra.mxu2 %v854_v1  ;;  %v861_v6 = vld [vmem:[%s1058_s1 + $0xf0] sm:$0xff]  ;;  %v860_v10 = vld [vmem:[%s1058_s1 + $0xe8] sm:$0xff]  ;;  %s175_s21 = scalar_lea.vmem %s1060_s3, %s683_s18 }
   0xe   : > { %v846_v3 = vld [vmem:[%s1058_s1 + $0x78] sm:$0xff]  ;;  %531 = vmatpush.bf16.msra.mxu3 %v862_v2  ;;  %v845_v7 = vld [vmem:[%s1058_s1 + $0x70] sm:$0xff]  ;;  %v844_v11 = vld [vmem:[%s1058_s1 + $0x68] sm:$0xff]  ;;  %s1005_s20 = scalar_lea.vmem %s1057_s0, %s867_s6 }
   0xf   : > { %503 = vmatpush.bf16.msra.mxu1 %v846_v3  ;;  %v835_v12 = vld [vmem:[%s1058_s1 + $0x20] sm:$0xff]  ;;  %v834_v16 = vld [vmem:[%s1058_s1 + $0x18] sm:$0xff]  ;;  %v833_v20 = vld [vmem:[%s1058_s1 + $0x10] sm:$0xff] }
  0x10   : > { %490 = vmatpush.bf16.msra.mxu0 %v837_v4  ;;  %v851_v13 = vld [vmem:[%s1058_s1 + $0xa0] sm:$0xff]  ;;  %v850_v17 = vld [vmem:[%s1058_s1 + $0x98] sm:$0xff]  ;;  %v849_v21 = vld [vmem:[%s1058_s1 + $0x90] sm:$0xff] }
  0x11   : > { %518 = vmatpush.bf16.msra.mxu2 %v853_v5  ;;  %v859_v14 = vld [vmem:[%s1058_s1 + $0xe0] sm:$0xff]  ;;  %v858_v18 = vld [vmem:[%s1058_s1 + $0xd8] sm:$0xff]  ;;  %v857_v22 = vld [vmem:[%s1058_s1 + $0xd0] sm:$0xff] }
  0x12   : > { %532 = vmatpush.bf16.msra.mxu3 %v861_v6  ;;  %v843_v15 = vld [vmem:[%s1058_s1 + $0x60] sm:$0xff]  ;;  %v842_v19 = vld [vmem:[%s1058_s1 + $0x58] sm:$0xff]  ;;  %v841_v23 = vld [vmem:[%s1058_s1 + $0x50] sm:$0xff] }
  0x13   : > { %504 = vmatpush.bf16.msra.mxu1 %v845_v7  ;;  %v832_v24 = vld [vmem:[%s1058_s1 + $0x8] sm:$0xff]  ;;  %v831_v28 = vld [vmem:[%s1058_s1] sm:$0xff]  ;;  %v180_v34 = vld [vmem:[%s1005_s20 + $0x10] sm:$0xff] }
  0x14   : > { %491 = vmatpush.bf16.msra.mxu0 %v836_v8  ;;  %v848_v25 = vld [vmem:[%s1058_s1 + $0x88] sm:$0xff]  ;;  %v847_v29 = vld [vmem:[%s1058_s1 + $0x80] sm:$0xff]  ;;  %v185_v35 = vld [vmem:[%s1005_s20 + $0x38] sm:$0xff] }
  0x15   : > { %519 = vmatpush.bf16.msra.mxu2 %v852_v9  ;;  %v856_v26 = vld [vmem:[%s1058_s1 + $0xc8] sm:$0xff]  ;;  %v855_v30 = vld [vmem:[%s1058_s1 + $0xc0] sm:$0xff]  ;;  %v181_v36 = vld [vmem:[%s1005_s20 + $0x18] sm:$0xff]  ;;  %v190_v42 = vpack.c.bf16 %v185_v35, %v180_v34 }
  0x16   : > { %533 = vmatpush.bf16.msra.mxu3 %v860_v10  ;;  %v840_v27 = vld [vmem:[%s1058_s1 + $0x48] sm:$0xff]  ;;  %v839_v31 = vld [vmem:[%s1058_s1 + $0x40] sm:$0xff]  ;;  %v184_v39 = vld [vmem:[%s1005_s20 + $0x30] sm:$0xff] }
  0x17   : > { %505 = vmatpush.bf16.msra.mxu1 %v844_v11  ;;  %v178_v32 = vld [vmem:[%s1005_s20] sm:$0xff]  ;;  %v183_v33 = vld [vmem:[%s1005_s20 + $0x28] sm:$0xff]  ;;  %v866_v40 = vld [vmem:[%s1058_s1 + $0x118] sm:$0xff] }
  0x18   : > { %492 = vmatpush.bf16.msra.mxu0 %v835_v12  ;;  %v186_v37 = vld [vmem:[%s1005_s20 + $0x40] sm:$0xff]  ;;  %v179_v38 = vld [vmem:[%s1005_s20 + $0x8] sm:$0xff]  ;;  %v188_v41 = vpack.c.bf16 %v183_v33, %v178_v32  ;;  %v865_v45 = vld [vmem:[%s1058_s1 + $0x110] sm:$0xff] }
  0x19   : > { %520 = vmatpush.bf16.msra.mxu2 %v851_v13  ;;  %v191_v43 = vpack.c.bf16 %v186_v37, %v181_v36  ;;  %v189_v44 = vpack.c.bf16 %v184_v39, %v179_v38  ;;  %v864_v46 = vld [vmem:[%s1058_s1 + $0x108] sm:$0xff]  ;;  %v863_v47 = vld [vmem:[%s1058_s1 + $0x100] sm:$0xff] }
  0x1a   : > { %534 = vmatpush.bf16.msra.mxu3 %v859_v14  ;;  %v182_v48 = vld [vmem:[%s1005_s20 + $0x20] sm:$0xff]  ;;  %v187_v49 = vld [vmem:[%s1005_s20 + $0x48] sm:$0xff] }
  0x1b   : > { %506 = vmatpush.bf16.msra.mxu1 %v843_v15  ;;  %v192_v50 = vpack.c.bf16 %v187_v49, %v182_v48  ;;  %v876_v52 = vld [vmem:[%s1059_s2] ss:$0 sm:$0xff] }
  0x1c   : > { %493 = vmatpush.bf16.msra.mxu0 %v834_v16 }
  0x1d   : > { %521 = vmatpush.bf16.msra.mxu2 %v850_v17 }
  0x1e   : > { %535 = vmatpush.bf16.msra.mxu3 %v858_v18 }
  0x1f   : > { %507 = vmatpush.bf16.msra.mxu1 %v842_v19 }
  0x20   : > { %494 = vmatpush.bf16.msra.mxu0 %v833_v20 }
  0x21   : > { %522 = vmatpush.bf16.msra.mxu2 %v849_v21 }
  0x22   : > { %536 = vmatpush.bf16.msra.mxu3 %v857_v22 }
  0x23   : > { %508 = vmatpush.bf16.msra.mxu1 %v841_v23 }
  0x24   : > { %495 = vmatpush.bf16.msra.mxu0 %v832_v24 }
  0x25   : > { %523 = vmatpush.bf16.msra.mxu2 %v848_v25 }
  0x26   : > { %537 = vmatpush.bf16.msra.mxu3 %v856_v26 }
  0x27   : > { %509 = vmatpush.bf16.msra.mxu1 %v840_v27 }
  0x28   : > { %496 = vmatpush.bf16.msra.mxu0 %v831_v28 }
  0x29   : > { %524 = vmatpush.bf16.msra.mxu2 %v847_v29 }
  0x2a   : > { %538 = vmatpush.bf16.msra.mxu3 %v855_v30 }
  0x2b   : > { %510 = vmatpush.bf16.msra.mxu1 %v839_v31  ;;  %497 = vmatmul.bf16.vlgmr.msra.gmra.mxu0 %v188_v41 }
  0x2c   : > { %549 = vmatpush.bf16.msrb.mxu0 %v866_v40  ;;  %525 = vmatmul.bf16.vlgmr.msra.gmra.mxu2 %v190_v42 }
  0x2d   : > { %539 = vmatmul.bf16.vlgmr.msra.gmra.mxu3 %v191_v43 }
  0x2e   : > { %511 = vmatmul.bf16.vlgmr.msra.gmra.mxu1 %v189_v44 }
  0x30   : > { %550 = vmatpush.bf16.msrb.mxu0 %v865_v45 }
  0x34   : > { %551 = vmatpush.bf16.msrb.mxu0 %v864_v46 }
  0x38   : > { %552 = vmatpush.bf16.msrb.mxu0 %v863_v47 }
  0x3b   : > { %828 = vmatmul.msk.bf16.vlgmr.msrb.gmra.mxu0 %vm485_vm0, %v192_v50 }
  0xa8   : > { %v498_v51 = vpop.f32.mrf.mxu0 }
  0xa9   : > { %v499_v54 = vadd.f32 %v876_v52, %v498_v51 }
  0xab   : > { %v512_v53 = vpop.f32.mrf.mxu1 }
  0xac   : > { %v513_v57 = vadd.f32 %v512_v53, %v499_v54 }
  0xaf   : > { %v526_v55 = vpop.f32.mrf.mxu2 }
  0xb0   : > { %v500_v56 = vpop.f32.mrf.mxu0  ;;  %v527_v58 = vadd.f32 %v526_v55, %v513_v57  ;;  %v540_v59 = vpop.f32.mrf.mxu3 }
  0xb1   : > { %v501_v60 = vadd.f32 %v876_v52, %v500_v56 }
  0xb2   : > { %v541_v62 = vadd.f32 %v540_v59, %v527_v58 }
  0xb3   : > { %v514_v61 = vpop.f32.mrf.mxu1 }
  0xb4   : > { %v515_v1 = vadd.f32 %v514_v61, %v501_v60 }
  0xb7   : > { %v528_v63 = vpop.f32.mrf.mxu2 }
  0xb8   : > { %v554_v0 = vpop.f32.mrf.mxu0  ;;  %v529_v3 = vadd.f32 %v528_v63, %v515_v1  ;;  %v542_v6 = vpop.f32.mrf.mxu3 }
  0xb9   : > { %v555_v2 = vadd.f32 %v554_v0, %v541_v62 }
  0xba   : > { %v543_v7 = vadd.f32 %v542_v6, %v529_v3 }
  0xbb   : > { %v561_v4 = vmul.f32 0.70710677, %v555_v2  ;;  %v559_v54 = vmul.f32 0.5, %v555_v2 }
  0xbd   : > { %v563_v5 = vand.u32 2147483647, %v561_v4  ;;  %vm607_vm1 = vcmp.lt.f32.partialorder %v561_v4, 0.0 }
  0xbf   : > { %v565_v8 = vmul.f32 0.3275911, %v563_v5  ;;  %v595_v20 = vsub.f32 0.0, %v563_v5 }
  0xc0   : > { %v556_v9 = vpop.f32.mrf.mxu0 }
  0xc1   : > { %v567_v10 = vadd.f32 1.0, %v565_v8  ;;  %v557_v11 = vadd.f32 %v556_v9, %v543_v7  ;;  %v597_v25 = vmul.f32 %v595_v20, %v563_v5 }
  0xc3   : > { %877 = vrcp.f32 %v567_v10  ;;  %v562_v12 = vmul.f32 0.70710677, %v557_v11  ;;  %v599_v30 = vmul.f32 1.442695, %v597_v25  ;;  %v560_v61 = vmul.f32 0.5, %v557_v11 }
  0xc5   : > { %v564_v13 = vand.u32 2147483647, %v562_v12  ;;  %vm608_vm2 = vcmp.lt.f32.partialorder %v562_v12, 0.0 }
  0xc7   : > { %v566_v14 = vmul.f32 0.3275911, %v564_v13  ;;  %v596_v31 = vsub.f32 0.0, %v564_v13 }
  0xc9   : > { %v878_v15 = vpop.eup %877  ;;  %v568_v16 = vadd.f32 1.0, %v566_v14  ;;  %v598_v36 = vmul.f32 %v596_v31, %v564_v13 }
  0xca   : > { %v571_v17 = vmul.f32 %v878_v15, %v567_v10 }
  0xcb   : > { %879 = vrcp.f32 %v568_v16  ;;  %v601_v41 = vmul.f32 1.442695, %v598_v36 }
  0xcc   : > { %v573_v18 = vsub.f32 2.0, %v571_v17  ;;  %881 = vpow2.f32 %v599_v30 }
  0xcd   : > { %883 = vpow2.f32 %v601_v41 }
  0xce   : > { %v575_v19 = vmul.f32 %v878_v15, %v573_v18 }
  0xd0   : > { %v577_v21 = vmul.f32 1.0614054, %v575_v19 }
  0xd1   : > { %v880_v22 = vpop.eup %879 }
  0xd2   : > { %v579_v23 = vadd.f32 -1.4531521, %v577_v21  ;;  %v572_v24 = vmul.f32 %v880_v22, %v568_v16  ;;  %v882_v44 = vpop.eup %881 }
  0xd3   : > { %v884_v53 = vpop.eup %883 }
  0xd4   : > { %v581_v26 = vmul.f32 %v579_v23, %v575_v19  ;;  %v574_v27 = vsub.f32 2.0, %v572_v24 }
  0xd6   : > { %v583_v28 = vadd.f32 1.4214138, %v581_v26  ;;  %v576_v29 = vmul.f32 %v880_v22, %v574_v27 }
  0xd8   : > { %v585_v32 = vmul.f32 %v583_v28, %v575_v19  ;;  %v578_v33 = vmul.f32 1.0614054, %v576_v29 }
  0xda   : > { %v587_v34 = vadd.f32 -0.28449672, %v585_v32  ;;  %v580_v35 = vadd.f32 -1.4531521, %v578_v33 }
  0xdc   : > { %v589_v37 = vmul.f32 %v587_v34, %v575_v19  ;;  %v582_v38 = vmul.f32 %v580_v35, %v576_v29 }
  0xde   : > { %v591_v39 = vadd.f32 0.2548296, %v589_v37  ;;  %v584_v40 = vadd.f32 1.4214138, %v582_v38 }
  0xe0   : > { %v593_v42 = vmul.f32 %v591_v39, %v575_v19  ;;  %v586_v43 = vmul.f32 %v584_v40, %v576_v29 }
  0xe2   : > { %v603_v45 = vmul.f32 %v882_v44, %v593_v42  ;;  %v588_v46 = vadd.f32 -0.28449672, %v586_v43 }
  0xe4   : > { %v605_v47 = vsub.f32 1.0, %v603_v45  ;;  %v590_v48 = vmul.f32 %v588_v46, %v576_v29 }
  0xe6   : > { %v609_v49 = vsub.f32 0.0, %v605_v47  ;;  %v592_v50 = vadd.f32 0.2548296, %v590_v48 }
  0xe8   : > { %v611_v51 = vsel %vm607_vm1, %v609_v49, %v605_v47  ;;  %v594_v52 = vmul.f32 %v592_v50, %v576_v29 }
  0xe9   : > { %v613_v55 = vadd.f32 1.0, %v611_v51 }
  0xea   : > { %v604_v56 = vmul.f32 %v884_v53, %v594_v52 }
  0xeb   : > { %v615_v57 = vmul.f32 %v613_v55, %v559_v54 }
  0xec   : > { %v606_v58 = vsub.f32 1.0, %v604_v56 }
  0xed   : > { %617 = vst [vmem:[%s175_s21] sm:$0xff] %v615_v57 }
  0xee   : > { %v610_v59 = vsub.f32 0.0, %v606_v58 }
  0xf0   : > { %v612_v60 = vsel %vm608_vm2, %v610_v59, %v606_v58 }
  0xf1   : > { %v614_v62 = vadd.f32 1.0, %v612_v60 }
  0xf3   : > { %v616_v63 = vmul.f32 %v614_v62, %v560_v61 }
  0xf5   : > { %618 = vst [vmem:[%s175_s21 + $0x8] sm:$0xff] %v616_v63 }
  0xf6 PF: > { %s13_s12 = sadd.s32 1, %s891_s12  }
  0xf7   : > { %p10_p4 = scmp.ge.s32.totalorder %s13_s12, 4  }
  0xf9   :  { %12 = sbr.rel (!%p10_p4) target bundleno = 1 (0x1), region = 62 }

// kernel: lorentz_vit_forward.11
= control target key start
LH: loop header
LB: loop body
LE: loop exit
PB: predicated region body
PF: predicated region fallthrough
CT: control target
= control target key end

     0   :  { %v135_v5 = vmov 16.0   ;;  %s181_s0 = inlined_call_operand.vmem [shape: f32[2,16,128], index: 0, kind: input, shape index: {}]   ;;  %s182_s1 = inlined_call_operand.vmem [shape: f32[10,128], index: 1, kind: input, shape index: {}]   ;;  %s183_s2 = inlined_call_operand.vmem [shape: f32[1,10], index: 2, kind: input, shape index: {}]   ;;  %s184_s3 = inlined_call_operand.hbm [shape: f32[2,10], index: 3, kind: output, shape index: {}]  }
   0x1   :  { %v58_v0 = vld [vmem:[%s182_s1 + $0x8] sm:$0x3]  ;;  %v15_v1 = vld [vmem:[%s181_s0] sm:$0xff]  ;;  %v17_v3 = vld [vmem:[%s181_s0 + $0x10] sm:$0xff]  ;;  %107 = vrcp.f32 %v135_v5 }
   0x2   :  { %73 = vmatpush.xpose.msra.mxu0 %v58_v0  ;;  %v16_v2 = vld [vmem:[%s181_s0 + $0x8] sm:$0xff]  ;;  %v18_v4 = vld [vmem:[%s181_s0 + $0x18] sm:$0xff]  ;;  %v57_v6 = vld [vmem:[%s182_s1] sm:$0xff] }
   0x3   :  { %v19_v7 = vadd.f32 %v16_v2, %v15_v1  ;;  %v26_v8 = vadd.f32 %v18_v4, %v17_v3 }
   0x4   :  { %8 = vsyncpa [#allocation3], 0  ;;  %v42_v20 = vlaneseq  ;;  %vm49_vm1 = vcmask 1041409   ;;  %v106_v38 = vld [vmem:[%s183_s2] ss:$0 sm:$0xff]  ;;  %s136_s24 = smov [#allocation2]  }
   0x5   :  { %v20_v9 = vrot.slane %v19_v7, 4  ;;  %v27_v10 = vrot.slane %v26_v8, 4  ;;  %s93_s25 = sshll.u32 %s136_s24, 4  ;;  %s95_s28 = sshll.u32 %s184_s3, 4  ;;  %vm86_vm3 = vcmask 74752   ;;  %s94_s25 = int_to_ptr.vmem [resolvable:$true] %s93_s25  ;;  %s96_s28 = int_to_ptr.hbm [resolvable:$true] %s95_s28 }
   0x6   :  { %74 = vmatpush.xpose.msra.mxu0 %v57_v6  ;;  %v43_v27 = vand.u32 127, %v42_v20 }
   0x7   :  { %v21_v11 = vadd.f32 %v20_v9, %v19_v7  ;;  %v28_v12 = vadd.f32 %v27_v10, %v26_v8  ;;  %v108_v13 = vpop.eup %107 }
   0x8   :  { %v34_v16 = vmul.f32 16.0, %v108_v13  ;;  %vm38_vm0 = vweird.f32 %v108_v13  ;;  %vm44_vm2 = vcmp.eq.s32.totalorder %v43_v27, 0 }
   0x9   :  { %v22_v14 = vrot.slane %v21_v11, 2  ;;  %v29_v15 = vrot.slane %v28_v12, 2 }
   0xa   :  { %v35_v19 = vsub.f32 1.0, %v34_v16 }
   0xb   :  { %v23_v17 = vadd.f32 %v22_v14, %v21_v11  ;;  %v30_v18 = vadd.f32 %v29_v15, %v28_v12 }
   0xc   :  { %v36_v23 = vmul.f32 %v108_v13, %v35_v19 }
   0xd   :  { %v24_v21 = vrot.slane %v23_v17, 1  ;;  %v31_v22 = vrot.slane %v30_v18, 1 }
   0xe   :  { %v37_v26 = vadd.f32 %v108_v13, %v36_v23 }
   0xf   :  { %v25_v24 = vadd.f32 %v24_v21, %v23_v17  ;;  %v32_v25 = vadd.f32 %v31_v22, %v30_v18 }
  0x10   :  { %v39_v28 = vsel %vm38_vm0, %v108_v13, %v37_v26 }
  0x11   :  { %v40_v29 = vmul.f32 %v39_v28, %v25_v24  ;;  %v41_v30 = vmul.f32 %v39_v28, %v32_v25 }
  0x13   :  { %v45_v31 = vsub.f32 0.0, %v40_v29  ;;  %v46_v32 = vsub.f32 0.0, %v41_v30  ;;  %v54_v33 = vsel %vm49_vm1, %v41_v30, %v40_v29 }
  0x15   :  { %v50_v34 = vsel %vm49_vm1, %v46_v32, %v45_v31 }
  0x16   :  { %v56_v35 = vsel %vm44_vm2, %v50_v34, %v54_v33 }
  0x17   :  { %75 = vmatmul.f32.vlgmr.msra.gmra.mxu0 %v56_v35 }
  0x94   :  { %v76_v36 = vpop.f32.mrf.mxu0 }
  0x95   :  { %v79_v37 = vmul.f32 2.0, %v76_v36 }
  0x97   :  { %v80_v39 = vadd.f32 2.0, %v79_v37 }
  0x99   :  { %v85_v40 = vadd.f32 %v106_v38, %v80_v39 }
  0x9b   :  { %87 = vst.msk [vmem:[#allocation2] sm:$0x3] %vm86_vm3, %v85_v40 }
  0x9c   :  { %98 = dma.vmem_to_hbm [thread:$0]  %s94_s25, 32, %s96_s28, [#allocation3]  }
  0x9d   :  { %133 = dma.done.wait [#allocation3], 32  }
  0x9e   :  { %134 = vsyncadd [#allocation3], 4294967264 }
  0x9f   :  { %103 = vsyncpa [#allocation3], 1 }

// kernel: lorentz_vit_forward.8
= control target key start
LH: loop header
LB: loop body
LE: loop exit
PB: predicated region body
PF: predicated region fallthrough
CT: control target
= control target key end

     0   :  { %s1557_s12 = smov 0   ;;  %s1859_s0 = inlined_call_operand.vmem [shape: f32[32,1152], index: 0, kind: input, shape index: {}]   ;;  %s1860_s1 = inlined_call_operand.vmem [shape: bf16[1152,128], index: 1, kind: input, shape index: {}]   ;;  %s1861_s2 = inlined_call_operand.vmem [shape: f32[1,128], index: 2, kind: input, shape index: {}]   ;;  %s1862_s3 = inlined_call_operand.vmem [shape: f32[32,128], index: 3, kind: output, shape index: {}]  }
   0x1 LB: > { %s1123_s13 = sadd.s32 4294967295, %s1534_s12   ;;  %p1127_p0 = scmp.ge.s32.totalorder %s1534_s12, 1  ;;  %s1534_s12 = sphi %s1557_s12, %s13_s12  }
   0x2   : > { %p139_p1 = scmp.lt.s32.totalorder %s1534_s12, 3 }
   0x4   : > { %p140_p2 = pnand %p1127_p0, %p139_p1 }
   0x5   : > { %s1128_s11 = sshll.u32 (!%p140_p2), %s1123_s13, 1 }
   0x6   : > { %143 = sbr.rel (%p140_p2) target bundleno = 526 (0x20e), region = 32  ;;  %p165_p3 = scmp.lt.s32.totalorder (!%p140_p2), %s1128_s11, 3 }
   0xb   : > { %v1429_v0 = vld [vmem:[%s1860_s1 + $0x38] sm:$0xff]  ;;  %v1428_v4 = vld [vmem:[%s1860_s1 + $0x30] sm:$0xff]  ;;  %v1427_v8 = vld [vmem:[%s1860_s1 + $0x28] sm:$0xff]  ;;  %s1864_s11 = smov (!%p165_p3, %s1128_s11), 3 }
   0xc   : > { %v1445_v1 = vld [vmem:[%s1860_s1 + $0xb8] sm:$0xff]  ;;  %784 = vmatpush.bf16.msra.mxu0 %v1429_v0  ;;  %v1444_v5 = vld [vmem:[%s1860_s1 + $0xb0] sm:$0xff]  ;;  %v1443_v9 = vld [vmem:[%s1860_s1 + $0xa8] sm:$0xff]  ;;  %s1494_s10 = smul.u32 72, %s1864_s11 }
   0xd   : > { %v1437_v2 = vld [vmem:[%s1860_s1 + $0x78] sm:$0xff]  ;;  %812 = vmatpush.bf16.msra.mxu2 %v1445_v1  ;;  %v1436_v6 = vld [vmem:[%s1860_s1 + $0x70] sm:$0xff]  ;;  %v1435_v10 = vld [vmem:[%s1860_s1 + $0x68] sm:$0xff] }
   0xe   : > { %v1453_v3 = vld [vmem:[%s1860_s1 + $0xf8] sm:$0xff]  ;;  %798 = vmatpush.bf16.msra.mxu1 %v1437_v2  ;;  %v1452_v7 = vld [vmem:[%s1860_s1 + $0xf0] sm:$0xff]  ;;  %v1451_v11 = vld [vmem:[%s1860_s1 + $0xe8] sm:$0xff]  ;;  %s1655_s23 = scalar_lea.vmem %s1859_s0, %s1494_s10 }
   0xf   : > { %826 = vmatpush.bf16.msra.mxu3 %v1453_v3  ;;  %v1426_v12 = vld [vmem:[%s1860_s1 + $0x20] sm:$0xff]  ;;  %v1425_v16 = vld [vmem:[%s1860_s1 + $0x18] sm:$0xff]  ;;  %v1424_v20 = vld [vmem:[%s1860_s1 + $0x10] sm:$0xff] }
  0x10   : > { %785 = vmatpush.bf16.msra.mxu0 %v1428_v4  ;;  %v1442_v13 = vld [vmem:[%s1860_s1 + $0xa0] sm:$0xff]  ;;  %v1441_v17 = vld [vmem:[%s1860_s1 + $0x98] sm:$0xff]  ;;  %v1440_v21 = vld [vmem:[%s1860_s1 + $0x90] sm:$0xff] }
  0x11   : > { %813 = vmatpush.bf16.msra.mxu2 %v1444_v5  ;;  %v1434_v14 = vld [vmem:[%s1860_s1 + $0x60] sm:$0xff]  ;;  %v1433_v18 = vld [vmem:[%s1860_s1 + $0x58] sm:$0xff]  ;;  %v1432_v22 = vld [vmem:[%s1860_s1 + $0x50] sm:$0xff] }
  0x12   : > { %799 = vmatpush.bf16.msra.mxu1 %v1436_v6  ;;  %v1450_v15 = vld [vmem:[%s1860_s1 + $0xe0] sm:$0xff]  ;;  %v1449_v19 = vld [vmem:[%s1860_s1 + $0xd8] sm:$0xff]  ;;  %v1448_v23 = vld [vmem:[%s1860_s1 + $0xd0] sm:$0xff] }
  0x13   : > { %827 = vmatpush.bf16.msra.mxu3 %v1452_v7  ;;  %v1423_v24 = vld [vmem:[%s1860_s1 + $0x8] sm:$0xff]  ;;  %v1422_v28 = vld [vmem:[%s1860_s1] sm:$0xff]  ;;  %v1461_v30 = vld [vmem:[%s1860_s1 + $0x138] sm:$0xff] }
  0x14   : > { %786 = vmatpush.bf16.msra.mxu0 %v1427_v8  ;;  %v1439_v25 = vld [vmem:[%s1860_s1 + $0x88] sm:$0xff]  ;;  %v1438_v29 = vld [vmem:[%s1860_s1 + $0x80] sm:$0xff]  ;;  %v1477_v31 = vld [vmem:[%s1860_s1 + $0x1b8] sm:$0xff] }
  0x15   : > { %814 = vmatpush.bf16.msra.mxu2 %v1443_v9  ;;  %v1431_v26 = vld [vmem:[%s1860_s1 + $0x48] sm:$0xff]  ;;  %v1430_v32 = vld [vmem:[%s1860_s1 + $0x40] sm:$0xff]  ;;  %v179_v36 = vld [vmem:[%s1655_s23 + $0x10] sm:$0xff] }
  0x16   : > { %800 = vmatpush.bf16.msra.mxu1 %v1435_v10  ;;  %v1447_v27 = vld [vmem:[%s1860_s1 + $0xc8] sm:$0xff]  ;;  %v1446_v33 = vld [vmem:[%s1860_s1 + $0xc0] sm:$0xff]  ;;  %v188_v37 = vld [vmem:[%s1655_s23 + $0x58] sm:$0xff] }
  0x17   : > { %828 = vmatpush.bf16.msra.mxu3 %v1451_v11  ;;  %v177_v34 = vld [vmem:[%s1655_s23] sm:$0xff]  ;;  %v186_v35 = vld [vmem:[%s1655_s23 + $0x48] sm:$0xff]  ;;  %v1469_v38 = vld [vmem:[%s1860_s1 + $0x178] sm:$0xff]  ;;  %v197_v45 = vpack.c.bf16 %v188_v37, %v179_v36 }
  0x18   : > { %787 = vmatpush.bf16.msra.mxu0 %v1426_v12  ;;  %v1485_v39 = vld [vmem:[%s1860_s1 + $0x1f8] sm:$0xff]  ;;  %v178_v40 = vld [vmem:[%s1655_s23 + $0x8] sm:$0xff]  ;;  %v187_v41 = vld [vmem:[%s1655_s23 + $0x50] sm:$0xff]  ;;  %v195_v44 = vpack.c.bf16 %v186_v35, %v177_v34 }
  0x19   : > { %815 = vmatpush.bf16.msra.mxu2 %v1442_v13  ;;  %v180_v42 = vld [vmem:[%s1655_s23 + $0x18] sm:$0xff]  ;;  %v189_v43 = vld [vmem:[%s1655_s23 + $0x60] sm:$0xff]  ;;  %v1460_v46 = vld [vmem:[%s1860_s1 + $0x130] sm:$0xff]  ;;  %v196_v48 = vpack.c.bf16 %v187_v41, %v178_v40 }
  0x1a   : > { %801 = vmatpush.bf16.msra.mxu1 %v1434_v14  ;;  %v1476_v47 = vld [vmem:[%s1860_s1 + $0x1b0] sm:$0xff]  ;;  %v198_v49 = vpack.c.bf16 %v189_v43, %v180_v42  ;;  %v1459_v52 = vld [vmem:[%s1860_s1 + $0x128] sm:$0xff]  ;;  %v1458_v56 = vld [vmem:[%s1860_s1 + $0x120] sm:$0xff] }
  0x1b   : > { %829 = vmatpush.bf16.msra.mxu3 %v1450_v15  ;;  %v1468_v50 = vld [vmem:[%s1860_s1 + $0x170] sm:$0xff]  ;;  %v1475_v53 = vld [vmem:[%s1860_s1 + $0x1a8] sm:$0xff]  ;;  %v1474_v57 = vld [vmem:[%s1860_s1 + $0x1a0] sm:$0xff] }
  0x1c   : > { %788 = vmatpush.bf16.msra.mxu0 %v1425_v16  ;;  %v1484_v51 = vld [vmem:[%s1860_s1 + $0x1f0] sm:$0xff]  ;;  %v1467_v54 = vld [vmem:[%s1860_s1 + $0x168] sm:$0xff]  ;;  %v1466_v58 = vld [vmem:[%s1860_s1 + $0x160] sm:$0xff] }
  0x1d   : > { %816 = vmatpush.bf16.msra.mxu2 %v1441_v17  ;;  %v1483_v55 = vld [vmem:[%s1860_s1 + $0x1e8] sm:$0xff]  ;;  %v1482_v59 = vld [vmem:[%s1860_s1 + $0x1e0] sm:$0xff]  ;;  %v1457_v60 = vld [vmem:[%s1860_s1 + $0x118] sm:$0xff] }
  0x1e   : > { %802 = vmatpush.bf16.msra.mxu1 %v1433_v18  ;;  %v1473_v61 = vld [vmem:[%s1860_s1 + $0x198] sm:$0xff]  ;;  %v1456_v0 = vld [vmem:[%s1860_s1 + $0x110] sm:$0xff]  ;;  %v1455_v4 = vld [vmem:[%s1860_s1 + $0x108] sm:$0xff] }
  0x1f   : > { %830 = vmatpush.bf16.msra.mxu3 %v1449_v19  ;;  %v1465_v62 = vld [vmem:[%s1860_s1 + $0x158] sm:$0xff]  ;;  %v1472_v1 = vld [vmem:[%s1860_s1 + $0x190] sm:$0xff]  ;;  %v1471_v5 = vld [vmem:[%s1860_s1 + $0x188] sm:$0xff] }
  0x20   : > { %789 = vmatpush.bf16.msra.mxu0 %v1424_v20  ;;  %v1481_v63 = vld [vmem:[%s1860_s1 + $0x1d8] sm:$0xff]  ;;  %v1464_v2 = vld [vmem:[%s1860_s1 + $0x150] sm:$0xff]  ;;  %v1463_v6 = vld [vmem:[%s1860_s1 + $0x148] sm:$0xff] }
  0x21   : > { %817 = vmatpush.bf16.msra.mxu2 %v1440_v21  ;;  %v1480_v3 = vld [vmem:[%s1860_s1 + $0x1d0] sm:$0xff]  ;;  %v1479_v7 = vld [vmem:[%s1860_s1 + $0x1c8] sm:$0xff]  ;;  %v1454_v8 = vld [vmem:[%s1860_s1 + $0x100] sm:$0xff] }
  0x22   : > { %803 = vmatpush.bf16.msra.mxu1 %v1432_v22  ;;  %v1470_v9 = vld [vmem:[%s1860_s1 + $0x180] sm:$0xff]  ;;  %v1493_v10 = vld [vmem:[%s1860_s1 + $0x238] sm:$0xff]  ;;  %v190_v12 = vld [vmem:[%s1655_s23 + $0x68] sm:$0xff] }
  0x23   : > { %831 = vmatpush.bf16.msra.mxu3 %v1448_v23  ;;  %v181_v11 = vld [vmem:[%s1655_s23 + $0x20] sm:$0xff]  ;;  %v183_v13 = vld [vmem:[%s1655_s23 + $0x30] sm:$0xff]  ;;  %v192_v14 = vld [vmem:[%s1655_s23 + $0x78] sm:$0xff] }
  0x24   : > { %790 = vmatpush.bf16.msra.mxu0 %v1423_v24  ;;  %v1462_v15 = vld [vmem:[%s1860_s1 + $0x140] sm:$0xff]  ;;  %v182_v17 = vld [vmem:[%s1655_s23 + $0x28] sm:$0xff]  ;;  %v191_v18 = vld [vmem:[%s1655_s23 + $0x70] sm:$0xff]  ;;  %v199_v21 = vpack.c.bf16 %v190_v12, %v181_v11  ;;  %v201_v22 = vpack.c.bf16 %v192_v14, %v183_v13 }
  0x25   : > { %818 = vmatpush.bf16.msra.mxu2 %v1439_v25  ;;  %v1478_v16 = vld [vmem:[%s1860_s1 + $0x1c0] sm:$0xff]  ;;  %v184_v19 = vld [vmem:[%s1655_s23 + $0x38] sm:$0xff]  ;;  %v200_v23 = vpack.c.bf16 %v191_v18, %v182_v17  ;;  %v1492_v25 = vld [vmem:[%s1860_s1 + $0x230] sm:$0xff] }
  0x26   : > { %804 = vmatpush.bf16.msra.mxu1 %v1431_v26  ;;  %v193_v20 = vld [vmem:[%s1655_s23 + $0x80] sm:$0xff]  ;;  %v1491_v26 = vld [vmem:[%s1860_s1 + $0x228] sm:$0xff] }
  0x27   : > { %832 = vmatpush.bf16.msra.mxu3 %v1447_v27  ;;  %v202_v24 = vpack.c.bf16 %v193_v20, %v184_v19  ;;  %v1490_v27 = vld [vmem:[%s1860_s1 + $0x220] sm:$0xff] }
  0x28   : > { %791 = vmatpush.bf16.msra.mxu0 %v1422_v28  ;;  %v1489_v28 = vld [vmem:[%s1860_s1 + $0x218] sm:$0xff]  ;;  %v1507_v36 = vld [vmem:[%s1861_s2] ss:$0 sm:$0xff] }
  0x29   : > { %819 = vmatpush.bf16.msra.mxu2 %v1438_v29  ;;  %v1488_v29 = vld [vmem:[%s1860_s1 + $0x210] sm:$0xff] }
  0x2a   : > { %805 = vmatpush.bf16.msra.mxu1 %v1430_v32  ;;  %v185_v32 = vld [vmem:[%s1655_s23 + $0x40] sm:$0xff] }
  0x2b   : > { %833 = vmatpush.bf16.msra.mxu3 %v1446_v33  ;;  %792 = vmatmul.bf16.vlgmr.msra.gmra.mxu0 %v195_v44  ;;  %v194_v33 = vld [vmem:[%s1655_s23 + $0x88] sm:$0xff]  ;;  %s1131_s23 = sshll.u32 %s1864_s11, 3 }
  0x2c   : > { %840 = vmatpush.bf16.msrb.mxu0 %v1461_v30  ;;  %820 = vmatmul.bf16.vlgmr.msra.gmra.mxu2 %v197_v45  ;;  %v1487_v30 = vld [vmem:[%s1860_s1 + $0x208] sm:$0xff]  ;;  %v203_v34 = vpack.c.bf16 %v194_v33, %v185_v32  ;;  %s175_s20 = scalar_lea.vmem %s1862_s3, %s1131_s23 }
  0x2d   : > { %868 = vmatpush.bf16.msrb.mxu2 %v1477_v31  ;;  %806 = vmatmul.bf16.vlgmr.msra.gmra.mxu1 %v196_v48  ;;  %v1486_v31 = vld [vmem:[%s1860_s1 + $0x200] sm:$0xff] }
  0x2e   : > { %854 = vmatpush.bf16.msrb.mxu1 %v1469_v38  ;;  %834 = vmatmul.bf16.vlgmr.msra.gmra.mxu3 %v198_v49 }
  0x2f   : > { %882 = vmatpush.bf16.msrb.mxu3 %v1485_v39 }
  0x30   : > { %841 = vmatpush.bf16.msrb.mxu0 %v1460_v46 }
  0x31   : > { %869 = vmatpush.bf16.msrb.mxu2 %v1476_v47 }
  0x32   : > { %855 = vmatpush.bf16.msrb.mxu1 %v1468_v50 }
  0x33   : > { %883 = vmatpush.bf16.msrb.mxu3 %v1484_v51 }
  0x34   : > { %842 = vmatpush.bf16.msrb.mxu0 %v1459_v52 }
  0x35   : > { %870 = vmatpush.bf16.msrb.mxu2 %v1475_v53 }
  0x36   : > { %856 = vmatpush.bf16.msrb.mxu1 %v1467_v54 }
  0x37   : > { %884 = vmatpush.bf16.msrb.mxu3 %v1483_v55 }
  0x38   : > { %843 = vmatpush.bf16.msrb.mxu0 %v1458_v56 }
  0x39   : > { %871 = vmatpush.bf16.msrb.mxu2 %v1474_v57 }
  0x3a   : > { %857 = vmatpush.bf16.msrb.mxu1 %v1466_v58 }
  0x3b   : > { %885 = vmatpush.bf16.msrb.mxu3 %v1482_v59 }
  0x3c   : > { %844 = vmatpush.bf16.msrb.mxu0 %v1457_v60 }
  0x3d   : > { %872 = vmatpush.bf16.msrb.mxu2 %v1473_v61 }
  0x3e   : > { %858 = vmatpush.bf16.msrb.mxu1 %v1465_v62 }
  0x3f   : > { %886 = vmatpush.bf16.msrb.mxu3 %v1481_v63 }
  0x40   : > { %845 = vmatpush.bf16.msrb.mxu0 %v1456_v0 }
  0x41   : > { %873 = vmatpush.bf16.msrb.mxu2 %v1472_v1 }
  0x42   : > { %859 = vmatpush.bf16.msrb.mxu1 %v1464_v2 }
  0x43   : > { %887 = vmatpush.bf16.msrb.mxu3 %v1480_v3 }
  0x44   : > { %846 = vmatpush.bf16.msrb.mxu0 %v1455_v4 }
  0x45   : > { %874 = vmatpush.bf16.msrb.mxu2 %v1471_v5 }
  0x46   : > { %860 = vmatpush.bf16.msrb.mxu1 %v1463_v6 }
  0x47   : > { %888 = vmatpush.bf16.msrb.mxu3 %v1479_v7 }
  0x48   : > { %847 = vmatpush.bf16.msrb.mxu0 %v1454_v8 }
  0x49   : > { %875 = vmatpush.bf16.msrb.mxu2 %v1470_v9 }
  0x4a   : > { %861 = vmatpush.bf16.msrb.mxu1 %v1462_v15 }
  0x4b   : > { %889 = vmatpush.bf16.msrb.mxu3 %v1478_v16  ;;  %848 = vmatmul.bf16.vlgmr.msrb.gmra.mxu0 %v199_v21 }
  0x4c   : > { %896 = vmatpush.bf16.msra.mxu0 %v1493_v10  ;;  %876 = vmatmul.bf16.vlgmr.msrb.gmra.mxu2 %v201_v22  ;;  %v1536_v10 = vmov 0  }
  0x4d   : > { %862 = vmatmul.bf16.vlgmr.msrb.gmra.mxu1 %v200_v23  ;;  %1504 = vset.pattern.permute.xlu1 %v1536_v10 }
  0x4e   : > { %890 = vmatmul.bf16.vlgmr.msrb.gmra.mxu3 %v202_v24  ;;  %1505 = vset.pattern.permute.xlu2 %v1536_v10 }
  0x4f   : > { %1506 = vset.pattern.permute.xlu0 %v1536_v10 }
  0x50   : > { %897 = vmatpush.bf16.msra.mxu0 %v1492_v25 }
  0x54   : > { %898 = vmatpush.bf16.msra.mxu0 %v1491_v26 }
  0x58   : > { %899 = vmatpush.bf16.msra.mxu0 %v1490_v27 }
  0x5c   : > { %900 = vmatpush.bf16.msra.mxu0 %v1489_v28 }
  0x60   : > { %901 = vmatpush.bf16.msra.mxu0 %v1488_v29 }
  0x64   : > { %902 = vmatpush.bf16.msra.mxu0 %v1487_v30 }
  0x68   : > { %903 = vmatpush.bf16.msra.mxu0 %v1486_v31 }
  0x6b   : > { %904 = vmatmul.bf16.vlgmr.msra.gmra.mxu0 %v203_v34 }
  0xa8   : > { %v793_v35 = vpop.f32.mrf.mxu0 }
  0xa9   : > { %v794_v39 = vadd.f32 %v1507_v36, %v793_v35 }
  0xaa   : > { %v807_v37 = vpop.f32.mrf.mxu1 }
  0xab   : > { %v808_v42 = vadd.f32 %v807_v37, %v794_v39 }
  0xaf   : > { %v821_v38 = vpop.f32.mrf.mxu2 }
  0xb0   : > { %v795_v40 = vpop.f32.mrf.mxu0  ;;  %v822_v44 = vadd.f32 %v821_v38, %v808_v42 }
  0xb1   : > { %v835_v41 = vpop.f32.mrf.mxu3  ;;  %v796_v47 = vadd.f32 %v1507_v36, %v795_v40 }
  0xb2   : > { %v809_v43 = vpop.f32.mrf.mxu1  ;;  %v836_v48 = vadd.f32 %v835_v41, %v822_v44 }
  0xb3   : > { %v810_v50 = vadd.f32 %v809_v43, %v796_v47 }
  0xb7   : > { %v823_v45 = vpop.f32.mrf.mxu2 }
  0xb8   : > { %v824_v54 = vadd.f32 %v823_v45, %v810_v50 }
  0xb9   : > { %v837_v49 = vpop.f32.mrf.mxu3 }
  0xba   : > { %v838_v58 = vadd.f32 %v837_v49, %v824_v54 }
  0xc8   : > { %v849_v46 = vpop.f32.mrf.mxu0 }
  0xc9   : > { %v850_v51 = vadd.f32 %v849_v46, %v836_v48 }
  0xca   : > { %v863_v52 = vpop.f32.mrf.mxu1 }
  0xcb   : > { %v864_v55 = vadd.f32 %v863_v52, %v850_v51 }
  0xcf   : > { %v877_v53 = vpop.f32.mrf.mxu2 }
  0xd0   : > { %v851_v56 = vpop.f32.mrf.mxu0  ;;  %v878_v59 = vadd.f32 %v877_v53, %v864_v55 }
  0xd1   : > { %v891_v57 = vpop.f32.mrf.mxu3  ;;  %v852_v60 = vadd.f32 %v851_v56, %v838_v58 }
  0xd2   : > { %v865_v61 = vpop.f32.mrf.mxu1  ;;  %v892_v62 = vadd.f32 %v891_v57, %v878_v59 }
  0xd3   : > { %v866_v1 = vadd.f32 %v865_v61, %v852_v60 }
  0xd7   : > { %v879_v63 = vpop.f32.mrf.mxu2 }
  0xd8   : > { %v880_v3 = vadd.f32 %v879_v63, %v866_v1 }
  0xd9   : > { %v893_v5 = vpop.f32.mrf.mxu3 }
  0xda   : > { %v894_v6 = vadd.f32 %v893_v5, %v880_v3 }
  0xe8   : > { %v905_v0 = vpop.f32.mrf.mxu0 }
  0xe9   : > { %v1810_v2 = vadd.f32 %v905_v0, %v892_v62 }
  0xeb   : > { %v1814_v4 = vmul.f32 %v1810_v2, %v1810_v2  ;;  %v916_v11 = vmul.f32 2.0, %v1810_v2 }
  0xed   : > { %912 = vadd.xlane.f32.xlu0 %v1814_v4  ;;  %v918_v12 = vmul.f32 %v916_v11, %v1810_v2 }
  0xf0   : > { %v907_v7 = vpop.f32.mrf.mxu0 }
  0xf1   : > { %v1817_v8 = vadd.f32 %v907_v7, %v894_v6 }
  0xf3   : > { %v1821_v9 = vmul.f32 %v1817_v8, %v1817_v8  ;;  %v917_v16 = vmul.f32 2.0, %v1817_v8 }
  0xf5   : > { %914 = vadd.xlane.f32.xlu0 %v1821_v9  ;;  %v919_v17 = vmul.f32 %v917_v16, %v1817_v8 }
 0x160   : > { %v1826_v13 = vpop.xlane.xlu0 %912 }
 0x161   : > { %v920_v14 = vsub.f32 %v1826_v13, %v918_v12 }
 0x163   : > { %v922_v15 = vmax.f32 %v920_v14, 1e-08 }
 0x165   : > { %1508 = vrsqrt.f32 %v922_v15  ;;  %vm931_vm0 = vcmp.eq.f32.partialorder %v922_v15, inf  ;;  %v934_v31 = vand.u32 2147483648, %v922_v15  ;;  %vm933_vm1 = vcmp.eq.f32.partialorder %v922_v15, 0.0 }
 0x166   : > { %v948_v45 = vmul.f32 0.16666667, %v922_v15  ;;  %v952_v46 = vmul.f32 %v922_v15, %v922_v15 }
 0x168   : > { %v1831_v18 = vpop.xlane.xlu0 %914  ;;  %v950_v58 = vadd.f32 1.0, %v948_v45  ;;  %v954_v59 = vmul.f32 0.008333334, %v952_v46 }
 0x169   : > { %v921_v19 = vsub.f32 %v1831_v18, %v919_v17 }
 0x16a   : > { %v956_v5 = vadd.f32 %v954_v59, %v950_v58 }
 0x16b   : > { %v1509_v20 = vpop.eup %1508  ;;  %v1834_v21 = vmax.f32 %v921_v19, 1e-08 }
 0x16c   : > { %v925_v22 = vmul.f32 %v1509_v20, %v922_v15 }
 0x16d   : > { %1510 = vrsqrt.f32 %v1834_v21  ;;  %vm943_vm2 = vcmp.eq.f32.partialorder %v1834_v21, inf  ;;  %v946_v42 = vand.u32 2147483648, %v1834_v21  ;;  %vm945_vm3 = vcmp.eq.f32.partialorder %v1834_v21, 0.0 }
 0x16e   : > { %v926_v23 = vmul.f32 %v1509_v20, %v925_v22  ;;  %v949_v7 = vmul.f32 0.16666667, %v1834_v21  ;;  %v953_v11 = vmul.f32 %v1834_v21, %v1834_v21 }
 0x170   : > { %v927_v24 = vmul.f32 0.5, %v926_v23 }
 0x172   : > { %v928_v25 = vsub.f32 1.5, %v927_v24  ;;  %v951_v24 = vadd.f32 1.0, %v949_v7 }
 0x173   : > { %v1511_v26 = vpop.eup %1510 }
 0x174   : > { %v929_v27 = vmul.f32 %v1509_v20, %v928_v25  ;;  %v937_v28 = vmul.f32 %v1511_v26, %v1834_v21 }
 0x176   : > { %v930_v29 = vmul.f32 %v929_v27, %v922_v15  ;;  %v938_v30 = vmul.f32 %v1511_v26, %v937_v28 }
 0x178   : > { %v932_v32 = vsel %vm931_vm0, %v922_v15, %v930_v29  ;;  %v939_v33 = vmul.f32 0.5, %v938_v30  ;;  %v1008_v15 = vsub.f32 %v1826_v13, %v1814_v4 }
 0x179   : > { %v935_v34 = vsel %vm933_vm1, %v934_v31, %v932_v32 }
 0x17a   : > { %v958_v35 = vmul.f32 1.442695, %v935_v34  ;;  %v962_v36 = vsub.f32 0.0, %v935_v34  ;;  %1512 = vrcp.f32 %v935_v34  ;;  %v940_v37 = vsub.f32 1.5, %v939_v33 }
 0x17b   : > { %v981_v53 = vand.u32 2147483647, %v935_v34  ;;  %v983_v54 = vand.u32 2147483648, %v935_v34  ;;  %vm977_vm5 = vweird.f32 %v935_v34  ;;  %vm1002_vm8 = vcmp.lt.f32.partialorder %v935_v34, 0.1 }
 0x17c   : > { %v964_v38 = vmul.f32 1.442695, %v962_v36  ;;  %1514 = vpow2.f32 %v958_v35  ;;  %v941_v39 = vmul.f32 %v1511_v26, %v940_v37  ;;  %v955_v26 = vmul.f32 0.008333334, %v953_v11 }
 0x17d   : > { %v984_v61 = vor.u32 1.1754944e-38, %v983_v54  ;;  %vm982_vm7 = vcmp.eq.f32.partialorder %v981_v53, 8.507059e+37  ;;  %v1009_v33 = vsub.f32 %v1831_v18, %v1821_v9 }
 0x17e   : > { %1516 = vpow2.f32 %v964_v38  ;;  %v942_v40 = vmul.f32 %v941_v39, %v1834_v21  ;;  %v957_v13 = vadd.f32 %v955_v26, %v951_v24 }
 0x180   : > { %v1513_v41 = vpop.eup %1512  ;;  %v944_v44 = vsel %vm943_vm2, %v1834_v21, %v942_v40 }
 0x181   : > { %v973_v43 = vmul.f32 %v1513_v41, %v935_v34  ;;  %v947_v47 = vsel %vm945_vm3, %v946_v42, %v944_v44  ;;  %vm978_vm4 = vweird.f32 %v1513_v41 }
 0x182   : > { %v1515_v48 = vpop.eup %1514  ;;  %v960_v50 = vmul.f32 1.442695, %v947_v47  ;;  %v963_v51 = vsub.f32 0.0, %v947_v47  ;;  %1518 = vrcp.f32 %v947_v47  ;;  %vm979_vm6 = vmor %vm977_vm5, %vm978_vm4  ;;  %v996_v17 = vand.u32 2147483647, %v947_v47 }
 0x183   : > { %v974_v49 = vsub.f32 1.0, %v973_v43  ;;  %v998_v19 = vand.u32 2147483648, %v947_v47  ;;  %vm992_vm10 = vweird.f32 %v947_v47  ;;  %vm1003_vm13 = vcmp.lt.f32.partialorder %v947_v47, 0.1 }
 0x184   : > { %v1517_v52 = vpop.eup %1516  ;;  %v966_v57 = vmul.f32 1.442695, %v963_v51  ;;  %1520 = vpow2.f32 %v960_v50  ;;  %vm997_vm12 = vcmp.eq.f32.partialorder %v996_v17, 8.507059e+37 }
 0x185   : > { %v968_v55 = vsub.f32 %v1515_v48, %v1517_v52  ;;  %v975_v56 = vmul.f32 %v1513_v41, %v974_v49  ;;  %v999_v21 = vor.u32 1.1754944e-38, %v998_v19 }
 0x186   : > { %1522 = vpow2.f32 %v966_v57 }
 0x187   : > { %v976_v60 = vadd.f32 %v1513_v41, %v975_v56  ;;  %v970_v63 = vmul.f32 0.5, %v968_v55  ;;  %v1038_v55 = vlaneseq }
 0x188   : > { %v1519_v62 = vpop.eup %1518 }
 0x189   : > { %v980_v0 = vsel %vm979_vm6, %v1513_v41, %v976_v60  ;;  %v988_v3 = vmul.f32 %v1519_v62, %v947_v47  ;;  %vm993_vm9 = vweird.f32 %v1519_v62  ;;  %v1039_v56 = vand.u32 127, %v1038_v55 }
 0x18a   : > { %v985_v1 = vsel %vm982_vm7, %v984_v61, %v980_v0  ;;  %v1521_v10 = vpop.eup %1520  ;;  %vm994_vm11 = vmor %vm992_vm10, %vm993_vm9 }
 0x18b   : > { %v986_v6 = vmul.f32 %v985_v1, %v970_v63  ;;  %v989_v12 = vsub.f32 1.0, %v988_v3  ;;  %vm1040_vm2 = vcmp.eq.s32.totalorder %v1039_v56, 0 }
 0x18c   : > { %v1523_v14 = vpop.eup %1522 }
 0x18d   : > { %v1004_v16 = vsel %vm1002_vm8, %v956_v5, %v986_v6  ;;  %v969_v22 = vsub.f32 %v1521_v10, %v1523_v14  ;;  %v990_v23 = vmul.f32 %v1519_v62, %v989_v12 }
 0x18e   : > { %1043 = vperm.xlu1 %1504, %v1004_v16   ;;  %v1006_v20 = vmul.f32 %v1004_v16, %v1004_v16 }
 0x18f   : > { %v991_v27 = vadd.f32 %v1519_v62, %v990_v23  ;;  %v971_v29 = vmul.f32 0.5, %v969_v22 }
 0x190   : > { %v1010_v25 = vmul.f32 %v1008_v15, %v1006_v20 }
 0x191   : > { %v995_v30 = vsel %vm994_vm11, %v1519_v62, %v991_v27 }
 0x192   : > { %v1012_v28 = vadd.f32 1.0, %v1010_v25  ;;  %v1000_v4 = vsel %vm997_vm12, %v999_v21, %v995_v30 }
 0x193   : > { %v1001_v31 = vmul.f32 %v1000_v4, %v971_v29 }
 0x194   : > { %1524 = vrsqrt.f32 %v1012_v28  ;;  %vm1021_vm14 = vcmp.eq.f32.partialorder %v1012_v28, inf  ;;  %v1024_v46 = vand.u32 2147483648, %v1012_v28  ;;  %vm1023_vm15 = vcmp.eq.f32.partialorder %v1012_v28, 0.0 }
 0x195   : > { %v1005_v32 = vsel %vm1003_vm13, %v957_v13, %v1001_v31 }
 0x196   : > { %1048 = vperm.xlu1 %1504, %v1005_v32   ;;  %v1007_v34 = vmul.f32 %v1005_v32, %v1005_v32 }
 0x198   : > { %v1011_v35 = vmul.f32 %v1009_v33, %v1007_v34 }
 0x19a   : > { %v1525_v36 = vpop.eup %1524  ;;  %v1013_v37 = vadd.f32 1.0, %v1011_v35 }
 0x19b   : > { %v1015_v38 = vmul.f32 %v1525_v36, %v1012_v28 }
 0x19c   : > { %1526 = vrsqrt.f32 %v1013_v37  ;;  %vm1033_vm0 = vcmp.eq.f32.partialorder %v1013_v37, inf  ;;  %v1036_v52 = vand.u32 2147483648, %v1013_v37  ;;  %vm1035_vm1 = vcmp.eq.f32.partialorder %v1013_v37, 0.0 }
 0x19d   : > { %v1016_v39 = vmul.f32 %v1525_v36, %v1015_v38 }
 0x19f   : > { %v1017_v40 = vmul.f32 0.5, %v1016_v39 }
 0x1a1   : > { %v1018_v41 = vsub.f32 1.5, %v1017_v40 }
 0x1a2   : > { %v1527_v42 = vpop.eup %1526 }
 0x1a3   : > { %v1019_v43 = vmul.f32 %v1525_v36, %v1018_v41  ;;  %v1027_v44 = vmul.f32 %v1527_v42, %v1013_v37 }
 0x1a5   : > { %v1020_v45 = vmul.f32 %v1019_v43, %v1012_v28  ;;  %v1028_v47 = vmul.f32 %v1527_v42, %v1027_v44 }
 0x1a7   : > { %v1022_v48 = vsel %vm1021_vm14, %v1012_v28, %v1020_v45  ;;  %v1029_v18 = vmul.f32 0.5, %v1028_v47 }
 0x1a8   : > { %v1025_v9 = vsel %vm1023_vm15, %v1024_v46, %v1022_v48 }
 0x1a9   : > { %1055 = vperm.xlu2 %1505, %v1025_v9   ;;  %v1030_v49 = vsub.f32 1.5, %v1029_v18 }
 0x1ab   : > { %v1031_v50 = vmul.f32 %v1527_v42, %v1030_v49 }
 0x1ad   : > { %v1032_v51 = vmul.f32 %v1031_v50, %v1013_v37 }
 0x1af   : > { %v1034_v53 = vsel %vm1033_vm0, %v1013_v37, %v1032_v51 }
 0x1b0   : > { %v1037_v54 = vsel %vm1035_vm1, %v1036_v52, %v1034_v53 }
 0x1b1   : > { %1060 = vperm.xlu2 %1505, %v1037_v54  }
 0x200   : > { %v1044_v57 = vpop.permute.xlu1 %1043 }
 0x201   : > { %v1051_v58 = vmul.f32 %v1044_v57, %v1810_v2 }
 0x203   : > { %v1056_v59 = vpop.permute.xlu2 %1055 }
 0x204   : > { %v1063_v60 = vsel %vm1040_vm2, %v1056_v59, %v1051_v58 }
 0x205   : > { %1065 = vst [vmem:[%s175_s20] sm:$0xff] %v1063_v60 }
 0x208   : > { %v1049_v61 = vpop.permute.xlu1 %1048 }
 0x209   : > { %v1052_v62 = vmul.f32 %v1049_v61, %v1817_v8 }
 0x20b   : > { %v1061_v63 = vpop.permute.xlu2 %1060 }
 0x20c   : > { %v1064_v0 = vsel %vm1040_vm2, %v1061_v63, %v1052_v62 }
 0x20d   : > { %1066 = vst [vmem:[%s175_s20 + $0x8] sm:$0xff] %v1064_v0 }
 0x20e PF: > { %s13_s12 = sadd.s32 1, %s1534_s12  }
 0x20f   : > { %p10_p4 = scmp.ge.s32.totalorder %s13_s12, 4  }
 0x211   :  { %12 = sbr.rel (!%p10_p4) target bundleno = 1 (0x1), region = 62 }

// kernel: lorentz_vit_forward.9
= control target key start
LH: loop header
LB: loop body
LE: loop exit
PB: predicated region body
PF: predicated region fallthrough
CT: control target
= control target key end

     0   :  { %s2918_s30 = smov 0   ;;  %s3474_s0 = inlined_call_operand.vmem [shape: f32[2,16,128], index: 0, kind: input, shape index: {}]   ;;  %s3475_s1 = inlined_call_operand.vmem [shape: bf16[128,384], index: 1, kind: input, shape index: {}]   ;;  %s3476_s2 = inlined_call_operand.vmem [shape: f32[1,384], index: 2, kind: input, shape index: {}]   ;;  %s3477_s3 = inlined_call_operand.vmem [shape: bf16[128,128], index: 3, kind: input, shape index: {}]   ;;  %s3478_s4 = inlined_call_operand.vmem [shape: f32[1,128], index: 4, kind: input, shape index: {}]   ;;  %s3479_s5 = inlined_call_operand.vmem [shape: bf16[128,128], index: 5, kind: input, shape index: {}]   ;;  %s3480_s6 = inlined_call_operand.vmem [shape: f32[1,128], index: 6, kind: input, shape index: {}]   ;;  %s3481_s7 = inlined_call_operand.vmem [shape: bf16[16,16], index: 7, kind: input, shape index: {}]   ;;  %s3482_s8 = inlined_call_operand.vmem [shape: f32[16,1], index: 8, kind: input, shape index: {}]   ;;  %s3483_s9 = inlined_call_operand.vmem [shape: f32[2,16,128], index: 9, kind: output, shape index: {}]  }
   0x1 LB: > { %s2391_s10 = sadd.s32 4294967295, %s2858_s30   ;;  %p2395_p0 = scmp.ge.s32.totalorder %s2858_s30, 1  ;;  %s2858_s30 = sphi %s2918_s30, %s19_s30  }
   0x2   : > { %p287_p1 = scmp.lt.s32.totalorder %s2858_s30, 3 }
   0x4   : > { %p288_p2 = pnand %p2395_p0, %p287_p1 }
   0x5   : > { %p323_p3 = scmp.lt.s32.totalorder (!%p288_p2), %s2391_s10, 1  ;;  %s2861_s18 = smov (!%p288_p2), 112  }
   0x6   : > { %291 = sbr.rel (%p288_p2) target bundleno = 4727 (0x1277), region = 56  ;;  %s2862_s22 = smov (!%p288_p2), 80  }
   0x7   : > { %s2863_s23 = smov (!%p288_p2), 96   ;;  %s2864_s26 = smov (!%p288_p2), 48  }
   0x8   : > { %s2865_s27 = smov (!%p288_p2), 64   ;;  %s2866_s14 = smov (!%p288_p2), 32  }
   0x9   : > { %s2867_s15 = smov (!%p288_p2), 16  }
   0xb   : > { %v2486_v0 = vld [vmem:[%s3475_s1 + $0xa8] sm:$0xf]  ;;  %v2637_v1 = vld [vmem:[%s3475_s1 + $0xb0] sm:$0xf0]  ;;  %v2636_v2 = vld [vmem:[%s3475_s1 + $0xac] sm:$0xf] }
   0xc   : > { %v2487_v3 = vor.u32 %v2637_v1, %v2486_v0  ;;  %v2488_v4 = vld [vmem:[%s3475_s1 + $0xb4] sm:$0xf0]  ;;  %v2494_v5 = vld [vmem:[%s3475_s1 + $0xb0] sm:$0xf]  ;;  %v2638_v6 = vld [vmem:[%s3475_s1 + $0xb8] sm:$0xf0] }
   0xd   : > { %v2491_v7 = vor.u32 %v2636_v2, %v2488_v4  ;;  %v2495_v8 = vor.u32 %v2638_v6, %v2494_v5  ;;  %v2474_v9 = vld [vmem:[%s3475_s1 + $0x90] sm:$0xf]  ;;  %v2634_v10 = vld [vmem:[%s3475_s1 + $0x98] sm:$0xf0]  ;;  %v2633_v11 = vld [vmem:[%s3475_s1 + $0x94] sm:$0xf] }
   0xe   : > { %505 = vmatpush.bf16.msra.mxu0 %v2487_v3  ;;  %v2475_v12 = vor.u32 %v2634_v10, %v2474_v9  ;;  %v2476_v13 = vld [vmem:[%s3475_s1 + $0x9c] sm:$0xf0]  ;;  %v2482_v14 = vld [vmem:[%s3475_s1 + $0x98] sm:$0xf]  ;;  %v2635_v15 = vld [vmem:[%s3475_s1 + $0xa0] sm:$0xf0] }
   0xf   : > { %519 = vmatpush.bf16.msra.mxu1 %v2491_v7  ;;  %533 = vmatpush.bf16.msra.mxu2 %v2495_v8  ;;  %v2479_v16 = vor.u32 %v2633_v11, %v2476_v13  ;;  %v2483_v17 = vor.u32 %v2635_v15, %v2482_v14  ;;  %v2462_v18 = vld [vmem:[%s3475_s1 + $0x78] sm:$0xf]  ;;  %v2631_v19 = vld [vmem:[%s3475_s1 + $0x80] sm:$0xf0]  ;;  %v2630_v20 = vld [vmem:[%s3475_s1 + $0x7c] sm:$0xf] }
  0x10   : > { %v2464_v21 = vld [vmem:[%s3475_s1 + $0x84] sm:$0xf0]  ;;  %v2470_v22 = vld [vmem:[%s3475_s1 + $0x80] sm:$0xf]  ;;  %v2632_v23 = vld [vmem:[%s3475_s1 + $0x88] sm:$0xf0]  ;;  %v2463_v24 = vor.u32 %v2631_v19, %v2462_v18 }
  0x11   : > { %v2467_v25 = vor.u32 %v2630_v20, %v2464_v21  ;;  %v2471_v26 = vor.u32 %v2632_v23, %v2470_v22  ;;  %v2450_v27 = vld [vmem:[%s3475_s1 + $0x60] sm:$0xf]  ;;  %v2628_v28 = vld [vmem:[%s3475_s1 + $0x68] sm:$0xf0]  ;;  %v2627_v29 = vld [vmem:[%s3475_s1 + $0x64] sm:$0xf] }
  0x12   : > { %506 = vmatpush.bf16.msra.mxu0 %v2475_v12  ;;  %v2452_v30 = vld [vmem:[%s3475_s1 + $0x6c] sm:$0xf0]  ;;  %v2458_v31 = vld [vmem:[%s3475_s1 + $0x68] sm:$0xf]  ;;  %v2629_v32 = vld [vmem:[%s3475_s1 + $0x70] sm:$0xf0]  ;;  %v2451_v33 = vor.u32 %v2628_v28, %v2450_v27 }
  0x13   : > { %520 = vmatpush.bf16.msra.mxu1 %v2479_v16  ;;  %534 = vmatpush.bf16.msra.mxu2 %v2483_v17  ;;  %v2455_v34 = vor.u32 %v2627_v29, %v2452_v30  ;;  %v2459_v35 = vor.u32 %v2629_v32, %v2458_v31  ;;  %v2438_v36 = vld [vmem:[%s3475_s1 + $0x48] sm:$0xf]  ;;  %v2625_v37 = vld [vmem:[%s3475_s1 + $0x50] sm:$0xf0]  ;;  %v2624_v38 = vld [vmem:[%s3475_s1 + $0x4c] sm:$0xf] }
  0x14   : > { %v2440_v39 = vld [vmem:[%s3475_s1 + $0x54] sm:$0xf0]  ;;  %v2446_v40 = vld [vmem:[%s3475_s1 + $0x50] sm:$0xf]  ;;  %v2626_v41 = vld [vmem:[%s3475_s1 + $0x58] sm:$0xf0]  ;;  %v2439_v42 = vor.u32 %v2625_v37, %v2438_v36 }
  0x15   : > { %v2426_v43 = vld [vmem:[%s3475_s1 + $0x30] sm:$0xf]  ;;  %v2622_v44 = vld [vmem:[%s3475_s1 + $0x38] sm:$0xf0]  ;;  %v2621_v45 = vld [vmem:[%s3475_s1 + $0x34] sm:$0xf]  ;;  %v2443_v46 = vor.u32 %v2624_v38, %v2440_v39  ;;  %v2447_v47 = vor.u32 %v2626_v41, %v2446_v40 }
  0x16   : > { %507 = vmatpush.bf16.msra.mxu0 %v2463_v24  ;;  %v2428_v48 = vld [vmem:[%s3475_s1 + $0x3c] sm:$0xf0]  ;;  %v2434_v49 = vld [vmem:[%s3475_s1 + $0x38] sm:$0xf]  ;;  %v2623_v50 = vld [vmem:[%s3475_s1 + $0x40] sm:$0xf0]  ;;  %v2427_v51 = vor.u32 %v2622_v44, %v2426_v43 }
  0x17   : > { %521 = vmatpush.bf16.msra.mxu1 %v2467_v25  ;;  %535 = vmatpush.bf16.msra.mxu2 %v2471_v26  ;;  %s3485_s10 = smov (!%p323_p3, %s2391_s10), 1  ;;  %v2414_v52 = vld [vmem:[%s3475_s1 + $0x18] sm:$0xf]  ;;  %v2431_v53 = vor.u32 %v2621_v45, %v2428_v48  ;;  %v2435_v54 = vor.u32 %v2623_v50, %v2434_v49  ;;  %v2619_v55 = vld [vmem:[%s3475_s1 + $0x20] sm:$0xf0]  ;;  %v2860_v11 = vmov 0  }
  0x18   : > { %v2618_v56 = vld [vmem:[%s3475_s1 + $0x1c] sm:$0xf]  ;;  %v2416_v57 = vld [vmem:[%s3475_s1 + $0x24] sm:$0xf0]  ;;  %v2422_v58 = vld [vmem:[%s3475_s1 + $0x20] sm:$0xf]  ;;  %v2415_v60 = vor.u32 %v2619_v55, %v2414_v52  ;;  %2673 = vset.pattern.permute.xlu2 %v2860_v11  ;;  %2672 = vset.pattern.permute.xlu1 %v2860_v11 }
  0x19   : > { %v2620_v59 = vld [vmem:[%s3475_s1 + $0x28] sm:$0xf0]  ;;  %s2613_s19 = sshll.u32 %s3485_s10, 4  ;;  %v2419_v61 = vor.u32 %v2618_v56, %v2416_v57  ;;  %v2402_v63 = vld [vmem:[%s3475_s1] sm:$0xf]  ;;  %2679 = vset.pattern.permute.xlu0 %v2860_v11 }
  0x1a   : > { %508 = vmatpush.bf16.msra.mxu0 %v2451_v33  ;;  %v2423_v62 = vor.u32 %v2620_v59, %v2422_v58  ;;  %v2616_v0 = vld [vmem:[%s3475_s1 + $0x8] sm:$0xf0]  ;;  %v2615_v1 = vld [vmem:[%s3475_s1 + $0x4] sm:$0xf]  ;;  %s3073_s28 = scalar_lea.vmem %s3474_s0, %s2613_s19  ;;  %v2404_v2 = vld [vmem:[%s3475_s1 + $0xc] sm:$0xf0]  ;;  %s332_s16 = scalar_lea.vmem %s3483_s9, %s2613_s19 }
  0x1b   : > { %522 = vmatpush.bf16.msra.mxu1 %v2455_v34  ;;  %536 = vmatpush.bf16.msra.mxu2 %v2459_v35  ;;  %v2410_v3 = vld [vmem:[%s3475_s1 + $0x8] sm:$0xf]  ;;  %v2617_v4 = vld [vmem:[%s3475_s1 + $0x10] sm:$0xf0]  ;;  %v2403_v5 = vor.u32 %v2616_v0, %v2402_v63  ;;  %v334_v6 = vld [vmem:[%s3073_s28] sm:$0xff]  ;;  %v2407_v8 = vor.u32 %v2615_v1, %v2404_v2 }
  0x1c   : > { %v335_v7 = vld [vmem:[%s3073_s28 + $0x8] sm:$0xff]  ;;  %v2411_v9 = vor.u32 %v2617_v4, %v2410_v3  ;;  %v369_v12 = vld [vmem:[%s3476_s2] sm:$0x7] }
  0x1d   : > { %v336_v10 = vpack.c.bf16 %v335_v7, %v334_v6  ;;  %v371_v13 = vperm.slane %v369_v12, 0  ;;  %v372_v14 = vperm.slane %v369_v12, 1  ;;  %v373_v21 = vperm.slane %v369_v12, 2 }
  0x1e   : > { %509 = vmatpush.bf16.msra.mxu0 %v2439_v42 }
  0x1f   : > { %523 = vmatpush.bf16.msra.mxu1 %v2443_v46  ;;  %537 = vmatpush.bf16.msra.mxu2 %v2447_v47 }
  0x22   : > { %510 = vmatpush.bf16.msra.mxu0 %v2427_v51 }
  0x23   : > { %524 = vmatpush.bf16.msra.mxu1 %v2431_v53  ;;  %538 = vmatpush.bf16.msra.mxu2 %v2435_v54 }
  0x26   : > { %511 = vmatpush.bf16.msra.mxu0 %v2415_v60 }
  0x27   : > { %525 = vmatpush.bf16.msra.mxu1 %v2419_v61  ;;  %539 = vmatpush.bf16.msra.mxu2 %v2423_v62 }
  0x2a   : > { %512 = vmatpush.bf16.msra.mxu0 %v2403_v5 }
  0x2b   : > { %526 = vmatpush.bf16.msra.mxu1 %v2407_v8  ;;  %540 = vmatpush.bf16.msra.mxu2 %v2411_v9 }
  0x2d   : > { %513 = vmatmul.bf16.vlgmr.msra.gmra.mxu0 %v336_v10 }
  0x2e   : > { %527 = vmatmul.bf16.vlgmr.msra.gmra.mxu1 %v336_v10  ;;  %541 = vmatmul.bf16.vlgmr.msra.gmra.mxu2 %v336_v10 }
  0xaa   : > { %v514_v15 = vpop.f32.mrf.mxu0 }
  0xab   : > { %v3089_v16 = vadd.f32 %v514_v15, %v371_v13  ;;  %v528_v17 = vpop.f32.mrf.mxu1 }
  0xac   : > { %v3091_v18 = vadd.f32 %v528_v17, %v372_v14 }
  0xad   : > { %v2496_v19 = vmul.f32 -1.442695, %v3089_v16  ;;  %v3098_v22 = vmul.f32 %v3089_v16, %v3089_v16 }
  0xae   : > { %v590_v20 = vmul.f32 %v3091_v18, %v3091_v18 }
  0xaf   : > { %2682 = vpow2.f32 %v2496_v19 }
  0xb0   : > { %v595_v26 = vadd.f32 %v590_v20, %v3098_v22 }
  0xb1   : > { %v542_v23 = vpop.f32.mrf.mxu2 }
  0xb2   : > { %v3100_v24 = vadd.f32 %v542_v23, %v373_v21  ;;  %v516_v25 = vpop.f32.mrf.mxu0 }
  0xb3   : > { %v3103_v27 = vadd.f32 %v516_v25, %v371_v13  ;;  %v530_v28 = vpop.f32.mrf.mxu1 }
  0xb4   : > { %v3105_v29 = vadd.f32 %v530_v28, %v372_v14  ;;  %v591_v30 = vmul.f32 %v3100_v24, %v3100_v24 }
  0xb5   : > { %v2683_v31 = vpop.eup %2682  ;;  %v2497_v32 = vmul.f32 -1.442695, %v3103_v27  ;;  %v3112_v35 = vmul.f32 %v3103_v27, %v3103_v27 }
  0xb6   : > { %v553_v33 = vadd.f32 1.0, %v2683_v31  ;;  %v596_v34 = vadd.f32 %v595_v26, %v591_v30  ;;  %v593_v36 = vmul.f32 %v3105_v29, %v3105_v29 }
  0xb7   : > { %2684 = vpow2.f32 %v2497_v32 }
  0xb8   : > { %2686 = vrcp.f32 %v553_v33  ;;  %597 = vadd.xlane.f32.xlu0 %v596_v34  ;;  %v599_v40 = vadd.f32 %v593_v36, %v3112_v35  ;;  %v566_v50 = vand.u32 2147483648, %v553_v33  ;;  %vm560_vm1 = vweird.f32 %v553_v33 }
  0xb9   : > { %v544_v37 = vpop.f32.mrf.mxu2  ;;  %v564_v51 = vand.u32 2147483647, %v553_v33 }
  0xba   : > { %v3116_v38 = vadd.f32 %v544_v37, %v373_v21  ;;  %v567_v55 = vor.u32 1.1754944e-38, %v566_v50 }
  0xbb   : > { %vm565_vm3 = vcmp.eq.f32.partialorder %v564_v51, 8.507059e+37 }
  0xbc   : > { %v594_v39 = vmul.f32 %v3116_v38, %v3116_v38 }
  0xbd   : > { %v2685_v41 = vpop.eup %2684 }
  0xbe   : > { %v2687_v42 = vpop.eup %2686  ;;  %v554_v43 = vadd.f32 1.0, %v2685_v41  ;;  %v600_v44 = vadd.f32 %v599_v40, %v594_v39 }
  0xbf   : > { %v556_v45 = vmul.f32 %v2687_v42, %v553_v33  ;;  %vm561_vm0 = vweird.f32 %v2687_v42 }
  0xc0   : > { %2688 = vrcp.f32 %v554_v43  ;;  %601 = vadd.xlane.f32.xlu0 %v600_v44  ;;  %vm562_vm2 = vmor %vm560_vm1, %vm561_vm0  ;;  %v581_v56 = vand.u32 2147483648, %v554_v43  ;;  %v579_v58 = vand.u32 2147483647, %v554_v43  ;;  %vm575_vm5 = vweird.f32 %v554_v43 }
  0xc1   : > { %v557_v46 = vsub.f32 1.0, %v556_v45 }
  0xc2   : > { %v582_v61 = vor.u32 1.1754944e-38, %v581_v56  ;;  %vm580_vm7 = vcmp.eq.f32.partialorder %v579_v58, 8.507059e+37  ;;  %v657_v58 = vlaneseq }
  0xc3   : > { %v558_v47 = vmul.f32 %v2687_v42, %v557_v46 }
  0xc5   : > { %v559_v48 = vadd.f32 %v2687_v42, %v558_v47 }
  0xc6   : > { %v2689_v49 = vpop.eup %2688 }
  0xc7   : > { %v571_v52 = vmul.f32 %v2689_v49, %v554_v43  ;;  %v563_v53 = vsel %vm562_vm2, %v2687_v42, %v559_v48  ;;  %vm576_vm4 = vweird.f32 %v2689_v49  ;;  %vm698_vm2 = vcmask 130048  }
  0xc8   : > { %v568_v59 = vsel %vm565_vm3, %v567_v55, %v563_v53  ;;  %vm577_vm6 = vmor %vm575_vm5, %vm576_vm4 }
  0xc9   : > { %v572_v54 = vsub.f32 1.0, %v571_v52  ;;  %v585_v63 = vmul.f32 10.0, %v568_v59 }
  0xcb   : > { %v573_v57 = vmul.f32 %v2689_v49, %v572_v54  ;;  %v587_v2 = vadd.f32 1.1, %v585_v63 }
  0xcd   : > { %v574_v60 = vadd.f32 %v2689_v49, %v573_v57  ;;  %v607_v5 = vmul.f32 %v587_v2, %v587_v2 }
  0xcf   : > { %v578_v62 = vsel %vm577_vm6, %v2689_v49, %v574_v60  ;;  %v2498_v6 = vadd.f32 -1.0, %v607_v5 }
  0xd0   : > { %v583_v0 = vsel %vm580_vm7, %v582_v61, %v578_v62 }
  0xd1   : > { %v586_v1 = vmul.f32 10.0, %v583_v0  ;;  %2690 = vrsqrt.f32 %v2498_v6  ;;  %vm618_vm8 = vcmp.eq.f32.partialorder %v2498_v6, inf  ;;  %v621_v43 = vand.u32 2147483648, %v2498_v6 }
  0xd2   : > { %vm620_vm11 = vcmp.eq.f32.partialorder %v2498_v6, 0.0  ;;  %v3127_v0 = vand.u32 127, %v657_v58 }
  0xd3   : > { %v588_v3 = vadd.f32 1.1, %v586_v1 }
  0xd4   : > { %vm661_vm3 = vcmp.eq.s32.totalorder %v3127_v0, 0 }
  0xd5   : > { %v2674_v4 = vpack.i.bf16 %v588_v3, %v587_v2  ;;  %v608_v7 = vmul.f32 %v588_v3, %v588_v3 }
  0xd7   : > { %2675 = vperm.xlu2 %2673, %v2674_v4   ;;  %v2499_v8 = vadd.f32 -1.0, %v608_v7  ;;  %v2691_v9 = vpop.eup %2690 }
  0xd8   : > { %v612_v10 = vmul.f32 %v2691_v9, %v2498_v6 }
  0xd9   : > { %2692 = vrsqrt.f32 %v2499_v8  ;;  %vm630_vm14 = vcmp.eq.f32.partialorder %v2499_v8, inf  ;;  %v633_v52 = vand.u32 2147483648, %v2499_v8  ;;  %vm632_vm1 = vcmp.eq.f32.partialorder %v2499_v8, 0.0 }
  0xda   : > { %v613_v11 = vmul.f32 %v2691_v9, %v612_v10 }
  0xdc   : > { %v614_v17 = vmul.f32 0.5, %v613_v11 }
  0xde   : > { %v615_v20 = vsub.f32 1.5, %v614_v17 }
  0xdf   : > { %v2693_v12 = vpop.eup %2692 }
  0xe0   : > { %v624_v19 = vmul.f32 %v2693_v12, %v2499_v8  ;;  %v616_v30 = vmul.f32 %v2691_v9, %v615_v20 }
  0xe2   : > { %v625_v21 = vmul.f32 %v2693_v12, %v624_v19  ;;  %v617_v34 = vmul.f32 %v2498_v6, %v616_v30 }
  0xe4   : > { %v626_v31 = vmul.f32 0.5, %v625_v21  ;;  %v619_v40 = vsel %vm618_vm8, %v2498_v6, %v617_v34 }
  0xe5   : > { %v622_v45 = vsel %vm620_vm11, %v621_v43, %v619_v40 }
  0xe6   : > { %v627_v36 = vsub.f32 1.5, %v626_v31 }
  0xe8   : > { %v628_v41 = vmul.f32 %v2693_v12, %v627_v36 }
  0xea   : > { %v629_v48 = vmul.f32 %v2499_v8, %v628_v41 }
  0xec   : > { %v631_v51 = vsel %vm630_vm14, %v2499_v8, %v629_v48 }
  0xed   : > { %v634_v54 = vsel %vm632_vm1, %v633_v52, %v631_v51 }
 0x12b   : > { %v598_v13 = vpop.xlane.xlu0 %597 }
 0x12c   : > { %v603_v14 = vsub.f32 %v598_v13, %v3098_v22 }
 0x12e   : > { %v605_v15 = vmax.f32 %v603_v14, 1e-08 }
 0x130   : > { %2694 = vrsqrt.f32 %v605_v15  ;;  %vm641_vm10 = vweird.f32 %v605_v15 }
 0x131   : > { %v2676_v63 = vpop.permute.xlu2 %2675 }
 0x132   : > { %v2678_v5 = vunpack.i.h.bf16 %v2676_v63 }
 0x133   : > { %v602_v23 = vpop.xlane.xlu0 %601 }
 0x134   : > { %v604_v25 = vsub.f32 %v602_v23, %v3112_v35 }
 0x136   : > { %v2695_v26 = vpop.eup %2694  ;;  %v606_v28 = vmax.f32 %v604_v25, 1e-08 }
 0x137   : > { %v636_v32 = vmul.f32 %v2695_v26, %v605_v15  ;;  %vm642_vm9 = vweird.f32 %v2695_v26 }
 0x138   : > { %2696 = vrsqrt.f32 %v606_v28  ;;  %vm643_vm12 = vmor %vm641_vm10, %vm642_vm9  ;;  %vm651_vm15 = vweird.f32 %v606_v28 }
 0x139   : > { %v637_v33 = vmul.f32 %v2695_v26, %v636_v32 }
 0x13b   : > { %v638_v37 = vmul.f32 0.5, %v637_v33 }
 0x13d   : > { %v639_v22 = vsub.f32 1.5, %v638_v37 }
 0x13e   : > { %v2697_v39 = vpop.eup %2696 }
 0x13f   : > { %v646_v42 = vmul.f32 %v2697_v39, %v606_v28  ;;  %v640_v35 = vmul.f32 %v2695_v26, %v639_v22  ;;  %vm652_vm13 = vweird.f32 %v2697_v39 }
 0x140   : > { %vm653_vm0 = vmor %vm651_vm15, %vm652_vm13 }
 0x141   : > { %v647_v44 = vmul.f32 %v2697_v39, %v646_v42  ;;  %v644_v46 = vsel %vm643_vm12, %v2695_v26, %v640_v35 }
 0x142   : > { %v655_v47 = vmul.f32 %v644_v46, %v622_v45 }
 0x143   : > { %v648_v49 = vmul.f32 0.5, %v647_v44  ;;  %v2639_v44 = vld [vmem:[%s3477_s3] sm:$0xff] }
 0x144   : > { %666 = vperm.xlu1 %2672, %v655_v47   ;;  %891 = vmatpush.bf16.msrb.mxu2 %v2639_v44 }
 0x145   : > { %v649_v50 = vsub.f32 1.5, %v648_v49 }
 0x147   : > { %v650_v53 = vmul.f32 %v2697_v39, %v649_v50 }
 0x149   : > { %v654_v55 = vsel %vm653_vm0, %v2697_v39, %v650_v53 }
 0x14a   : > { %v656_v56 = vmul.f32 %v654_v55, %v634_v54 }
 0x14c   : > { %671 = vperm.xlu1 %2672, %v656_v56  }
 0x1b6   : > { %v667_v57 = vpop.permute.xlu1 %666 }
 0x1b7   : > { %v675_v60 = vmul.f32 %v667_v57, %v3091_v18  ;;  %v676_v1 = vmul.f32 %v667_v57, %v3100_v24 }
 0x1be   : > { %v672_v59 = vpop.permute.xlu1 %671 }
 0x1bf   : > { %v678_v61 = vmul.f32 %v672_v59, %v3105_v29  ;;  %v679_v62 = vmul.f32 %v672_v59, %v3116_v38  ;;  %v677_v3 = vmul.f32 %v672_v59, %v3103_v27  ;;  %v674_v29 = vmul.f32 %v667_v57, %v3089_v16 }
 0x1c0   : > { %v2677_v38 = vunpack.i.l.bf16 %v2676_v63 }
 0x1c1   : > { %v3130_v2 = vpack.c.bf16 %v678_v61, %v675_v60  ;;  %v3133_v4 = vpack.c.bf16 %v679_v62, %v676_v1  ;;  %v693_v24 = vsel %vm661_vm3, %v2678_v5, %v677_v3  ;;  %v2640_v5 = vld [vmem:[%s3477_s3 + $0x8] sm:$0xff] }
 0x1c2   : > { %v690_v27 = vsel %vm661_vm3, %v2677_v38, %v674_v29 }
 0x1c3   : > { %v703_v18 = vsel %vm698_vm2, %v3130_v2, 0  ;;  %v3144_v6 = vpack.c.bf16 %v693_v24, %v690_v27 }
 0x1c4   : > { %712 = vmatpush.bf16.xpose.msra.mxu3 %v703_v18 }
 0x1cb   : > { %2500 = vmatmul.msk.bf16.vlgmr.msra.gmra.mxu3 %vm698_vm2, %v3144_v6 }
 0x1cc   : > { %761 = vmatpush.bf16.msrb.mxu3 %v3133_v4 }
 0x24e   : > { %v714_v7 = vpop.f32.mrf.mxu3 }
 0x24f   : > { %v719_v8 = vmul.f32 4.0, %v714_v7 }
 0x251   : > { %v721_v16 = vsel %vm698_vm2, %v719_v8, -inf }
 0x252   : > { %722 = vmax.xlane.f32.xlu2 %v721_v16 }
 0x256   : > { %v716_v9 = vpop.f32.mrf.mxu3 }
 0x257   : > { %v720_v10 = vmul.f32 4.0, %v716_v9 }
 0x259   : > { %v724_v11 = vsel %vm698_vm2, %v720_v10, -inf }
 0x25a   : > { %725 = vmax.xlane.f32.xlu0 %v724_v11 }
 0x26a   : > { %772 = vrot.lane.b32.xlu2 %v3144_v6, %s2861_s18 }
 0x2c5   : > { %v723_v12 = vpop.xlane.xlu2 %722 }
 0x2c6   : > { %v727_v13 = vsub.f32 %v719_v8, %v723_v12 }
 0x2c8   : > { %v729_v14 = vmul.f32 1.442695, %v727_v13 }
 0x2ca   : > { %2698 = vpow2.f32 %v729_v14 }
 0x2cd   : > { %v726_v15 = vpop.xlane.xlu0 %725  ;;  %v773_v35 = vpop.permute.xlu2 %772 }
 0x2ce   : > { %v728_v17 = vsub.f32 %v720_v10, %v726_v15 }
 0x2d0   : > { %v2699_v19 = vpop.eup %2698  ;;  %v731_v20 = vmul.f32 1.442695, %v728_v17 }
 0x2d1   : > { %v733_v21 = vsel %vm698_vm2, %v2699_v19, 0.0 }
 0x2d2   : > { %2700 = vpow2.f32 %v731_v20  ;;  %734 = vadd.xlane.f32.xlu1 %v733_v21 }
 0x2d8   : > { %v2701_v23 = vpop.eup %2700 }
 0x2d9   : > { %v736_v25 = vsel %vm698_vm2, %v2701_v23, 0.0 }
 0x2da   : > { %737 = vadd.xlane.f32.xlu0 %v736_v25 }
 0x2ee   : > { %775 = vrot.lane.b32.xlu0 %v3130_v2, %s2861_s18 }
 0x345   : > { %v735_v26 = vpop.xlane.xlu1 %734 }
 0x346   : > { %2702 = vrcp.f32 %v735_v26 }
 0x34c   : > { %v2703_v28 = vpop.eup %2702 }
 0x34d   : > { %v738_v30 = vpop.xlane.xlu0 %737  ;;  %v741_v31 = vmul.f32 %v2703_v28, %v735_v26 }
 0x34e   : > { %2704 = vrcp.f32 %v738_v30 }
 0x34f   : > { %v743_v32 = vsub.f32 2.0, %v741_v31 }
 0x351   : > { %v745_v36 = vmul.f32 %v2703_v28, %v743_v32 }
 0x353   : > { %v747_v39 = vmul.f32 %v2699_v19, %v745_v36 }
 0x354   : > { %v2705_v33 = vpop.eup %2704 }
 0x355   : > { %v742_v34 = vmul.f32 %v2705_v33, %v738_v30 }
 0x357   : > { %v744_v37 = vsub.f32 2.0, %v742_v34 }
 0x359   : > { %v746_v22 = vmul.f32 %v2705_v33, %v744_v37 }
 0x35b   : > { %v748_v40 = vmul.f32 %v2701_v23, %v746_v22 }
 0x35d   : > { %v749_v41 = vpack.c.bf16 %v748_v40, %v747_v39 }
 0x35f   : > { %2501 = vmatmul.msk.bf16.vlgmr.msrb.gmra.mxu3 %vm698_vm2, %v749_v41 }
 0x360   : > { %v776_v42 = vpop.permute.xlu0 %775 }
 0x361   : > { %v781_v43 = vsel %vm698_vm2, %v776_v42, 0 }
 0x362   : > { %790 = vmatpush.bf16.xpose.msra.mxu3 %v781_v43 }
 0x36a   : > { %868 = vmatpush.bf16.msrb.mxu3 %v2640_v5 }
 0x36f   : > { %2502 = vmatmul.msk.bf16.vlgmr.msra.gmra.mxu3 %vm698_vm2, %v773_v35 }
 0x3e2   : > { %v763_v45 = vpop.f32.mrf.mxu3 }
 0x3ea   : > { %v765_v46 = vpop.f32.mrf.mxu3 }
 0x3eb   : > { %v768_v47 = vpack.c.bf16 %v765_v46, %v763_v45 }
 0x3ed   : > { %2513 = vmatmul.msk.bf16.vlgmr.msrb.gmra.mxu2 %vm698_vm2, %v768_v47 }
 0x3f2   : > { %v792_v48 = vpop.f32.mrf.mxu3 }
 0x3f3   : > { %v797_v49 = vmul.f32 4.0, %v792_v48 }
 0x3f5   : > { %v799_v50 = vsel %vm698_vm2, %v797_v49, -inf }
 0x3f6   : > { %800 = vmax.xlane.f32.xlu0 %v799_v50 }
 0x3fa   : > { %v794_v51 = vpop.f32.mrf.mxu3 }
 0x3fb   : > { %v798_v52 = vmul.f32 4.0, %v794_v51 }
 0x3fd   : > { %v802_v53 = vsel %vm698_vm2, %v798_v52, -inf }
 0x3fe   : > { %803 = vmax.xlane.f32.xlu1 %v802_v53 }
 0x40a   : > { %1003 = vrot.lane.b32.xlu0 %v3130_v2, %s2862_s22 }
 0x412   : > { %898 = vrot.lane.b32.xlu0 %v3144_v6, %s2863_s23 }
 0x469   : > { %v801_v54 = vpop.xlane.xlu0 %800 }
 0x46a   : > { %v805_v55 = vsub.f32 %v797_v49, %v801_v54 }
 0x46c   : > { %v807_v56 = vmul.f32 1.442695, %v805_v55 }
 0x46e   : > { %2706 = vpow2.f32 %v807_v56  ;;  %v2641_v56 = vld [vmem:[%s3477_s3 + $0x10] sm:$0xff] }
 0x46f   : > { %992 = vmatpush.bf16.msrb.mxu1 %v2641_v56 }
 0x470   : > { %v3184_v23 = vpop.f32.mrf.mxu2 }
 0x471   : > { %v804_v57 = vpop.xlane.xlu1 %803 }
 0x472   : > { %v806_v59 = vsub.f32 %v798_v52, %v804_v57 }
 0x474   : > { %v2707_v60 = vpop.eup %2706  ;;  %v809_v61 = vmul.f32 1.442695, %v806_v59 }
 0x475   : > { %v811_v62 = vsel %vm698_vm2, %v2707_v60, 0.0 }
 0x476   : > { %2708 = vpow2.f32 %v809_v61  ;;  %812 = vadd.xlane.f32.xlu1 %v811_v62 }
 0x478   : > { %v3186_v28 = vpop.f32.mrf.mxu2 }
 0x47c   : > { %v2709_v63 = vpop.eup %2708  ;;  %v1004_v1 = vpop.permute.xlu0 %1003 }
 0x47d   : > { %v1009_v3 = vsel %vm698_vm2, %v1004_v1, 0  ;;  %v814_v18 = vsel %vm698_vm2, %v2709_v63, 0.0 }
 0x47e   : > { %1018 = vmatpush.bf16.xpose.msra.mxu2 %v1009_v3  ;;  %815 = vadd.xlane.f32.xlu2 %v814_v18 }
 0x484   : > { %v899_v33 = vpop.permute.xlu0 %898 }
 0x48f   : > { %829 = vrot.lane.b32.xlu1 %v3133_v4, %s2861_s18 }
 0x497   : > { %900 = vrot.lane.b32.xlu1 %v3130_v2, %s2863_s23 }
 0x49f   : > { %1001 = vrot.lane.b32.xlu1 %v3144_v6, %s2862_s22 }
 0x4e9   : > { %v813_v29 = vpop.xlane.xlu1 %812 }
 0x4ea   : > { %2710 = vrcp.f32 %v813_v29 }
 0x4f0   : > { %v2711_v24 = vpop.eup %2710 }
 0x4f1   : > { %v816_v38 = vpop.xlane.xlu2 %815  ;;  %v819_v27 = vmul.f32 %v2711_v24, %v813_v29 }
 0x4f2   : > { %2712 = vrcp.f32 %v816_v38 }
 0x4f3   : > { %v821_v8 = vsub.f32 2.0, %v819_v27 }
 0x4f5   : > { %v823_v10 = vmul.f32 %v2711_v24, %v821_v8 }
 0x4f7   : > { %v825_v13 = vmul.f32 %v2707_v60, %v823_v10 }
 0x4f8   : > { %v2713_v7 = vpop.eup %2712 }
 0x4f9   : > { %v820_v16 = vmul.f32 %v2713_v7, %v816_v38 }
 0x4fb   : > { %v822_v9 = vsub.f32 2.0, %v820_v16 }
 0x4fd   : > { %v824_v11 = vmul.f32 %v2713_v7, %v822_v9 }
 0x4ff   : > { %v826_v12 = vmul.f32 %v2709_v63, %v824_v11 }
 0x501   : > { %v830_v14 = vpop.permute.xlu1 %829  ;;  %v827_v15 = vpack.c.bf16 %v826_v12, %v825_v13 }
 0x502   : > { %842 = vmatpush.bf16.msrb.mxu0 %v830_v14 }
 0x505   : > { %2503 = vmatmul.msk.bf16.vlgmr.msrb.gmra.mxu0 %vm698_vm2, %v827_v15 }
 0x509   : > { %v901_v17 = vpop.permute.xlu1 %900 }
 0x50a   : > { %v906_v19 = vsel %vm698_vm2, %v901_v17, 0 }
 0x50b   : > { %915 = vmatpush.bf16.xpose.msra.mxu3 %v906_v19 }
 0x511   : > { %v1002_v20 = vpop.permute.xlu1 %1001 }
 0x512   : > { %2521 = vmatmul.msk.bf16.vlgmr.msra.gmra.mxu2 %vm698_vm2, %v1002_v20 }
 0x582   : > { %v844_v21 = vpop.f32.mrf.mxu0 }
 0x58a   : > { %v846_v25 = vpop.f32.mrf.mxu0 }
 0x58b   : > { %v849_v26 = vpack.c.bf16 %v846_v25, %v844_v21 }
 0x58d   : > { %2508 = vmatmul.msk.bf16.vlgmr.msrb.gmra.mxu3 %vm698_vm2, %v849_v26 }
 0x595   : > { %v1020_v30 = vpop.f32.mrf.mxu2 }
 0x596   : > { %v1025_v31 = vmul.f32 4.0, %v1020_v30  ;;  %v2642_v30 = vld [vmem:[%s3477_s3 + $0x18] sm:$0xff] }
 0x598   : > { %v1027_v32 = vsel %vm698_vm2, %v1025_v31, -inf }
 0x599   : > { %1028 = vmax.xlane.f32.xlu2 %v1027_v32 }
 0x59d   : > { %2514 = vmatmul.msk.bf16.vlgmr.msra.gmra.mxu3 %vm698_vm2, %v899_v33  ;;  %v1022_v34 = vpop.f32.mrf.mxu2 }
 0x59e   : > { %v1026_v36 = vmul.f32 4.0, %v1022_v34 }
 0x5a0   : > { %v1030_v37 = vsel %vm698_vm2, %v1026_v36, -inf }
 0x5a1   : > { %1031 = vmax.xlane.f32.xlu1 %v1030_v37 }
 0x5ba   : > { %1056 = vrot.lane.b32.xlu1 %v3133_v4, %s2862_s22 }
 0x5c2   : > { %1209 = vrot.lane.b32.xlu1 %v3130_v2, %s2864_s26 }
 0x60c   : > { %v1029_v40 = vpop.xlane.xlu2 %1028 }
 0x60d   : > { %v1033_v43 = vsub.f32 %v1025_v31, %v1029_v40 }
 0x60f   : > { %v1035_v45 = vmul.f32 1.442695, %v1033_v43 }
 0x610   : > { %v3196_v22 = vpop.f32.mrf.mxu3 }
 0x611   : > { %2714 = vpow2.f32 %v1035_v45 }
 0x614   : > { %v1032_v44 = vpop.xlane.xlu1 %1031 }
 0x615   : > { %v1034_v48 = vsub.f32 %v1026_v36, %v1032_v44 }
 0x617   : > { %v1037_v51 = vmul.f32 1.442695, %v1034_v48  ;;  %v2715_v52 = vpop.eup %2714 }
 0x618   : > { %v3198_v39 = vpop.f32.mrf.mxu3  ;;  %v1039_v53 = vsel %vm698_vm2, %v2715_v52, 0.0 }
 0x619   : > { %2716 = vpow2.f32 %v1037_v51 }
 0x61f   : > { %v2717_v54 = vpop.eup %2716 }
 0x620   : > { %v917_v41 = vpop.f32.mrf.mxu3  ;;  %v1042_v55 = vsel %vm698_vm2, %v2717_v54, 0.0 }
 0x621   : > { %v922_v42 = vmul.f32 4.0, %v917_v41 }
 0x623   : > { %v924_v35 = vsel %vm698_vm2, %v922_v42, -inf }
 0x624   : > { %925 = vmax.xlane.f32.xlu0 %v924_v35 }
 0x628   : > { %v919_v46 = vpop.f32.mrf.mxu3 }
 0x629   : > { %v923_v47 = vmul.f32 4.0, %v919_v46 }
 0x62b   : > { %v927_v49 = vsel %vm698_vm2, %v923_v47, -inf }
 0x62c   : > { %928 = vmax.xlane.f32.xlu2 %v927_v49  ;;  %v1057_v50 = vpop.permute.xlu1 %1056 }
 0x62d   : > { %1069 = vmatpush.bf16.msrb.mxu3 %v1057_v50 }
 0x634   : > { %1040 = vadd.xlane.f32.xlu2 %v1039_v53 }
 0x638   : > { %1106 = vrot.lane.b32.xlu0 %v3130_v2, %s2865_s27 }
 0x63c   : > { %1043 = vadd.xlane.f32.xlu2 %v1042_v55 }
 0x640   : > { %1104 = vrot.lane.b32.xlu0 %v3144_v6, %s2865_s27 }
 0x697   : > { %v926_v57 = vpop.xlane.xlu0 %925 }
 0x698   : > { %v930_v59 = vsub.f32 %v922_v42, %v926_v57  ;;  %v1210_v42 = vpop.permute.xlu1 %1209  ;;  %v894_v57 = vadd.f32 %v3184_v23, %v3196_v22 }
 0x699   : > { %v1215_v35 = vsel %vm698_vm2, %v1210_v42, 0 }
 0x69a   : > { %v932_v60 = vmul.f32 1.442695, %v930_v59 }
 0x69c   : > { %2718 = vpow2.f32 %v932_v60 }
 0x69f   : > { %v929_v61 = vpop.xlane.xlu2 %928 }
 0x6a0   : > { %v931_v62 = vsub.f32 %v923_v47, %v929_v61  ;;  %v896_v61 = vadd.f32 %v3186_v28, %v3198_v39 }
 0x6a2   : > { %v2719_v63 = vpop.eup %2718  ;;  %v934_v1 = vmul.f32 1.442695, %v931_v62 }
 0x6a3   : > { %v936_v3 = vsel %vm698_vm2, %v2719_v63, 0.0 }
 0x6a4   : > { %2720 = vpow2.f32 %v934_v1  ;;  %937 = vadd.xlane.f32.xlu2 %v936_v3 }
 0x6a7   : > { %v1041_v18 = vpop.xlane.xlu2 %1040 }
 0x6a8   : > { %2722 = vrcp.f32 %v1041_v18 }
 0x6aa   : > { %v2721_v5 = vpop.eup %2720  ;;  %v1107_v29 = vpop.permute.xlu0 %1106 }
 0x6ab   : > { %v1112_v38 = vsel %vm698_vm2, %v1107_v29, 0  ;;  %v939_v24 = vsel %vm698_vm2, %v2721_v5, 0.0 }
 0x6ac   : > { %1121 = vmatpush.bf16.xpose.msra.mxu1 %v1112_v38  ;;  %940 = vadd.xlane.f32.xlu2 %v939_v24 }
 0x6ae   : > { %v2723_v27 = vpop.eup %2722 }
 0x6af   : > { %v1044_v7 = vpop.xlane.xlu2 %1043  ;;  %v1047_v8 = vmul.f32 %v2723_v27, %v1041_v18 }
 0x6b0   : > { %2724 = vrcp.f32 %v1044_v7 }
 0x6b1   : > { %v1049_v16 = vsub.f32 2.0, %v1047_v8 }
 0x6b2   : > { %v1105_v51 = vpop.permute.xlu0 %1104 }
 0x6b3   : > { %v1051_v11 = vmul.f32 %v2723_v27, %v1049_v16 }
 0x6b5   : > { %v1053_v14 = vmul.f32 %v2715_v52, %v1051_v11 }
 0x6b6   : > { %v2725_v9 = vpop.eup %2724 }
 0x6b7   : > { %v1048_v10 = vmul.f32 %v2725_v9, %v1044_v7 }
 0x6b9   : > { %v1050_v12 = vsub.f32 2.0, %v1048_v10 }
 0x6bb   : > { %v1052_v13 = vmul.f32 %v2725_v9, %v1050_v12 }
 0x6bd   : > { %v1054_v15 = vmul.f32 %v2717_v54, %v1052_v13 }
 0x6bf   : > { %v1055_v17 = vpack.c.bf16 %v1054_v15, %v1053_v14 }
 0x6c1   : > { %2522 = vmatmul.msk.bf16.vlgmr.msrb.gmra.mxu3 %vm698_vm2, %v1055_v17 }
 0x6c4   : > { %953 = vrot.lane.b32.xlu2 %v3133_v4, %s2863_s23 }
 0x6cc   : > { %1207 = vrot.lane.b32.xlu2 %v3144_v6, %s2864_s26 }
 0x717   : > { %v938_v19 = vpop.xlane.xlu2 %937 }
 0x718   : > { %2726 = vrcp.f32 %v938_v19 }
 0x71e   : > { %v2727_v20 = vpop.eup %2726 }
 0x71f   : > { %v941_v21 = vpop.xlane.xlu2 %940  ;;  %v944_v25 = vmul.f32 %v2727_v20, %v938_v19 }
 0x720   : > { %2728 = vrcp.f32 %v941_v21 }
 0x721   : > { %v946_v26 = vsub.f32 2.0, %v944_v25 }
 0x723   : > { %v948_v34 = vmul.f32 %v2727_v20, %v946_v26 }
 0x725   : > { %v950_v40 = vmul.f32 %v2719_v63, %v948_v34 }
 0x726   : > { %v2729_v31 = vpop.eup %2728 }
 0x727   : > { %v945_v32 = vmul.f32 %v2729_v31, %v941_v21  ;;  %v954_v33 = vpop.permute.xlu2 %953 }
 0x728   : > { %966 = vmatpush.bf16.msra.mxu0 %v954_v33  ;;  %v2643_v33 = vld [vmem:[%s3477_s3 + $0x20] sm:$0xff] }
 0x729   : > { %v947_v36 = vsub.f32 2.0, %v945_v32  ;;  %1198 = vmatpush.bf16.msra.mxu3 %v2643_v33 }
 0x72b   : > { %v949_v37 = vmul.f32 %v2729_v31, %v947_v36 }
 0x72c   : > { %1095 = vmatpush.bf16.msrb.mxu0 %v2642_v30 }
 0x72d   : > { %v951_v41 = vmul.f32 %v2721_v5, %v949_v37 }
 0x72f   : > { %v952_v43 = vpack.c.bf16 %v951_v41, %v950_v40  ;;  %v1208_v47 = vpop.permute.xlu2 %1207 }
 0x731   : > { %2515 = vmatmul.msk.bf16.vlgmr.msra.gmra.mxu0 %vm698_vm2, %v952_v43 }
 0x732   : > { %1224 = vmatpush.bf16.xpose.msra.mxu0 %v1215_v35 }
 0x744   : > { %v1071_v44 = vpop.f32.mrf.mxu3 }
 0x74c   : > { %v1073_v45 = vpop.f32.mrf.mxu3 }
 0x74d   : > { %v1076_v46 = vpack.c.bf16 %v1073_v45, %v1071_v44 }
 0x74f   : > { %2527 = vmatmul.msk.bf16.vlgmr.msrb.gmra.mxu0 %vm698_vm2, %v1076_v46 }
 0x75f   : > { %2535 = vmatmul.msk.bf16.vlgmr.msra.gmra.mxu0 %vm698_vm2, %v1208_v47 }
 0x7ae   : > { %v968_v48 = vpop.f32.mrf.mxu0 }
 0x7b6   : > { %v970_v49 = vpop.f32.mrf.mxu0 }
 0x7b7   : > { %v973_v50 = vpack.c.bf16 %v970_v49, %v968_v48 }
 0x7b9   : > { %2520 = vmatmul.msk.bf16.vlgmr.msrb.gmra.mxu1 %vm698_vm2, %v973_v50 }
 0x7c9   : > { %2528 = vmatmul.msk.bf16.vlgmr.msra.gmra.mxu1 %vm698_vm2, %v1105_v51 }
 0x7cc   : > { %v3228_v52 = vpop.f32.mrf.mxu0 }
 0x7d4   : > { %v3230_v53 = vpop.f32.mrf.mxu0 }
 0x7dc   : > { %v1226_v54 = vpop.f32.mrf.mxu0 }
 0x7dd   : > { %v1231_v55 = vmul.f32 4.0, %v1226_v54 }
 0x7df   : > { %v1233_v56 = vsel %vm698_vm2, %v1231_v55, -inf }
 0x7e0   : > { %1234 = vmax.xlane.f32.xlu2 %v1233_v56 }
 0x7e4   : > { %v1228_v5 = vpop.f32.mrf.mxu0 }
 0x7e5   : > { %v1232_v29 = vmul.f32 4.0, %v1228_v5 }
 0x7e7   : > { %v1236_v22 = vsel %vm698_vm2, %v1232_v29, -inf }
 0x836   : > { %v994_v59 = vpop.f32.mrf.mxu1 }
 0x837   : > { %v3235_v60 = vadd.f32 %v994_v59, %v894_v57 }
 0x83e   : > { %v996_v62 = vpop.f32.mrf.mxu1 }
 0x83f   : > { %v3239_v63 = vadd.f32 %v996_v62, %v896_v61 }
 0x846   : > { %v1123_v1 = vpop.f32.mrf.mxu1 }
 0x847   : > { %v1128_v3 = vmul.f32 4.0, %v1123_v1 }
 0x849   : > { %v1130_v18 = vsel %vm698_vm2, %v1128_v3, -inf }
 0x84a   : > { %1131 = vmax.xlane.f32.xlu1 %v1130_v18 }
 0x84e   : > { %v1125_v38 = vpop.f32.mrf.mxu1 }
 0x84f   : > { %v1129_v24 = vmul.f32 4.0, %v1125_v38 }
 0x851   : > { %v1133_v23 = vsel %vm698_vm2, %v1129_v24, -inf }
 0x852   : > { %1134 = vmax.xlane.f32.xlu0 %v1133_v23  ;;  %1237 = vmax.xlane.f32.xlu1 %v1236_v22 }
 0x853   : > { %v1235_v27 = vpop.xlane.xlu2 %1234 }
 0x854   : > { %v1239_v28 = vsub.f32 %v1231_v55, %v1235_v27 }
 0x856   : > { %v1241_v39 = vmul.f32 1.442695, %v1239_v28 }
 0x858   : > { %2730 = vpow2.f32 %v1241_v39 }
 0x85e   : > { %v3244_v7 = vpop.eup %2730 }
 0x85f   : > { %v1245_v8 = vsel %vm698_vm2, %v3244_v7, 0.0 }
 0x860   : > { %1246 = vadd.xlane.f32.xlu1 %v1245_v8 }
 0x879   : > { %1262 = vrot.lane.b32.xlu1 %v3133_v4, %s2864_s26 }
 0x881   : > { %1310 = vrot.lane.b32.xlu1 %v3144_v6, %s2866_s14 }
 0x8bd   : > { %v1132_v16 = vpop.xlane.xlu1 %1131 }
 0x8be   : > { %v1136_v9 = vsub.f32 %v1128_v3, %v1132_v16 }
 0x8c0   : > { %v1138_v10 = vmul.f32 1.442695, %v1136_v9  ;;  %v1102_v9 = vadd.f32 %v3228_v52, %v3235_v60 }
 0x8c2   : > { %2732 = vpow2.f32 %v1138_v10 }
 0x8c5   : > { %v1135_v11 = vpop.xlane.xlu0 %1134  ;;  %v1238_v12 = vpop.xlane.xlu1 %1237 }
 0x8c6   : > { %v1137_v13 = vsub.f32 %v1129_v24, %v1135_v11  ;;  %v1240_v14 = vsub.f32 %v1232_v29, %v1238_v12 }
 0x8c8   : > { %v2733_v15 = vpop.eup %2732  ;;  %v1140_v17 = vmul.f32 1.442695, %v1137_v13  ;;  %v1243_v19 = vmul.f32 1.442695, %v1240_v14  ;;  %v1103_v14 = vadd.f32 %v3230_v53, %v3239_v63 }
 0x8c9   : > { %v1142_v20 = vsel %vm698_vm2, %v2733_v15, 0.0 }
 0x8ca   : > { %2734 = vpow2.f32 %v1140_v17  ;;  %1143 = vadd.xlane.f32.xlu0 %v1142_v20 }
 0x8cb   : > { %2736 = vpow2.f32 %v1243_v19 }
 0x8d0   : > { %v2735_v21 = vpop.eup %2734 }
 0x8d1   : > { %v2737_v25 = vpop.eup %2736  ;;  %v1145_v26 = vsel %vm698_vm2, %v2735_v21, 0.0 }
 0x8d2   : > { %1146 = vadd.xlane.f32.xlu2 %v1145_v26  ;;  %v1248_v30 = vsel %vm698_vm2, %v2737_v25, 0.0 }
 0x8d3   : > { %1249 = vadd.xlane.f32.xlu0 %v1248_v30  ;;  %v1247_v31 = vpop.xlane.xlu1 %1246 }
 0x8e7   : > { %1415 = vrot.lane.b32.xlu0 %v3130_v2, %s2867_s15 }
 0x8ea   : > { %1159 = vrot.lane.b32.xlu2 %v3133_v4, %s2865_s27 }
 0x8eb   : > { %v1263_v32 = vpop.permute.xlu1 %1262 }
 0x8ec   : > { %1275 = vmatpush.bf16.msrb.mxu1 %v1263_v32 }
 0x8ef   : > { %1413 = vrot.lane.b32.xlu0 %v3144_v6, %s2867_s15 }
 0x8f2   : > { %1312 = vrot.lane.b32.xlu2 %v3130_v2, %s2866_s14  ;;  %v2644_v2 = vld [vmem:[%s3477_s3 + $0x28] sm:$0xff] }
 0x8f3   : > { %v1311_v8 = vpop.permute.xlu1 %1310 }
 0x93d   : > { %v1144_v34 = vpop.xlane.xlu0 %1143 }
 0x93e   : > { %2738 = vrcp.f32 %v1144_v34 }
 0x93f   : > { %2740 = vrcp.f32 %v1247_v31 }
 0x944   : > { %v2739_v36 = vpop.eup %2738 }
 0x945   : > { %v2741_v37 = vpop.eup %2740  ;;  %v1147_v40 = vpop.xlane.xlu2 %1146  ;;  %v1150_v42 = vmul.f32 %v2739_v36, %v1144_v34 }
 0x946   : > { %2742 = vrcp.f32 %v1147_v40  ;;  %v1250_v41 = vpop.xlane.xlu0 %1249  ;;  %v1253_v43 = vmul.f32 %v2741_v37, %v1247_v31 }
 0x947   : > { %2744 = vrcp.f32 %v1250_v41  ;;  %v1152_v6 = vsub.f32 2.0, %v1150_v42 }
 0x948   : > { %v1255_v44 = vsub.f32 2.0, %v1253_v43 }
 0x949   : > { %v1154_v49 = vmul.f32 %v2739_v36, %v1152_v6 }
 0x94a   : > { %v1257_v51 = vmul.f32 %v2741_v37, %v1255_v44 }
 0x94b   : > { %v1156_v57 = vmul.f32 %v2733_v15, %v1154_v49 }
 0x94c   : > { %v2743_v35 = vpop.eup %2742  ;;  %v1259_v61 = vmul.f32 %v3244_v7, %v1257_v51 }
 0x94d   : > { %v2745_v45 = vpop.eup %2744  ;;  %v1151_v46 = vmul.f32 %v2743_v35, %v1147_v40  ;;  %v1160_v47 = vpop.permute.xlu2 %1159 }
 0x94e   : > { %v1254_v48 = vmul.f32 %v2745_v45, %v1250_v41  ;;  %1172 = vmatpush.bf16.msrb.mxu2 %v1160_v47 }
 0x94f   : > { %v1153_v50 = vsub.f32 2.0, %v1151_v46 }
 0x950   : > { %v1256_v54 = vsub.f32 2.0, %v1254_v48 }
 0x951   : > { %v1155_v55 = vmul.f32 %v2743_v35, %v1153_v50 }
 0x952   : > { %1301 = vmatpush.bf16.msra.mxu2 %v2644_v2  ;;  %v1258_v56 = vmul.f32 %v2745_v45, %v1256_v54 }
 0x953   : > { %v1157_v59 = vmul.f32 %v2735_v21, %v1155_v55 }
 0x954   : > { %v1260_v62 = vmul.f32 %v2737_v25, %v1258_v56 }
 0x955   : > { %v1158_v1 = vpack.c.bf16 %v1157_v59, %v1156_v57  ;;  %v1313_v3 = vpop.permute.xlu2 %1312 }
 0x956   : > { %v1261_v18 = vpack.c.bf16 %v1260_v62, %v1259_v61  ;;  %v1318_v5 = vsel %vm698_vm2, %v1313_v3, 0 }
 0x957   : > { %2529 = vmatmul.msk.bf16.vlgmr.msrb.gmra.mxu2 %vm698_vm2, %v1158_v1  ;;  %1327 = vmatpush.bf16.xpose.msrb.mxu3 %v1318_v5 }
 0x958   : > { %2536 = vmatmul.msk.bf16.vlgmr.msrb.gmra.mxu1 %vm698_vm2, %v1261_v18 }
 0x959   : > { %v1416_v29 = vpop.permute.xlu0 %1415 }
 0x95a   : > { %v1421_v38 = vsel %vm698_vm2, %v1416_v29, 0 }
 0x95b   : > { %1430 = vmatpush.bf16.xpose.msrb.mxu2 %v1421_v38 }
 0x961   : > { %v1414_v7 = vpop.permute.xlu0 %1413 }
 0x9d5   : > { %v1277_v24 = vpop.f32.mrf.mxu1 }
 0x9da   : > { %v1174_v23 = vpop.f32.mrf.mxu2 }
 0x9dd   : > { %v1279_v22 = vpop.f32.mrf.mxu1 }
 0x9de   : > { %v1282_v27 = vpack.c.bf16 %v1279_v22, %v1277_v24 }
 0x9e0   : > { %2541 = vmatmul.msk.bf16.vlgmr.msra.gmra.mxu2 %vm698_vm2, %v1282_v27 }
 0x9e2   : > { %v1176_v28 = vpop.f32.mrf.mxu2 }
 0x9e3   : > { %v1179_v39 = vpack.c.bf16 %v1176_v28, %v1174_v23 }
 0x9e5   : > { %2534 = vmatmul.msk.bf16.vlgmr.msra.gmra.mxu3 %vm698_vm2, %v1179_v39 }
 0x9f0   : > { %2549 = vmatmul.msk.bf16.vlgmr.msrb.gmra.mxu2 %vm698_vm2, %v1414_v7 }
 0x9f5   : > { %2542 = vmatmul.msk.bf16.vlgmr.msrb.gmra.mxu3 %vm698_vm2, %v1311_v8 }
 0xa63   : > { %v1303_v16 = vpop.f32.mrf.mxu2 }
 0xa68   : > { %v1200_v10 = vpop.f32.mrf.mxu3 }
 0xa69   : > { %v1205_v11 = vadd.f32 %v1200_v10, %v1102_v9 }
 0xa6b   : > { %v1305_v12 = vpop.f32.mrf.mxu2  ;;  %v3280_v13 = vadd.f32 %v1303_v16, %v1205_v11 }
 0xa70   : > { %v1202_v15 = vpop.f32.mrf.mxu3 }
 0xa71   : > { %v1206_v17 = vadd.f32 %v1202_v15, %v1103_v14 }
 0xa73   : > { %v1432_v19 = vpop.f32.mrf.mxu2  ;;  %v3284_v20 = vadd.f32 %v1305_v12, %v1206_v17 }
 0xa74   : > { %v1437_v21 = vmul.f32 4.0, %v1432_v19  ;;  %v2645_v19 = vld [vmem:[%s3477_s3 + $0x30] sm:$0xff] }
 0xa75   : > { %1404 = vmatpush.bf16.msra.mxu1 %v2645_v19 }
 0xa76   : > { %v1439_v25 = vsel %vm698_vm2, %v1437_v21, -inf }
 0xa77   : > { %1440 = vmax.xlane.f32.xlu2 %v1439_v25 }
 0xa78   : > { %v1329_v26 = vpop.f32.mrf.mxu3 }
 0xa79   : > { %v1334_v30 = vmul.f32 4.0, %v1329_v26 }
 0xa7b   : > { %v1434_v52 = vpop.f32.mrf.mxu2  ;;  %v1336_v60 = vsel %vm698_vm2, %v1334_v30, -inf }
 0xa7c   : > { %v1438_v31 = vmul.f32 4.0, %v1434_v52  ;;  %1337 = vmax.xlane.f32.xlu1 %v1336_v60 }
 0xa7e   : > { %v1442_v32 = vsel %vm698_vm2, %v1438_v31, -inf }
 0xa7f   : > { %1443 = vmax.xlane.f32.xlu0 %v1442_v32 }
 0xa80   : > { %v1331_v53 = vpop.f32.mrf.mxu3 }
 0xa81   : > { %v1335_v63 = vmul.f32 4.0, %v1331_v53 }
 0xa83   : > { %v1339_v33 = vsel %vm698_vm2, %v1335_v63, -inf }
 0xa84   : > { %1340 = vmax.xlane.f32.xlu2 %v1339_v33 }
 0xaea   : > { %v1441_v34 = vpop.xlane.xlu2 %1440 }
 0xaeb   : > { %v1445_v36 = vsub.f32 %v1437_v21, %v1441_v34  ;;  %v2646_v21 = vld [vmem:[%s3477_s3 + $0x38] sm:$0xff] }
 0xaed   : > { %v1447_v37 = vmul.f32 1.442695, %v1445_v36 }
 0xaef   : > { %2746 = vpow2.f32 %v1447_v37  ;;  %v1338_v40 = vpop.xlane.xlu1 %1337 }
 0xaf0   : > { %v1342_v41 = vsub.f32 %v1334_v30, %v1338_v40 }
 0xaf2   : > { %v1344_v42 = vmul.f32 1.442695, %v1342_v41  ;;  %v1444_v43 = vpop.xlane.xlu0 %1443 }
 0xaf3   : > { %v1446_v6 = vsub.f32 %v1438_v31, %v1444_v43 }
 0xaf4   : > { %2748 = vpow2.f32 %v1344_v42 }
 0xaf5   : > { %v2747_v2 = vpop.eup %2746  ;;  %v1449_v35 = vmul.f32 1.442695, %v1446_v6 }
 0xaf6   : > { %v1451_v44 = vsel %vm698_vm2, %v2747_v2, 0.0 }
 0xaf7   : > { %2750 = vpow2.f32 %v1449_v35  ;;  %1452 = vadd.xlane.f32.xlu0 %v1451_v44  ;;  %v1341_v45 = vpop.xlane.xlu2 %1340 }
 0xaf8   : > { %v1343_v46 = vsub.f32 %v1335_v63, %v1341_v45  ;;  %v2680_v63 = vld [vmem:[%s3478_s4] ss:$0 sm:$0xff] }
 0xafa   : > { %v2749_v47 = vpop.eup %2748  ;;  %v1346_v48 = vmul.f32 1.442695, %v1343_v46 }
 0xafb   : > { %v1348_v49 = vsel %vm698_vm2, %v2749_v47, 0.0 }
 0xafc   : > { %2752 = vpow2.f32 %v1346_v48  ;;  %1349 = vadd.xlane.f32.xlu2 %v1348_v49 }
 0xafd   : > { %v2751_v50 = vpop.eup %2750 }
 0xafe   : > { %v1454_v51 = vsel %vm698_vm2, %v2751_v50, 0.0 }
 0xaff   : > { %1455 = vadd.xlane.f32.xlu1 %v1454_v51 }
 0xb02   : > { %v2753_v54 = vpop.eup %2752 }
 0xb03   : > { %v1351_v55 = vsel %vm698_vm2, %v2753_v54, 0.0 }
 0xb04   : > { %1352 = vadd.xlane.f32.xlu0 %v1351_v55 }
 0xb14   : > { %1365 = vrot.lane.b32.xlu2 %v3133_v4, %s2866_s14 }
 0xb18   : > { %1468 = vrot.lane.b32.xlu1 %v3133_v4, %s2867_s15 }
 0xb6a   : > { %v1453_v56 = vpop.xlane.xlu0 %1452 }
 0xb6f   : > { %v1350_v57 = vpop.xlane.xlu2 %1349 }
 0xb70   : > { %2754 = vrcp.f32 %v1350_v57 }
 0xb72   : > { %v1456_v59 = vpop.xlane.xlu1 %1455 }
 0xb73   : > { %2756 = vrcp.f32 %v1456_v59 }
 0xb74   : > { %2758 = vrcp.f32 %v1453_v56 }
 0xb76   : > { %v2755_v61 = vpop.eup %2754 }
 0xb77   : > { %v1353_v62 = vpop.xlane.xlu0 %1352  ;;  %v1366_v1 = vpop.permute.xlu2 %1365  ;;  %v1356_v18 = vmul.f32 %v2755_v61, %v1350_v57 }
 0xb78   : > { %2760 = vrcp.f32 %v1353_v62  ;;  %1378 = vmatpush.bf16.msrb.mxu0 %v1366_v1 }
 0xb79   : > { %v2757_v3 = vpop.eup %2756  ;;  %v1358_v38 = vsub.f32 2.0, %v1356_v18 }
 0xb7a   : > { %v2759_v5 = vpop.eup %2758  ;;  %v1460_v29 = vmul.f32 %v2757_v3, %v1456_v59 }
 0xb7b   : > { %v1459_v23 = vmul.f32 %v2759_v5, %v1453_v56  ;;  %v1360_v27 = vmul.f32 %v2755_v61, %v1358_v38 }
 0xb7c   : > { %v1462_v4 = vsub.f32 2.0, %v1460_v29  ;;  %1507 = vmatpush.bf16.msra.mxu0 %v2646_v21 }
 0xb7d   : > { %v1461_v39 = vsub.f32 2.0, %v1459_v23  ;;  %v1362_v16 = vmul.f32 %v2749_v47, %v1360_v27 }
 0xb7e   : > { %v2761_v24 = vpop.eup %2760  ;;  %v1464_v8 = vmul.f32 %v2757_v3, %v1462_v4 }
 0xb7f   : > { %v1357_v22 = vmul.f32 %v2761_v24, %v1353_v62  ;;  %v1463_v10 = vmul.f32 %v2759_v5, %v1461_v39 }
 0xb80   : > { %v1466_v12 = vmul.f32 %v2751_v50, %v1464_v8 }
 0xb81   : > { %v1359_v28 = vsub.f32 2.0, %v1357_v22  ;;  %v1465_v14 = vmul.f32 %v2747_v2, %v1463_v10 }
 0xb83   : > { %v1361_v7 = vmul.f32 %v2761_v24, %v1359_v28  ;;  %v1467_v17 = vpack.c.bf16 %v1466_v12, %v1465_v14 }
 0xb85   : > { %v1363_v9 = vmul.f32 %v2753_v54, %v1361_v7 }
 0xb87   : > { %v1364_v11 = vpack.c.bf16 %v1363_v9, %v1362_v16 }
 0xb89   : > { %2543 = vmatmul.msk.bf16.vlgmr.msrb.gmra.mxu0 %vm698_vm2, %v1364_v11 }
 0xb8a   : > { %v1469_v15 = vpop.permute.xlu1 %1468 }
 0xb8b   : > { %1481 = vmatpush.bf16.msra.mxu3 %v1469_v15 }
 0xb8e   : > { %2550 = vmatmul.msk.bf16.vlgmr.msra.gmra.mxu3 %vm698_vm2, %v1467_v17 }
 0xc06   : > { %v1380_v25 = vpop.f32.mrf.mxu0 }
 0xc0e   : > { %v1382_v26 = vpop.f32.mrf.mxu0 }
 0xc0f   : > { %v1385_v30 = vpack.c.bf16 %v1382_v26, %v1380_v25 }
 0xc11   : > { %v1483_v52 = vpop.f32.mrf.mxu3  ;;  %2548 = vmatmul.msk.bf16.vlgmr.msra.gmra.mxu1 %vm698_vm2, %v1385_v30 }
 0xc19   : > { %v1485_v60 = vpop.f32.mrf.mxu3 }
 0xc1a   : > { %v1488_v31 = vpack.c.bf16 %v1485_v60, %v1483_v52 }
 0xc1c   : > { %2555 = vmatmul.msk.bf16.vlgmr.msra.gmra.mxu0 %vm698_vm2, %v1488_v31 }
 0xc8e   : > { %v1406_v32 = vpop.f32.mrf.mxu1 }
 0xc8f   : > { %v1411_v53 = vadd.f32 %v1406_v32, %v3280_v13 }
 0xc96   : > { %v1408_v37 = vpop.f32.mrf.mxu1 }
 0xc97   : > { %v1412_v42 = vadd.f32 %v1408_v37, %v3284_v20 }
 0xc99   : > { %v1509_v33 = vpop.f32.mrf.mxu0 }
 0xc9a   : > { %v1514_v34 = vadd.f32 %v1509_v33, %v1411_v53 }
 0xc9c   : > { %v3312_v36 = vadd.f32 %v2680_v63, %v1514_v34 }
 0xc9e   : > { %v2556_v40 = vmul.f32 -1.442695, %v3312_v36  ;;  %v1564_v41 = vmul.f32 %v3312_v36, %v3312_v36 }
 0xca0   : > { %2762 = vpow2.f32 %v2556_v40  ;;  %1566 = vadd.xlane.f32.xlu0 %v1564_v41 }
 0xca1   : > { %v1511_v43 = vpop.f32.mrf.mxu0 }
 0xca2   : > { %v1515_v13 = vadd.f32 %v1511_v43, %v1412_v42 }
 0xca4   : > { %v3318_v6 = vadd.f32 %v2680_v63, %v1515_v13 }
 0xca6   : > { %v2763_v2 = vpop.eup %2762  ;;  %v3322_v35 = vmul.f32 %v3318_v6, %v3318_v6  ;;  %v2557_v59 = vmul.f32 -1.442695, %v3318_v6 }
 0xca7   : > { %v1528_v44 = vadd.f32 1.0, %v2763_v2 }
 0xca8   : > { %1568 = vadd.xlane.f32.xlu0 %v3322_v35 }
 0xca9   : > { %2764 = vrcp.f32 %v1528_v44  ;;  %v1541_v48 = vand.u32 2147483648, %v1528_v44  ;;  %v1539_v49 = vand.u32 2147483647, %v1528_v44  ;;  %vm1535_vm5 = vweird.f32 %v1528_v44 }
 0xcaa   : > { %2766 = vpow2.f32 %v2557_v59 }
 0xcab   : > { %v1542_v51 = vor.u32 1.1754944e-38, %v1541_v48  ;;  %vm1540_vm7 = vcmp.eq.f32.partialorder %v1539_v49, 8.507059e+37 }
 0xcaf   : > { %v2765_v45 = vpop.eup %2764 }
 0xcb0   : > { %v1531_v46 = vmul.f32 %v2765_v45, %v1528_v44  ;;  %vm1536_vm4 = vweird.f32 %v2765_v45  ;;  %v2767_v61 = vpop.eup %2766 }
 0xcb1   : > { %vm1537_vm6 = vmor %vm1535_vm5, %vm1536_vm4  ;;  %v1529_v62 = vadd.f32 1.0, %v2767_v61 }
 0xcb2   : > { %v1532_v47 = vsub.f32 1.0, %v1531_v46 }
 0xcb3   : > { %2768 = vrcp.f32 %v1529_v62  ;;  %v1556_v38 = vand.u32 2147483648, %v1529_v62  ;;  %vm1550_vm9 = vweird.f32 %v1529_v62  ;;  %v1554_v24 = vand.u32 2147483647, %v1529_v62 }
 0xcb4   : > { %v1533_v20 = vmul.f32 %v2765_v45, %v1532_v47 }
 0xcb5   : > { %v1557_v22 = vor.u32 1.1754944e-38, %v1556_v38  ;;  %vm1555_vm11 = vcmp.eq.f32.partialorder %v1554_v24, 8.507059e+37 }
 0xcb6   : > { %v1534_v50 = vadd.f32 %v2765_v45, %v1533_v20 }
 0xcb8   : > { %v1538_v54 = vsel %vm1537_vm6, %v2765_v45, %v1534_v50 }
 0xcb9   : > { %v1543_v55 = vsel %vm1540_vm7, %v1542_v51, %v1538_v54  ;;  %v2769_v1 = vpop.eup %2768 }
 0xcba   : > { %v1560_v56 = vmul.f32 10.0, %v1543_v55  ;;  %v1546_v3 = vmul.f32 %v2769_v1, %v1529_v62  ;;  %vm1551_vm8 = vweird.f32 %v2769_v1 }
 0xcbb   : > { %vm1552_vm10 = vmor %vm1550_vm9, %vm1551_vm8 }
 0xcbc   : > { %v1562_v57 = vadd.f32 1.1, %v1560_v56  ;;  %v1547_v18 = vsub.f32 1.0, %v1546_v3 }
 0xcbe   : > { %1638 = vperm.xlu2 %2673, %v1562_v57   ;;  %v1548_v5 = vmul.f32 %v2769_v1, %v1547_v18  ;;  %v1574_v28 = vmul.f32 %v1562_v57, %v1562_v57  ;;  %v2850_v18 = vld [vmem:[%s3073_s28] sm:$0xff] }
 0xcc0   : > { %v1549_v29 = vadd.f32 %v2769_v1, %v1548_v5  ;;  %v2558_v7 = vadd.f32 -1.0, %v1574_v28  ;;  %v2851_v28 = vld [vmem:[%s3073_s28 + $0x8] sm:$0xff] }
 0xcc2   : > { %v1553_v23 = vsel %vm1552_vm10, %v2769_v1, %v1549_v29  ;;  %2770 = vrsqrt.f32 %v2558_v7  ;;  %vm1585_vm13 = vcmp.eq.f32.partialorder %v2558_v7, inf  ;;  %v1588_v44 = vand.u32 2147483648, %v2558_v7 }
 0xcc3   : > { %v1558_v4 = vsel %vm1555_vm11, %v1557_v22, %v1553_v23  ;;  %vm1587_vm0 = vcmp.eq.f32.partialorder %v2558_v7, 0.0 }
 0xcc4   : > { %v1561_v27 = vmul.f32 10.0, %v1558_v4 }
 0xcc6   : > { %v1563_v39 = vadd.f32 1.1, %v1561_v27 }
 0xcc8   : > { %v1575_v8 = vmul.f32 %v1563_v39, %v1563_v39  ;;  %v2771_v9 = vpop.eup %2770 }
 0xcc9   : > { %v1579_v10 = vmul.f32 %v2771_v9, %v2558_v7 }
 0xcca   : > { %v2559_v16 = vadd.f32 -1.0, %v1575_v8 }
 0xccb   : > { %v1580_v11 = vmul.f32 %v2771_v9, %v1579_v10 }
 0xccc   : > { %2772 = vrsqrt.f32 %v2559_v16  ;;  %vm1597_vm4 = vcmp.eq.f32.partialorder %v2559_v16, inf  ;;  %v1600_v54 = vand.u32 2147483648, %v2559_v16  ;;  %vm1599_vm7 = vcmp.eq.f32.partialorder %v2559_v16, 0.0 }
 0xccd   : > { %v1581_v19 = vmul.f32 0.5, %v1580_v11 }
 0xccf   : > { %v1582_v25 = vsub.f32 1.5, %v1581_v19 }
 0xcd1   : > { %v1583_v32 = vmul.f32 %v2771_v9, %v1582_v25 }
 0xcd2   : > { %v2773_v12 = vpop.eup %2772 }
 0xcd3   : > { %v1591_v21 = vmul.f32 %v2773_v12, %v2559_v16  ;;  %v1584_v34 = vmul.f32 %v2558_v7, %v1583_v32 }
 0xcd5   : > { %v1592_v26 = vmul.f32 %v2773_v12, %v1591_v21  ;;  %v1586_v43 = vsel %vm1585_vm13, %v2558_v7, %v1584_v34 }
 0xcd6   : > { %v1589_v46 = vsel %vm1587_vm0, %v1588_v44, %v1586_v43 }
 0xcd7   : > { %v1593_v53 = vmul.f32 0.5, %v1592_v26 }
 0xcd9   : > { %v1594_v37 = vsub.f32 1.5, %v1593_v53 }
 0xcdb   : > { %v1595_v13 = vmul.f32 %v2773_v12, %v1594_v37 }
 0xcdd   : > { %v1596_v20 = vmul.f32 %v2559_v16, %v1595_v13 }
 0xcdf   : > { %v1598_v51 = vsel %vm1597_vm4, %v2559_v16, %v1596_v20 }
 0xce0   : > { %v1601_v56 = vsel %vm1599_vm7, %v1600_v54, %v1598_v51 }
 0xd13   : > { %v1567_v14 = vpop.xlane.xlu0 %1566 }
 0xd14   : > { %v1570_v15 = vsub.f32 %v1567_v14, %v1564_v41 }
 0xd16   : > { %v1572_v17 = vmax.f32 %v1570_v15, 1e-08 }
 0xd18   : > { %2774 = vrsqrt.f32 %v1572_v17  ;;  %vm1608_vm14 = vweird.f32 %v1572_v17  ;;  %v1639_v1 = vpop.permute.xlu2 %1638 }
 0xd1b   : > { %v1569_v30 = vpop.xlane.xlu0 %1568 }
 0xd1c   : > { %v1571_v52 = vsub.f32 %v1569_v30, %v3322_v35 }
 0xd1e   : > { %v2775_v60 = vpop.eup %2774  ;;  %v1573_v31 = vmax.f32 %v1571_v52, 1e-08 }
 0xd1f   : > { %v1603_v63 = vmul.f32 %v2775_v60, %v1572_v17  ;;  %vm1609_vm12 = vweird.f32 %v2775_v60 }
 0xd20   : > { %2776 = vrsqrt.f32 %v1573_v31  ;;  %vm1610_vm15 = vmor %vm1608_vm14, %vm1609_vm12  ;;  %vm1618_vm5 = vweird.f32 %v1573_v31 }
 0xd21   : > { %v1604_v33 = vmul.f32 %v2775_v60, %v1603_v63 }
 0xd23   : > { %v1605_v40 = vmul.f32 0.5, %v1604_v33 }
 0xd25   : > { %v1606_v41 = vsub.f32 1.5, %v1605_v40 }
 0xd26   : > { %v2777_v42 = vpop.eup %2776 }
 0xd27   : > { %v1613_v2 = vmul.f32 %v2777_v42, %v1573_v31  ;;  %v1607_v35 = vmul.f32 %v2775_v60, %v1606_v41  ;;  %vm1619_vm1 = vweird.f32 %v2777_v42 }
 0xd28   : > { %vm1620_vm6 = vmor %vm1618_vm5, %vm1619_vm1 }
 0xd29   : > { %v1614_v45 = vmul.f32 %v2777_v42, %v1613_v2  ;;  %v1611_v47 = vsel %vm1610_vm15, %v2775_v60, %v1607_v35 }
 0xd2a   : > { %v1622_v48 = vmul.f32 %v1611_v47, %v1589_v46 }
 0xd2b   : > { %v1615_v49 = vmul.f32 0.5, %v1614_v45 }
 0xd2c   : > { %1626 = vperm.xlu0 %2679, %v1622_v48  }
 0xd2d   : > { %v1616_v50 = vsub.f32 1.5, %v1615_v49 }
 0xd2f   : > { %v1617_v55 = vmul.f32 %v2777_v42, %v1616_v50 }
 0xd31   : > { %v1621_v57 = vsel %vm1620_vm6, %v2777_v42, %v1617_v55 }
 0xd32   : > { %v1623_v59 = vmul.f32 %v1621_v57, %v1601_v56 }
 0xd34   : > { %1631 = vperm.xlu1 %2672, %v1623_v59  }
 0xd3c   : > { %1643 = vperm.xlu1 %2672, %v1563_v39  }
 0xd9e   : > { %v1627_v61 = vpop.permute.xlu0 %1626 }
 0xd9f   : > { %v1634_v62 = vmul.f32 %v1627_v61, %v3312_v36 }
 0xda1   : > { %v1646_v3 = vsel %vm661_vm3, %v1639_v1, %v1634_v62 }
 0xda2   : > { %v3331_v5 = vadd.f32 %v2850_v18, %v1646_v3 }
 0xda4   : > { %v3335_v29 = vmul.f32 %v3331_v5, %v3331_v5  ;;  %v2560_v38 = vmul.f32 -1.442695, %v3331_v5 }
 0xda6   : > { %1694 = vadd.xlane.f32.xlu2 %v3335_v29  ;;  %2778 = vpow2.f32 %v2560_v38  ;;  %v1632_v24 = vpop.permute.xlu1 %1631 }
 0xda7   : > { %v1635_v22 = vmul.f32 %v1632_v24, %v3318_v6 }
 0xdac   : > { %v2779_v23 = vpop.eup %2778 }
 0xdad   : > { %v1656_v36 = vadd.f32 1.0, %v2779_v23 }
 0xdae   : > { %v1644_v4 = vpop.permute.xlu1 %1643 }
 0xdaf   : > { %2780 = vrcp.f32 %v1656_v36  ;;  %v1647_v27 = vsel %vm661_vm3, %v1644_v4, %v1635_v22  ;;  %v1669_v10 = vand.u32 2147483648, %v1656_v36  ;;  %v1667_v6 = vand.u32 2147483647, %v1656_v36 }
 0xdb0   : > { %v3343_v39 = vadd.f32 %v2851_v28, %v1647_v27  ;;  %vm1663_vm9 = vweird.f32 %v1656_v36 }
 0xdb1   : > { %v1670_v14 = vor.u32 1.1754944e-38, %v1669_v10  ;;  %vm1668_vm11 = vcmp.eq.f32.partialorder %v1667_v6, 8.507059e+37 }
 0xdb2   : > { %v3347_v7 = vmul.f32 %v3343_v39, %v3343_v39  ;;  %v2561_v25 = vmul.f32 -1.442695, %v3343_v39 }
 0xdb4   : > { %1696 = vadd.xlane.f32.xlu1 %v3347_v7  ;;  %2782 = vpow2.f32 %v2561_v25 }
 0xdb5   : > { %v2781_v8 = vpop.eup %2780 }
 0xdb6   : > { %v1659_v16 = vmul.f32 %v2781_v8, %v1656_v36  ;;  %vm1664_vm8 = vweird.f32 %v2781_v8 }
 0xdb7   : > { %vm1665_vm10 = vmor %vm1663_vm9, %vm1664_vm8 }
 0xdb8   : > { %v1660_v9 = vsub.f32 1.0, %v1659_v16 }
 0xdba   : > { %v1661_v11 = vmul.f32 %v2781_v8, %v1660_v9  ;;  %v2783_v26 = vpop.eup %2782 }
 0xdbb   : > { %v1657_v30 = vadd.f32 1.0, %v2783_v26 }
 0xdbc   : > { %v1662_v12 = vadd.f32 %v2781_v8, %v1661_v11 }
 0xdbd   : > { %2784 = vrcp.f32 %v1657_v30  ;;  %v1684_v63 = vand.u32 2147483648, %v1657_v30  ;;  %vm1678_vm13 = vweird.f32 %v1657_v30  ;;  %v1682_v33 = vand.u32 2147483647, %v1657_v30 }
 0xdbe   : > { %v1666_v15 = vsel %vm1665_vm10, %v2781_v8, %v1662_v12 }
 0xdbf   : > { %v1671_v17 = vsel %vm1668_vm11, %v1670_v14, %v1666_v15  ;;  %v1685_v40 = vor.u32 1.1754944e-38, %v1684_v63  ;;  %vm1683_vm15 = vcmp.eq.f32.partialorder %v1682_v33, 8.507059e+37  ;;  %v2654_v33 = vld [vmem:[%s3479_s5 + $0x38] sm:$0xff] }
 0xdc0   : > { %v1688_v19 = vmul.f32 10.0, %v1671_v17  ;;  %1903 = vmatpush.bf16.msrb.mxu1 %v2654_v33 }
 0xdc2   : > { %v1690_v21 = vadd.f32 1.1, %v1688_v19 }
 0xdc3   : > { %v2785_v52 = vpop.eup %2784 }
 0xdc4   : > { %1766 = vperm.xlu2 %2673, %v1690_v21   ;;  %v1674_v60 = vmul.f32 %v2785_v52, %v1657_v30  ;;  %vm1679_vm12 = vweird.f32 %v2785_v52  ;;  %v1702_v37 = vmul.f32 %v1690_v21, %v1690_v21 }
 0xdc5   : > { %vm1680_vm14 = vmor %vm1678_vm13, %vm1679_vm12 }
 0xdc6   : > { %v1675_v31 = vsub.f32 1.0, %v1674_v60  ;;  %v2562_v42 = vadd.f32 -1.0, %v1702_v37 }
 0xdc8   : > { %v1676_v32 = vmul.f32 %v2785_v52, %v1675_v31  ;;  %2786 = vrsqrt.f32 %v2562_v42  ;;  %vm1713_vm1 = vcmp.eq.f32.partialorder %v2562_v42, inf  ;;  %v1716_v36 = vand.u32 2147483648, %v2562_v42 }
 0xdc9   : > { %vm1715_vm6 = vcmp.eq.f32.partialorder %v2562_v42, 0.0 }
 0xdca   : > { %v1677_v53 = vadd.f32 %v2785_v52, %v1676_v32 }
 0xdcc   : > { %v1681_v34 = vsel %vm1680_vm14, %v2785_v52, %v1677_v53 }
 0xdcd   : > { %v1686_v41 = vsel %vm1683_vm15, %v1685_v40, %v1681_v34 }
 0xdce   : > { %v1689_v43 = vmul.f32 10.0, %v1686_v41  ;;  %v2787_v2 = vpop.eup %2786  ;;  %v2652_v41 = vld [vmem:[%s3479_s5 + $0x28] sm:$0xff] }
 0xdcf   : > { %v1707_v35 = vmul.f32 %v2787_v2, %v2562_v42 }
 0xdd0   : > { %v1691_v13 = vadd.f32 1.1, %v1689_v43 }
 0xdd1   : > { %v1708_v46 = vmul.f32 %v2787_v2, %v1707_v35 }
 0xdd2   : > { %v1703_v44 = vmul.f32 %v1691_v13, %v1691_v13 }
 0xdd3   : > { %v1709_v49 = vmul.f32 0.5, %v1708_v46 }
 0xdd4   : > { %v2563_v45 = vadd.f32 -1.0, %v1703_v44 }
 0xdd5   : > { %v1710_v51 = vsub.f32 1.5, %v1709_v49 }
 0xdd6   : > { %2788 = vrsqrt.f32 %v2563_v45  ;;  %vm1725_vm8 = vcmp.eq.f32.partialorder %v2563_v45, inf  ;;  %v1728_v15 = vand.u32 2147483648, %v2563_v45  ;;  %vm1727_vm11 = vcmp.eq.f32.partialorder %v2563_v45, 0.0 }
 0xdd7   : > { %v1711_v56 = vmul.f32 %v2787_v2, %v1710_v51 }
 0xdd9   : > { %v1712_v3 = vmul.f32 %v2562_v42, %v1711_v56 }
 0xddc   : > { %v2789_v50 = vpop.eup %2788 }
 0xddd   : > { %v1719_v54 = vmul.f32 %v2789_v50, %v2563_v45 }
 0xddf   : > { %v1720_v59 = vmul.f32 %v2789_v50, %v1719_v54  ;;  %v2649_v54 = vld [vmem:[%s3479_s5 + $0x10] sm:$0xff] }
 0xde1   : > { %v1721_v24 = vmul.f32 0.5, %v1720_v59 }
 0xde3   : > { %v1722_v4 = vsub.f32 1.5, %v1721_v24 }
 0xe19   : > { %v1695_v47 = vpop.xlane.xlu2 %1694 }
 0xe1a   : > { %v1698_v48 = vsub.f32 %v1695_v47, %v3335_v29  ;;  %v1714_v29 = vsel %vm1713_vm1, %v2562_v42, %v1712_v3  ;;  %v2647_v3 = vld [vmem:[%s3479_s5] sm:$0xff] }
 0xe1b   : > { %v1717_v27 = vsel %vm1715_vm6, %v1716_v36, %v1714_v29 }
 0xe1c   : > { %v1700_v20 = vmax.f32 %v1698_v48, 1e-08 }
 0xe1e   : > { %2790 = vrsqrt.f32 %v1700_v20  ;;  %vm1736_vm4 = vweird.f32 %v1700_v20 }
 0xe21   : > { %v1767_v52 = vpop.permute.xlu2 %1766 }
 0xe24   : > { %v2791_v55 = vpop.eup %2790 }
 0xe25   : > { %v1731_v57 = vmul.f32 %v2791_v55, %v1700_v20  ;;  %vm1737_vm0 = vweird.f32 %v2791_v55 }
 0xe26   : > { %vm1738_vm5 = vmor %vm1736_vm4, %vm1737_vm0 }
 0xe27   : > { %v1732_v61 = vmul.f32 %v2791_v55, %v1731_v57  ;;  %v1697_v62 = vpop.xlane.xlu1 %1696  ;;  %v2648_v57 = vld [vmem:[%s3479_s5 + $0x8] sm:$0xff] }
 0xe28   : > { %v1699_v1 = vsub.f32 %v1697_v62, %v3347_v7  ;;  %v1723_v7 = vmul.f32 %v2789_v50, %v1722_v4 }
 0xe29   : > { %v1733_v18 = vmul.f32 0.5, %v1732_v61 }
 0xe2a   : > { %v1701_v38 = vmax.f32 %v1699_v1, 1e-08  ;;  %v1724_v11 = vmul.f32 %v2563_v45, %v1723_v7 }
 0xe2b   : > { %v1734_v23 = vsub.f32 1.5, %v1733_v18 }
 0xe2c   : > { %2792 = vrsqrt.f32 %v1701_v38  ;;  %v1726_v14 = vsel %vm1725_vm8, %v2563_v45, %v1724_v11  ;;  %vm1746_vm9 = vweird.f32 %v1701_v38  ;;  %v2651_v45 = vld [vmem:[%s3479_s5 + $0x20] sm:$0xff] }
 0xe2d   : > { %v1735_v22 = vmul.f32 %v2791_v55, %v1734_v23  ;;  %v1729_v19 = vsel %vm1727_vm11, %v1728_v15, %v1726_v14 }
 0xe2f   : > { %v1739_v28 = vsel %vm1738_vm5, %v2791_v55, %v1735_v22 }
 0xe30   : > { %v1750_v8 = vmul.f32 %v1739_v28, %v1717_v27 }
 0xe32   : > { %v2793_v16 = vpop.eup %2792  ;;  %1754 = vperm.xlu0 %2679, %v1750_v8  }
 0xe33   : > { %v1741_v9 = vmul.f32 %v2793_v16, %v1701_v38  ;;  %vm1747_vm7 = vweird.f32 %v2793_v16 }
 0xe34   : > { %vm1748_vm10 = vmor %vm1746_vm9, %vm1747_vm7 }
 0xe35   : > { %v1742_v10 = vmul.f32 %v2793_v16, %v1741_v9 }
 0xe37   : > { %v1743_v6 = vmul.f32 0.5, %v1742_v10 }
 0xe39   : > { %v1744_v12 = vsub.f32 1.5, %v1743_v6 }
 0xe3b   : > { %v1745_v17 = vmul.f32 %v2793_v16, %v1744_v12 }
 0xe3d   : > { %v1749_v21 = vsel %vm1748_vm10, %v2793_v16, %v1745_v17 }
 0xe3e   : > { %v1751_v25 = vmul.f32 %v1749_v21, %v1729_v19 }
 0xe40   : > { %1759 = vperm.xlu0 %2679, %v1751_v25  }
 0xe48   : > { %1771 = vperm.xlu0 %2679, %v1691_v13  }
 0xea4   : > { %v1755_v26 = vpop.permute.xlu0 %1754 }
 0xea5   : > { %v1762_v30 = vmul.f32 %v1755_v26, %v3331_v5  ;;  %v2653_v5 = vld [vmem:[%s3479_s5 + $0x30] sm:$0xff] }
 0xea6   : > { %1904 = vmatpush.bf16.msrb.mxu1 %v2653_v5 }
 0xea7   : > { %v3356_v60 = vsel %vm661_vm3, %v1767_v52, %v1762_v30 }
 0xea8   : > { %v3359_v31 = vmul.f32 0.70710677, %v3356_v60 }
 0xeaa   : > { %v1780_v32 = vand.u32 2147483647, %v3359_v31  ;;  %1905 = vmatpush.bf16.msrb.mxu1 %v2652_v41  ;;  %vm1824_vm12 = vcmp.lt.f32.partialorder %v3359_v31, 0.0  ;;  %v2681_v41 = vld [vmem:[%s3480_s6] ss:$0 sm:$0xff] }
 0xeac   : > { %v1782_v53 = vmul.f32 0.3275911, %v1780_v32  ;;  %v1812_v56 = vsub.f32 0.0, %v1780_v32 }
 0xeae   : > { %v1784_v63 = vadd.f32 1.0, %v1782_v53  ;;  %1906 = vmatpush.bf16.msrb.mxu1 %v2651_v45  ;;  %v1814_v62 = vmul.f32 %v1812_v56, %v1780_v32 }
 0xeb0   : > { %2794 = vrcp.f32 %v1784_v63  ;;  %v1816_v24 = vmul.f32 1.442695, %v1814_v62 }
 0xeb2   : > { %v1760_v34 = vpop.permute.xlu0 %1759 }
 0xeb3   : > { %v1763_v43 = vmul.f32 %v1760_v34, %v3343_v39  ;;  %v2650_v39 = vld [vmem:[%s3479_s5 + $0x18] sm:$0xff] }
 0xeb4   : > { %1907 = vmatpush.bf16.msrb.mxu1 %v2650_v39 }
 0xeb6   : > { %v2795_v37 = vpop.eup %2794 }
 0xeb7   : > { %v1788_v40 = vmul.f32 %v2795_v37, %v1784_v63  ;;  %v1776_v63 = vmul.f32 0.5, %v3356_v60 }
 0xeb8   : > { %1908 = vmatpush.bf16.msrb.mxu1 %v2649_v54 }
 0xeb9   : > { %v1790_v42 = vsub.f32 2.0, %v1788_v40 }
 0xeba   : > { %v1772_v13 = vpop.permute.xlu0 %1771 }
 0xebb   : > { %v1792_v2 = vmul.f32 %v2795_v37, %v1790_v42  ;;  %v3374_v44 = vsel %vm661_vm3, %v1772_v13, %v1763_v43 }
 0xebc   : > { %v1779_v35 = vmul.f32 0.70710677, %v3374_v44  ;;  %1909 = vmatpush.bf16.msrb.mxu1 %v2648_v57  ;;  %v1777_v33 = vmul.f32 0.5, %v3374_v44 }
 0xebd   : > { %v1794_v46 = vmul.f32 1.0614054, %v1792_v2 }
 0xebe   : > { %v1781_v47 = vand.u32 2147483647, %v1779_v35  ;;  %vm1825_vm13 = vcmp.lt.f32.partialorder %v1779_v35, 0.0 }
 0xebf   : > { %v1796_v48 = vadd.f32 -1.4531521, %v1794_v46 }
 0xec0   : > { %v1783_v20 = vmul.f32 0.3275911, %v1781_v47  ;;  %1910 = vmatpush.bf16.msrb.mxu1 %v2647_v3  ;;  %v1813_v29 = vsub.f32 0.0, %v1781_v47 }
 0xec1   : > { %v1798_v49 = vmul.f32 %v1796_v48, %v1792_v2 }
 0xec2   : > { %v1785_v50 = vadd.f32 1.0, %v1783_v20  ;;  %v1815_v27 = vmul.f32 %v1813_v29, %v1781_v47 }
 0xec3   : > { %v1800_v51 = vadd.f32 1.4214138, %v1798_v49 }
 0xec4   : > { %2796 = vrcp.f32 %v1785_v50  ;;  %v1818_v9 = vmul.f32 1.442695, %v1815_v27 }
 0xec5   : > { %v1802_v55 = vmul.f32 %v1800_v51, %v1792_v2  ;;  %2798 = vpow2.f32 %v1816_v24 }
 0xec6   : > { %2800 = vpow2.f32 %v1818_v9 }
 0xec7   : > { %v1804_v59 = vadd.f32 -0.28449672, %v1802_v55 }
 0xec9   : > { %v1806_v18 = vmul.f32 %v1804_v59, %v1792_v2 }
 0xeca   : > { %v2797_v61 = vpop.eup %2796 }
 0xecb   : > { %v1789_v1 = vmul.f32 %v2797_v61, %v1785_v50  ;;  %v1808_v36 = vadd.f32 0.2548296, %v1806_v18  ;;  %v2799_v7 = vpop.eup %2798 }
 0xecc   : > { %v2801_v21 = vpop.eup %2800 }
 0xecd   : > { %v1791_v38 = vsub.f32 2.0, %v1789_v1  ;;  %v1810_v28 = vmul.f32 %v1808_v36, %v1792_v2 }
 0xecf   : > { %v1793_v23 = vmul.f32 %v2797_v61, %v1791_v38  ;;  %v1820_v10 = vmul.f32 %v2799_v7, %v1810_v28 }
 0xed1   : > { %v1795_v22 = vmul.f32 1.0614054, %v1793_v23  ;;  %v1822_v12 = vsub.f32 1.0, %v1820_v10 }
 0xed3   : > { %v1797_v4 = vadd.f32 -1.4531521, %v1795_v22  ;;  %v1826_v17 = vsub.f32 0.0, %v1822_v12 }
 0xed5   : > { %v1799_v8 = vmul.f32 %v1797_v4, %v1793_v23  ;;  %v1828_v26 = vsel %vm1824_vm12, %v1826_v17, %v1822_v12 }
 0xed6   : > { %v1830_v32 = vadd.f32 1.0, %v1828_v26 }
 0xed7   : > { %v1801_v16 = vadd.f32 1.4214138, %v1799_v8 }
 0xed8   : > { %v1832_v5 = vmul.f32 %v1830_v32, %v1776_v63 }
 0xed9   : > { %v1803_v11 = vmul.f32 %v1801_v16, %v1793_v23 }
 0xedb   : > { %v1805_v6 = vadd.f32 -0.28449672, %v1803_v11 }
 0xedd   : > { %v1807_v14 = vmul.f32 %v1805_v6, %v1793_v23 }
 0xedf   : > { %v1809_v15 = vadd.f32 0.2548296, %v1807_v14 }
 0xee1   : > { %v1811_v19 = vmul.f32 %v1809_v15, %v1793_v23 }
 0xee3   : > { %v1821_v25 = vmul.f32 %v2801_v21, %v1811_v19 }
 0xee5   : > { %v1823_v30 = vsub.f32 1.0, %v1821_v25 }
 0xee7   : > { %v1827_v52 = vsub.f32 0.0, %v1823_v30 }
 0xee9   : > { %v1829_v53 = vsel %vm1825_vm13, %v1827_v52, %v1823_v30 }
 0xeea   : > { %v1831_v34 = vadd.f32 1.0, %v1829_v53 }
 0xeec   : > { %v1833_v37 = vmul.f32 %v1831_v34, %v1777_v33 }
 0xeee   : > { %v1834_v40 = vpack.c.bf16 %v1833_v37, %v1832_v5 }
 0xef0   : > { %1911 = vmatmul.bf16.vlgmr.msrb.gmra.mxu1 %v1834_v40 }
 0xf6d   : > { %v1912_v31 = vpop.f32.mrf.mxu1 }
 0xf6e   : > { %v3398_v42 = vadd.f32 %v2681_v41, %v1912_v31 }
 0xf70   : > { %v2596_v43 = vmul.f32 -1.442695, %v3398_v42  ;;  %v1959_v13 = vmul.f32 %v3398_v42, %v3398_v42 }
 0xf72   : > { %2802 = vpow2.f32 %v2596_v43  ;;  %1961 = vadd.xlane.f32.xlu1 %v1959_v13 }
 0xf75   : > { %v1914_v2 = vpop.f32.mrf.mxu1 }
 0xf76   : > { %v3403_v35 = vadd.f32 %v2681_v41, %v1914_v2 }
 0xf78   : > { %v2803_v45 = vpop.eup %2802  ;;  %v3407_v46 = vmul.f32 %v3403_v35, %v3403_v35  ;;  %v2597_v62 = vmul.f32 -1.442695, %v3403_v35 }
 0xf79   : > { %v1923_v47 = vadd.f32 1.0, %v2803_v45 }
 0xf7a   : > { %1963 = vadd.xlane.f32.xlu0 %v3407_v46 }
 0xf7b   : > { %2804 = vrcp.f32 %v1923_v47  ;;  %v1936_v49 = vand.u32 2147483648, %v1923_v47  ;;  %v1934_v51 = vand.u32 2147483647, %v1923_v47  ;;  %vm1930_vm15 = vweird.f32 %v1923_v47 }
 0xf7c   : > { %2806 = vpow2.f32 %v2597_v62 }
 0xf7d   : > { %v1937_v55 = vor.u32 1.1754944e-38, %v1936_v49  ;;  %vm1935_vm1 = vcmp.eq.f32.partialorder %v1934_v51, 8.507059e+37 }
 0xf81   : > { %v2805_v48 = vpop.eup %2804 }
 0xf82   : > { %v1926_v20 = vmul.f32 %v2805_v48, %v1923_v47  ;;  %vm1931_vm14 = vweird.f32 %v2805_v48  ;;  %v2807_v1 = vpop.eup %2806 }
 0xf83   : > { %vm1932_vm0 = vmor %vm1930_vm15, %vm1931_vm14  ;;  %v1924_v3 = vadd.f32 1.0, %v2807_v1 }
 0xf84   : > { %v1927_v39 = vsub.f32 1.0, %v1926_v20 }
 0xf85   : > { %2808 = vrcp.f32 %v1924_v3  ;;  %v1951_v36 = vand.u32 2147483648, %v1924_v3  ;;  %vm1945_vm5 = vweird.f32 %v1924_v3  ;;  %v1949_v22 = vand.u32 2147483647, %v1924_v3 }
 0xf86   : > { %v1928_v50 = vmul.f32 %v2805_v48, %v1927_v39 }
 0xf87   : > { %v1952_v27 = vor.u32 1.1754944e-38, %v1951_v36  ;;  %vm1950_vm7 = vcmp.eq.f32.partialorder %v1949_v22, 8.507059e+37 }
 0xf88   : > { %v1929_v54 = vadd.f32 %v2805_v48, %v1928_v50 }
 0xf8a   : > { %v1933_v56 = vsel %vm1932_vm0, %v2805_v48, %v1929_v54 }
 0xf8b   : > { %v1938_v57 = vsel %vm1935_vm1, %v1937_v55, %v1933_v56  ;;  %v2809_v18 = vpop.eup %2808 }
 0xf8c   : > { %v1955_v59 = vmul.f32 10.0, %v1938_v57  ;;  %v1941_v38 = vmul.f32 %v2809_v18, %v1924_v3  ;;  %vm1946_vm4 = vweird.f32 %v2809_v18  ;;  %v2104_v3 = vld [vmem:[%s3482_s8] sm:$0xff] }
 0xf8d   : > { %vm1947_vm6 = vmor %vm1945_vm5, %vm1946_vm4 }
 0xf8e   : > { %v1957_v61 = vadd.f32 1.1, %v1955_v59  ;;  %v1942_v24 = vsub.f32 1.0, %v1941_v38  ;;  %v2105_v38 = vld [vmem:[%s3482_s8 + $0x8] sm:$0xff] }
 0xf90   : > { %2033 = vperm.xlu2 %2673, %v1957_v61   ;;  %v1943_v23 = vmul.f32 %v2809_v18, %v1942_v24  ;;  %v1969_v16 = vmul.f32 %v1957_v61, %v1957_v61 }
 0xf92   : > { %v1944_v29 = vadd.f32 %v2809_v18, %v1943_v23  ;;  %v2598_v9 = vadd.f32 -1.0, %v1969_v16 }
 0xf94   : > { %v1948_v4 = vsel %vm1947_vm6, %v2809_v18, %v1944_v29  ;;  %2810 = vrsqrt.f32 %v2598_v9  ;;  %vm1980_vm9 = vcmp.eq.f32.partialorder %v2598_v9, inf  ;;  %v1983_v20 = vand.u32 2147483648, %v2598_v9 }
 0xf95   : > { %v1953_v28 = vsel %vm1950_vm7, %v1952_v27, %v1948_v4  ;;  %vm1982_vm12 = vcmp.eq.f32.partialorder %v2598_v9, 0.0 }
 0xf96   : > { %v1956_v8 = vmul.f32 10.0, %v1953_v28 }
 0xf98   : > { %v3411_v7 = vadd.f32 1.1, %v1956_v8 }
 0xf9a   : > { %v1970_v10 = vmul.f32 %v3411_v7, %v3411_v7  ;;  %v2811_v6 = vpop.eup %2810 }
 0xf9b   : > { %v1974_v12 = vmul.f32 %v2811_v6, %v2598_v9 }
 0xf9c   : > { %v2599_v11 = vadd.f32 -1.0, %v1970_v10 }
 0xf9d   : > { %v1975_v14 = vmul.f32 %v2811_v6, %v1974_v12 }
 0xf9e   : > { %2812 = vrsqrt.f32 %v2599_v11  ;;  %vm1992_vm14 = vcmp.eq.f32.partialorder %v2599_v11, inf  ;;  %v1995_v59 = vand.u32 2147483648, %v2599_v11  ;;  %vm1994_vm1 = vcmp.eq.f32.partialorder %v2599_v11, 0.0 }
 0xf9f   : > { %v1976_v25 = vmul.f32 0.5, %v1975_v14 }
 0xfa1   : > { %v1977_v30 = vsub.f32 1.5, %v1976_v25 }
 0xfa3   : > { %v1978_v34 = vmul.f32 %v2811_v6, %v1977_v30 }
 0xfa4   : > { %v2813_v15 = vpop.eup %2812 }
 0xfa5   : > { %v1986_v26 = vmul.f32 %v2813_v15, %v2599_v11  ;;  %v1979_v41 = vmul.f32 %v2598_v9, %v1978_v34 }
 0xfa7   : > { %v1987_v52 = vmul.f32 %v2813_v15, %v1986_v26  ;;  %v1981_v45 = vsel %vm1980_vm9, %v2598_v9, %v1979_v41 }
 0xfa8   : > { %v1984_v49 = vsel %vm1982_vm12, %v1983_v20, %v1981_v45 }
 0xfa9   : > { %v1988_v5 = vmul.f32 0.5, %v1987_v52 }
 0xfab   : > { %v1989_v31 = vsub.f32 1.5, %v1988_v5 }
 0xfad   : > { %v1990_v47 = vmul.f32 %v2813_v15, %v1989_v31 }
 0xfaf   : > { %v1991_v54 = vmul.f32 %v2599_v11, %v1990_v47 }
 0xfb1   : > { %v1993_v57 = vsel %vm1992_vm14, %v2599_v11, %v1991_v54 }
 0xfb2   : > { %v1996_v62 = vsel %vm1994_vm1, %v1995_v59, %v1993_v57 }
 0xfe5   : > { %v1962_v17 = vpop.xlane.xlu1 %1961 }
 0xfe6   : > { %v1965_v19 = vsub.f32 %v1962_v17, %v1959_v13 }
 0xfe8   : > { %v1967_v21 = vmax.f32 %v1965_v19, 1e-08 }
 0xfea   : > { %2814 = vrsqrt.f32 %v1967_v21  ;;  %vm2003_vm10 = vweird.f32 %v1967_v21  ;;  %v2034_v24 = vpop.permute.xlu2 %2033 }
 0xfed   : > { %v1964_v32 = vpop.xlane.xlu0 %1963 }
 0xfee   : > { %v1966_v53 = vsub.f32 %v1964_v32, %v3407_v46 }
 0xff0   : > { %v2815_v63 = vpop.eup %2814  ;;  %v1968_v33 = vmax.f32 %v1966_v53, 1e-08 }
 0xff1   : > { %v1998_v37 = vmul.f32 %v2815_v63, %v1967_v21  ;;  %vm2004_vm8 = vweird.f32 %v2815_v63 }
 0xff2   : > { %2816 = vrsqrt.f32 %v1968_v33  ;;  %vm2005_vm11 = vmor %vm2003_vm10, %vm2004_vm8  ;;  %vm2013_vm15 = vweird.f32 %v1968_v33 }
 0xff3   : > { %v1999_v40 = vmul.f32 %v2815_v63, %v1998_v37 }
 0xff5   : > { %v2000_v43 = vmul.f32 0.5, %v1999_v40 }
 0xff7   : > { %v2001_v13 = vsub.f32 1.5, %v2000_v43 }
 0xff8   : > { %v2817_v2 = vpop.eup %2816 }
 0xff9   : > { %v2008_v48 = vmul.f32 %v2817_v2, %v1968_v33  ;;  %v2002_v46 = vmul.f32 %v2815_v63, %v2001_v13  ;;  %vm2014_vm13 = vweird.f32 %v2817_v2 }
 0xffa   : > { %vm2015_vm0 = vmor %vm2013_vm15, %vm2014_vm13 }
 0xffb   : > { %v2009_v39 = vmul.f32 %v2817_v2, %v2008_v48  ;;  %v2006_v50 = vsel %vm2005_vm11, %v2815_v63, %v2002_v46 }
 0xffc   : > { %v2017_v51 = vmul.f32 %v2006_v50, %v1984_v49 }
 0xffd   : > { %v2010_v55 = vmul.f32 0.5, %v2009_v39 }
 0xffe   : > { %2021 = vperm.xlu1 %2672, %v2017_v51  }
 0xfff   : > { %v2011_v56 = vsub.f32 1.5, %v2010_v55 }
0x1001   : > { %v2012_v61 = vmul.f32 %v2817_v2, %v2011_v56 }
0x1003   : > { %v2016_v1 = vsel %vm2015_vm0, %v2817_v2, %v2012_v61 }
0x1004   : > { %v2018_v18 = vmul.f32 %v2016_v1, %v1996_v62 }
0x1006   : > { %2026 = vperm.xlu2 %2673, %v2018_v18   ;;  %2108 = vperm.xlu1 %2672, %v2104_v3  }
0x100e   : > { %2038 = vperm.xlu2 %2673, %v3411_v7  }
0x1016   : > { %2113 = vperm.xlu2 %2673, %v2105_v38  }
0x1060   : > { %v2027_v23 = vpop.permute.xlu2 %2026 }
0x1061   : > { %v2030_v29 = vmul.f32 %v2027_v23, %v3403_v35 }
0x1068   : > { %v2039_v36 = vpop.permute.xlu2 %2038 }
0x1069   : > { %v2042_v22 = vsel %vm661_vm3, %v2039_v36, %v2030_v29 }
0x106a   : > { %v2048_v4 = vmul.f32 0.70710677, %v2042_v22  ;;  %v2046_v38 = vmul.f32 0.5, %v2042_v22 }
0x106c   : > { %v2050_v27 = vand.u32 2147483647, %v2048_v4  ;;  %vm2094_vm4 = vcmp.lt.f32.partialorder %v2048_v4, 0.0 }
0x106e   : > { %v2052_v28 = vmul.f32 0.3275911, %v2050_v27  ;;  %v2082_v19 = vsub.f32 0.0, %v2050_v27 }
0x1070   : > { %v2054_v8 = vadd.f32 1.0, %v2052_v28  ;;  %v2022_v16 = vpop.permute.xlu1 %2021  ;;  %v2084_v30 = vmul.f32 %v2082_v19, %v2050_v27  ;;  %v2655_v28 = vld [vmem:[%s3481_s7] sm:$0xff]  ;;  %v2114_v22 = vpop.permute.xlu2 %2113 }
0x1071   : > { %v2029_v7 = vmul.f32 %v2022_v16, %v3398_v42 }
0x1072   : > { %2818 = vrcp.f32 %v2054_v8  ;;  %v2087_v63 = vmul.f32 1.442695, %v2084_v30 }
0x1073   : > { %v2041_v9 = vsel %vm661_vm3, %v2034_v24, %v2029_v7 }
0x1074   : > { %v2047_v10 = vmul.f32 0.70710677, %v2041_v9  ;;  %v2045_v24 = vmul.f32 0.5, %v2041_v9 }
0x1076   : > { %v2049_v11 = vand.u32 2147483647, %v2047_v10  ;;  %vm2093_vm5 = vcmp.lt.f32.partialorder %v2047_v10, 0.0 }
0x1078   : > { %v2819_v6 = vpop.eup %2818  ;;  %v2051_v12 = vmul.f32 0.3275911, %v2049_v11  ;;  %v2081_v5 = vsub.f32 0.0, %v2049_v11  ;;  %v2109_v4 = vpop.permute.xlu1 %2108 }
0x1079   : > { %v2058_v35 = vmul.f32 %v2819_v6, %v2054_v8 }
0x107a   : > { %v2053_v14 = vadd.f32 1.0, %v2051_v12  ;;  %v2083_v43 = vmul.f32 %v2081_v5, %v2049_v11 }
0x107b   : > { %v2060_v15 = vsub.f32 2.0, %v2058_v35 }
0x107c   : > { %2820 = vrcp.f32 %v2053_v14  ;;  %v2085_v20 = vmul.f32 1.442695, %v2083_v43 }
0x107d   : > { %v2062_v17 = vmul.f32 %v2819_v6, %v2060_v15  ;;  %2822 = vpow2.f32 %v2087_v63 }
0x107e   : > { %2824 = vpow2.f32 %v2085_v20 }
0x107f   : > { %v2064_v21 = vmul.f32 1.0614054, %v2062_v17 }
0x1081   : > { %v2066_v25 = vadd.f32 -1.4531521, %v2064_v21 }
0x1082   : > { %v2821_v26 = vpop.eup %2820 }
0x1083   : > { %v2068_v52 = vmul.f32 %v2066_v25, %v2062_v17  ;;  %v2057_v42 = vmul.f32 %v2821_v26, %v2053_v14  ;;  %v2823_v48 = vpop.eup %2822 }
0x1084   : > { %v2825_v57 = vpop.eup %2824 }
0x1085   : > { %v2070_v32 = vadd.f32 1.4214138, %v2068_v52  ;;  %v2059_v53 = vsub.f32 2.0, %v2057_v42 }
0x1087   : > { %v2072_v33 = vmul.f32 %v2070_v32, %v2062_v17  ;;  %v2061_v34 = vmul.f32 %v2821_v26, %v2059_v53 }
0x1089   : > { %v2074_v37 = vadd.f32 -0.28449672, %v2072_v33  ;;  %v2063_v40 = vmul.f32 1.0614054, %v2061_v34 }
0x108b   : > { %v2076_v41 = vmul.f32 %v2074_v37, %v2062_v17  ;;  %v2065_v31 = vadd.f32 -1.4531521, %v2063_v40 }
0x108d   : > { %v2078_v13 = vadd.f32 0.2548296, %v2076_v41  ;;  %v2067_v2 = vmul.f32 %v2065_v31, %v2061_v34 }
0x108f   : > { %v2080_v45 = vmul.f32 %v2078_v13, %v2062_v17  ;;  %v2069_v47 = vadd.f32 1.4214138, %v2067_v2 }
0x1091   : > { %v2090_v46 = vmul.f32 %v2823_v48, %v2080_v45  ;;  %v2071_v39 = vmul.f32 %v2069_v47, %v2061_v34 }
0x1093   : > { %v2073_v49 = vadd.f32 -0.28449672, %v2071_v39  ;;  %v2092_v50 = vsub.f32 1.0, %v2090_v46 }
0x1095   : > { %v2075_v51 = vmul.f32 %v2073_v49, %v2061_v34  ;;  %v2096_v55 = vsub.f32 0.0, %v2092_v50 }
0x1097   : > { %v2077_v54 = vadd.f32 0.2548296, %v2075_v51  ;;  %v2098_v61 = vsel %vm2094_vm4, %v2096_v55, %v2092_v50 }
0x1098   : > { %v2100_v3 = vadd.f32 1.0, %v2098_v61 }
0x1099   : > { %v2079_v56 = vmul.f32 %v2077_v54, %v2061_v34 }
0x109a   : > { %v2102_v29 = vmul.f32 %v2100_v3, %v2046_v38  ;;  %v2196_v3 = vshrl.u32 %v657_v58, 7 }
0x109b   : > { %v2089_v59 = vmul.f32 %v2825_v57, %v2079_v56 }
0x109c   : > { %vm2198_vm14 = vcmp.eq.s32.totalorder %v2196_v3, 0 }
0x109d   : > { %v2091_v62 = vsub.f32 1.0, %v2089_v59 }
0x109f   : > { %v2095_v1 = vsub.f32 0.0, %v2091_v62 }
0x10a1   : > { %v2097_v18 = vsel %vm2093_vm5, %v2095_v1, %v2091_v62 }
0x10a2   : > { %v2099_v23 = vadd.f32 1.0, %v2097_v18 }
0x10a4   : > { %v2101_v36 = vmul.f32 %v2099_v23, %v2045_v24 }
0x10a6   : > { %v2103_v27 = vpack.c.bf16 %v2102_v29, %v2101_v36 }
0x10a8   : > { %2131 = vmatpush.bf16.msra.mxu2 %v2103_v27 }
0x10ab   : > { %2604 = vmatmul.msk.bf16.vlgmr.msra.gmra.mxu2 %vm698_vm2, %v2655_v28 }
0x112e   : > { %v2133_v8 = vpop.f32.mrf.mxu2 }
0x112f   : > { %v3433_v16 = vadd.f32 %v2133_v8, %v2109_v4 }
0x1131   : > { %v2605_v7 = vmul.f32 -1.442695, %v3433_v16  ;;  %v2159_v6 = vmul.f32 %v3433_v16, %v3433_v16 }
0x1133   : > { %2826 = vpow2.f32 %v2605_v7 }
0x1136   : > { %v2135_v9 = vpop.f32.mrf.mxu2 }
0x1137   : > { %v2136_v10 = vadd.f32 %v2135_v9, %v2114_v22 }
0x1139   : > { %v2827_v11 = vpop.eup %2826  ;;  %v2160_v12 = vmul.f32 %v2136_v10, %v2136_v10 }
0x113a   : > { %v2141_v35 = vadd.f32 1.0, %v2827_v11 }
0x113b   : > { %v2161_v14 = vadd.f32 %v2160_v12, %v2159_v6 }
0x113c   : > { %2828 = vrcp.f32 %v2141_v35  ;;  %v2153_v42 = vand.u32 2147483648, %v2141_v35  ;;  %v2151_v53 = vand.u32 2147483647, %v2141_v35  ;;  %vm2147_vm6 = vweird.f32 %v2141_v35 }
0x113d   : > { %v2162_v15 = vrot.slane %v2161_v14, 4 }
0x113e   : > { %v2154_v5 = vor.u32 1.1754944e-38, %v2153_v42  ;;  %vm2152_vm8 = vcmp.eq.f32.partialorder %v2151_v53, 8.507059e+37 }
0x113f   : > { %v2163_v17 = vadd.f32 %v2162_v15, %v2161_v14 }
0x1141   : > { %v2164_v19 = vrot.slane %v2163_v17, 2 }
0x1142   : > { %v2829_v21 = vpop.eup %2828 }
0x1143   : > { %v2143_v25 = vmul.f32 %v2829_v21, %v2141_v35  ;;  %v2165_v26 = vadd.f32 %v2164_v19, %v2163_v17  ;;  %vm2148_vm2 = vweird.f32 %v2829_v21 }
0x1144   : > { %vm2149_vm7 = vmor %vm2147_vm6, %vm2148_vm2 }
0x1145   : > { %v2144_v30 = vsub.f32 1.0, %v2143_v25  ;;  %v2166_v52 = vrot.slane %v2165_v26, 1 }
0x1147   : > { %v2145_v32 = vmul.f32 %v2829_v21, %v2144_v30  ;;  %v2167_v63 = vadd.f32 %v2166_v52, %v2165_v26 }
0x1149   : > { %v2146_v33 = vadd.f32 %v2829_v21, %v2145_v32  ;;  %v2168_v34 = vsub.f32 %v2167_v63, %v2159_v6 }
0x114b   : > { %v2150_v37 = vsel %vm2149_vm7, %v2829_v21, %v2146_v33  ;;  %v2169_v40 = vmax.f32 %v2168_v34, 1e-08 }
0x114c   : > { %v2155_v41 = vsel %vm2152_vm8, %v2154_v5, %v2150_v37 }
0x114d   : > { %v2157_v31 = vmul.f32 10.0, %v2155_v41  ;;  %2830 = vrsqrt.f32 %v2169_v40  ;;  %vm2190_vm11 = vweird.f32 %v2169_v40 }
0x114f   : > { %v2158_v43 = vadd.f32 1.1, %v2157_v31 }
0x1151   : > { %v2170_v13 = vmul.f32 %v2158_v43, %v2158_v43  ;;  %v2203_v29 = vperm.slane %v2158_v43, 0 }
0x1153   : > { %v2831_v2 = vpop.eup %2830  ;;  %v2606_v45 = vadd.f32 -1.0, %v2170_v13 }
0x1154   : > { %v2185_v47 = vmul.f32 %v2831_v2, %v2169_v40  ;;  %vm2191_vm9 = vweird.f32 %v2831_v2 }
0x1155   : > { %2832 = vrsqrt.f32 %v2606_v45  ;;  %vm2179_vm10 = vcmp.eq.f32.partialorder %v2606_v45, inf  ;;  %v2182_v59 = vand.u32 2147483648, %v2606_v45  ;;  %vm2181_vm12 = vcmp.eq.f32.partialorder %v2606_v45, 0.0  ;;  %vm2192_vm13 = vmor %vm2190_vm11, %vm2191_vm9 }
0x1156   : > { %v2186_v48 = vmul.f32 %v2831_v2, %v2185_v47 }
0x1158   : > { %v2187_v39 = vmul.f32 0.5, %v2186_v48 }
0x115a   : > { %v2188_v51 = vsub.f32 1.5, %v2187_v39 }
0x115b   : > { %v2833_v20 = vpop.eup %2832 }
0x115c   : > { %v2173_v46 = vmul.f32 %v2833_v20, %v2606_v45  ;;  %v2189_v56 = vmul.f32 %v2831_v2, %v2188_v51 }
0x115e   : > { %v2174_v49 = vmul.f32 %v2833_v20, %v2173_v46  ;;  %v2193_v1 = vsel %vm2192_vm13, %v2831_v2, %v2189_v56 }
0x1160   : > { %v2175_v50 = vmul.f32 0.5, %v2174_v49 }
0x1162   : > { %v2176_v54 = vsub.f32 1.5, %v2175_v50 }
0x1164   : > { %v2177_v55 = vmul.f32 %v2833_v20, %v2176_v54 }
0x1166   : > { %v2178_v57 = vmul.f32 %v2606_v45, %v2177_v55 }
0x1168   : > { %v2180_v61 = vsel %vm2179_vm10, %v2606_v45, %v2178_v57 }
0x1169   : > { %v2183_v62 = vsel %vm2181_vm12, %v2182_v59, %v2180_v61 }
0x116a   : > { %v2194_v18 = vmul.f32 %v2193_v1, %v2183_v62 }
0x116c   : > { %v2200_v38 = vperm.slane %v2194_v18, 0 }
0x116e   : > { %v2201_v24 = vmul.f32 %v2200_v38, %v3433_v16  ;;  %v2202_v23 = vmul.f32 %v2200_v38, %v2136_v10 }
0x1170   : > { %v3441_v36 = vadd.f32 %v2202_v23, %v3374_v44  ;;  %v2204_v27 = vsel %vm2198_vm14, %v2203_v29, %v2201_v24 }
0x1171   : > { %v3444_v28 = vadd.f32 %v2204_v27, %v3356_v60 }
0x1172   : > { %v3448_v4 = vmul.f32 %v3441_v36, %v3441_v36  ;;  %v2608_v19 = vmul.f32 -1.442695, %v3441_v36 }
0x1173   : > { %v3452_v58 = vmul.f32 %v3444_v28, %v3444_v28  ;;  %v2607_v8 = vmul.f32 -1.442695, %v3444_v28 }
0x1174   : > { %2254 = vadd.xlane.f32.xlu0 %v3448_v4 }
0x1175   : > { %2252 = vadd.xlane.f32.xlu1 %v3452_v58  ;;  %2834 = vpow2.f32 %v2607_v8 }
0x117b   : > { %v2835_v44 = vpop.eup %2834 }
0x117c   : > { %v2214_v16 = vadd.f32 1.0, %v2835_v44 }
0x117e   : > { %2836 = vrcp.f32 %v2214_v16  ;;  %v2227_v9 = vand.u32 2147483648, %v2214_v16  ;;  %v2225_v11 = vand.u32 2147483647, %v2214_v16  ;;  %vm2221_vm0 = vweird.f32 %v2214_v16 }
0x117f   : > { %2838 = vpow2.f32 %v2608_v19 }
0x1180   : > { %v2228_v12 = vor.u32 1.1754944e-38, %v2227_v9  ;;  %vm2226_vm4 = vcmp.eq.f32.partialorder %v2225_v11, 8.507059e+37 }
0x1184   : > { %v2837_v60 = vpop.eup %2836 }
0x1185   : > { %v2217_v7 = vmul.f32 %v2837_v60, %v2214_v16  ;;  %vm2222_vm15 = vweird.f32 %v2837_v60  ;;  %v2839_v21 = vpop.eup %2838 }
0x1186   : > { %vm2223_vm1 = vmor %vm2221_vm0, %vm2222_vm15  ;;  %v2215_v25 = vadd.f32 1.0, %v2839_v21 }
0x1187   : > { %v2218_v22 = vsub.f32 1.0, %v2217_v7 }
0x1188   : > { %2840 = vrcp.f32 %v2215_v25  ;;  %v2242_v53 = vand.u32 2147483648, %v2215_v25  ;;  %vm2236_vm2 = vweird.f32 %v2215_v25  ;;  %v2240_v63 = vand.u32 2147483647, %v2215_v25 }
0x1189   : > { %v2219_v10 = vmul.f32 %v2837_v60, %v2218_v22 }
0x118a   : > { %v2243_v34 = vor.u32 1.1754944e-38, %v2242_v53  ;;  %vm2241_vm7 = vcmp.eq.f32.partialorder %v2240_v63, 8.507059e+37 }
0x118b   : > { %v2220_v6 = vadd.f32 %v2837_v60, %v2219_v10 }
0x118d   : > { %v2224_v35 = vsel %vm2223_vm1, %v2837_v60, %v2220_v6 }
0x118e   : > { %v2229_v14 = vsel %vm2226_vm4, %v2228_v12, %v2224_v35  ;;  %v2841_v26 = vpop.eup %2840 }
0x118f   : > { %v2246_v15 = vmul.f32 10.0, %v2229_v14  ;;  %v2232_v30 = vmul.f32 %v2841_v26, %v2215_v25  ;;  %vm2237_vm5 = vweird.f32 %v2841_v26 }
0x1190   : > { %vm2238_vm6 = vmor %vm2236_vm2, %vm2237_vm5 }
0x1191   : > { %v2248_v17 = vadd.f32 1.1, %v2246_v15  ;;  %v2233_v52 = vsub.f32 1.0, %v2232_v30 }
0x1193   : > { %2324 = vperm.xlu2 %2673, %v2248_v17   ;;  %v2234_v42 = vmul.f32 %v2841_v26, %v2233_v52  ;;  %v2260_v31 = vmul.f32 %v2248_v17, %v2248_v17 }
0x1195   : > { %v2235_v32 = vadd.f32 %v2841_v26, %v2234_v42  ;;  %v2609_v13 = vadd.f32 -1.0, %v2260_v31 }
0x1197   : > { %v2239_v33 = vsel %vm2238_vm6, %v2841_v26, %v2235_v32  ;;  %vm2271_vm11 = vcmp.eq.f32.partialorder %v2609_v13, inf  ;;  %v2274_v10 = vand.u32 2147483648, %v2609_v13  ;;  %vm2273_vm1 = vcmp.eq.f32.partialorder %v2609_v13, 0.0 }
0x1198   : > { %v2244_v5 = vsel %vm2241_vm7, %v2243_v34, %v2239_v33 }
0x1199   : > { %v2247_v37 = vmul.f32 10.0, %v2244_v5 }
0x119b   : > { %v2249_v40 = vadd.f32 1.1, %v2247_v37 }
0x119d   : > { %v2261_v41 = vmul.f32 %v2249_v40, %v2249_v40 }
0x119f   : > { %v2610_v43 = vadd.f32 -1.0, %v2261_v41 }
0x11a1   : > { %2842 = vrsqrt.f32 %v2610_v43  ;;  %vm2283_vm9 = vcmp.eq.f32.partialorder %v2610_v43, inf  ;;  %v2286_v7 = vand.u32 2147483648, %v2610_v43  ;;  %vm2285_vm15 = vcmp.eq.f32.partialorder %v2610_v43, 0.0 }
0x11a2   : > { %2844 = vrsqrt.f32 %v2609_v13 }
0x11a7   : > { %v2843_v2 = vpop.eup %2842 }
0x11a8   : > { %v2845_v45 = vpop.eup %2844  ;;  %v2277_v47 = vmul.f32 %v2843_v2, %v2610_v43 }
0x11a9   : > { %v2265_v48 = vmul.f32 %v2845_v45, %v2609_v13 }
0x11aa   : > { %v2278_v20 = vmul.f32 %v2843_v2, %v2277_v47 }
0x11ab   : > { %v2266_v39 = vmul.f32 %v2845_v45, %v2265_v48 }
0x11ac   : > { %v2279_v55 = vmul.f32 0.5, %v2278_v20 }
0x11ad   : > { %v2267_v57 = vmul.f32 0.5, %v2266_v39 }
0x11ae   : > { %v2280_v59 = vsub.f32 1.5, %v2279_v55 }
0x11af   : > { %v2268_v61 = vsub.f32 1.5, %v2267_v57 }
0x11b0   : > { %v2281_v1 = vmul.f32 %v2843_v2, %v2280_v59 }
0x11b1   : > { %v2269_v38 = vmul.f32 %v2845_v45, %v2268_v61 }
0x11b2   : > { %v2282_v27 = vmul.f32 %v2610_v43, %v2281_v1 }
0x11b3   : > { %v2270_v8 = vmul.f32 %v2609_v13, %v2269_v38 }
0x11b4   : > { %v2284_v60 = vsel %vm2283_vm9, %v2610_v43, %v2282_v27 }
0x11b5   : > { %v2272_v9 = vsel %vm2271_vm11, %v2609_v13, %v2270_v8  ;;  %v2287_v6 = vsel %vm2285_vm15, %v2286_v7, %v2284_v60 }
0x11b6   : > { %v2275_v14 = vsel %vm2273_vm1, %v2274_v10, %v2272_v9 }
0x11e7   : > { %v2255_v46 = vpop.xlane.xlu0 %2254 }
0x11e8   : > { %v2257_v49 = vsub.f32 %v2255_v46, %v3448_v4  ;;  %v2253_v50 = vpop.xlane.xlu1 %2252 }
0x11e9   : > { %v2256_v51 = vsub.f32 %v2253_v50, %v3452_v58 }
0x11ea   : > { %v2259_v54 = vmax.f32 %v2257_v49, 1e-08 }
0x11eb   : > { %v2258_v56 = vmax.f32 %v2256_v51, 1e-08 }
0x11ec   : > { %2846 = vrsqrt.f32 %v2259_v54  ;;  %vm2304_vm12 = vweird.f32 %v2259_v54 }
0x11ed   : > { %2848 = vrsqrt.f32 %v2258_v56  ;;  %vm2294_vm14 = vweird.f32 %v2258_v56  ;;  %v2325_v19 = vpop.permute.xlu2 %2324 }
0x11f2   : > { %v2847_v62 = vpop.eup %2846 }
0x11f3   : > { %v2849_v3 = vpop.eup %2848  ;;  %v2299_v18 = vmul.f32 %v2847_v62, %v2259_v54  ;;  %vm2305_vm8 = vweird.f32 %v2847_v62 }
0x11f4   : > { %v2289_v24 = vmul.f32 %v2849_v3, %v2258_v56  ;;  %vm2295_vm10 = vweird.f32 %v2849_v3  ;;  %vm2306_vm13 = vmor %vm2304_vm12, %vm2305_vm8 }
0x11f5   : > { %v2300_v23 = vmul.f32 %v2847_v62, %v2299_v18  ;;  %vm2296_vm0 = vmor %vm2294_vm14, %vm2295_vm10 }
0x11f6   : > { %v2290_v29 = vmul.f32 %v2849_v3, %v2289_v24 }
0x11f7   : > { %v2301_v4 = vmul.f32 0.5, %v2300_v23 }
0x11f8   : > { %v2291_v58 = vmul.f32 0.5, %v2290_v29 }
0x11f9   : > { %v2302_v44 = vsub.f32 1.5, %v2301_v4 }
0x11fa   : > { %v2292_v16 = vsub.f32 1.5, %v2291_v58 }
0x11fb   : > { %v2303_v22 = vmul.f32 %v2847_v62, %v2302_v44 }
0x11fc   : > { %v2293_v11 = vmul.f32 %v2849_v3, %v2292_v16 }
0x11fd   : > { %v2307_v12 = vsel %vm2306_vm13, %v2847_v62, %v2303_v22 }
0x11fe   : > { %v2309_v35 = vmul.f32 %v2307_v12, %v2287_v6  ;;  %v2297_v15 = vsel %vm2296_vm0, %v2849_v3, %v2293_v11 }
0x11ff   : > { %v2308_v17 = vmul.f32 %v2297_v15, %v2275_v14 }
0x1200   : > { %2317 = vperm.xlu0 %2679, %v2309_v35  }
0x1201   : > { %2312 = vperm.xlu2 %2673, %v2308_v17  }
0x1209   : > { %2329 = vperm.xlu2 %2673, %v2249_v40  }
0x125b   : > { %v2313_v21 = vpop.permute.xlu2 %2312 }
0x125c   : > { %v2320_v25 = vmul.f32 %v2313_v21, %v3444_v28 }
0x125e   : > { %v2332_v26 = vsel %vm661_vm3, %v2325_v19, %v2320_v25 }
0x125f   : > { %2334 = vst [vmem:[%s332_s16] sm:$0xff] %v2332_v26 }
0x1263   : > { %v2330_v42 = vpop.permute.xlu2 %2329 }
0x1272   : > { %v2318_v30 = vpop.permute.xlu0 %2317 }
0x1273   : > { %v2321_v52 = vmul.f32 %v2318_v30, %v3441_v36 }
0x1275   : > { %v2333_v32 = vsel %vm661_vm3, %v2330_v42, %v2321_v52 }
0x1276   : > { %2335 = vst [vmem:[%s332_s16 + $0x8] sm:$0xff] %v2333_v32 }
0x1277 PF: > { %s19_s30 = sadd.s32 1, %s2858_s30  }
0x1278   : > { %p16_p4 = scmp.ge.s32.totalorder %s19_s30, 4  }
0x127a   :  { %18 = sbr.rel (!%p16_p4) target bundleno = 1 (0x1), region = 86 }

</bundles_post_ra>
